<compile_context>
chip_gen: v7x
topology: tpu7x:2x2x1
jax: 0.10.0
libtpu: 0.0.40
codegen_flags: <defaults>
</compile_context>

<pallas_src>
import jax
import jax.numpy as jnp
import numpy as np
from jax import lax
from jax.experimental import pallas as pl
from jax.experimental.pallas import tpu as pltpu


def _bilstm_kernel(x_ref, wih_ref, bg_ref, whh_f_ref, whh_b_ref,
                   wlin_f_ref, wlin_b_ref, blin_ref, out_ref,
                   xf_scr, xb_scr, hf_scr, hb_scr):
    T, BB, nIn = x_ref.shape
    H = whh_f_ref.shape[0]
    H4 = 4 * H

    # ---- Bulk input projection for both directions: one big MXU matmul ----
    # (T, BB) -> T*BB merge is a free relayout because BB is a multiple of the
    # bf16 sublane packing (16).
    x2d = x_ref[...].reshape(T * BB, nIn)                        # bf16
    xproj = jnp.dot(x2d, wih_ref[...],
                    preferred_element_type=jnp.float32) + bg_ref[...]
    xproj = xproj.astype(jnp.bfloat16)                           # halve scratch bytes
    # Split into per-direction scratch so the recurrence never loads the full
    # 8H row and discards half of it.
    xf_scr[...] = xproj[:, :H4].reshape(T, BB, H4)
    xb_scr[...] = xproj[:, H4:].reshape(T, BB, H4)

    # Hoist recurrent weights out of the time loop.
    whh_f = whh_f_ref[...]                                       # (H, 4H) bf16
    whh_b = whh_b_ref[...]

    def cell(gates, c):                                          # f32 element-wise
        i = jax.nn.sigmoid(gates[:, 0 * H:1 * H])
        f = jax.nn.sigmoid(gates[:, 1 * H:2 * H])
        g = jnp.tanh(gates[:, 2 * H:3 * H])
        o = jax.nn.sigmoid(gates[:, 3 * H:4 * H])
        c_new = f * c + i * g
        h_new = o * jnp.tanh(c_new)
        return h_new, c_new

    h0 = jnp.zeros((BB, H), jnp.float32)
    c0 = jnp.zeros((BB, H), jnp.float32)

    # ---- Fused fwd/bwd recurrence: two independent chains keep MXU fed ----
    def body(t, carry):
        hf, cf, hb, cb = carry
        tb = T - 1 - t
        gf = xf_scr[t].astype(jnp.float32) + jnp.dot(
            hf.astype(jnp.bfloat16), whh_f, preferred_element_type=jnp.float32)
        gb = xb_scr[tb].astype(jnp.float32) + jnp.dot(
            hb.astype(jnp.bfloat16), whh_b, preferred_element_type=jnp.float32)
        hf, cf = cell(gf, cf)
        hb, cb = cell(gb, cb)
        hf_scr[t] = hf.astype(jnp.bfloat16)      # already in epilogue matmul dtype
        hb_scr[tb] = hb.astype(jnp.bfloat16)
        return hf, cf, hb, cb

    # Bounded unroll: keeps LLO scheduling visibility without exploding
    # instruction memory / compile time for long sequences.
    lax.fori_loop(0, T, body, (h0, c0, h0, c0), unroll=min(T, 8))

    # ---- Output projection: split-weight form, no concatenate ----
    hf_flat = hf_scr[...].reshape(T * BB, H)                     # bf16 already
    hb_flat = hb_scr[...].reshape(T * BB, H)
    out2d = (jnp.dot(hf_flat, wlin_f_ref[...], preferred_element_type=jnp.float32)
             + jnp.dot(hb_flat, wlin_b_ref[...], preferred_element_type=jnp.float32)
             + blin_ref[...])
    out_ref[...] = out2d.reshape(T, BB, out_ref.shape[-1]).astype(out_ref.dtype)


_SUBLANE = 16                       # bf16 sublane packing width
_VMEM_BUDGET = 48 * 1024 * 1024     # headroom inside v7x's 64 MiB physical VMEM


def _round_up(x, m):
    return ((x + m - 1) // m) * m


def _tile_vmem_bytes(T, bt, nIn, H, nOut_pad):
    """Rough per-grid-step VMEM footprint: bf16 scratch + double-buffered I/O + weights."""
    scratch = T * bt * (8 * H + 2 * H) * 2             # xf/xb + hf/hb scratch (bf16)
    io = 2 * T * bt * (nIn + nOut_pad) * 2             # double-buffered bf16 in/out tiles
    w_elems = nIn * 8 * H + 2 * (H * 4 * H) + 2 * (H * nOut_pad)
    weights = 2 * (w_elems * 2 + (8 * H + nOut_pad) * 4)  # x2: default double-buffering
    return scratch + io + weights


def bilstm_forward(x, params, *, batch_tile=None, num_cores=1):
    """x: (T, B, nIn) f32 -> (T, B, nOut) f32.

    batch_tile=None picks the biggest tile the VMEM budget allows:
      * single-TensorCore chips (v5e/v6e): whole padded batch in ONE grid step,
      * v7x: pass num_cores=2 so each TensorCore gets one equal shard.
    """
    T, B, nIn = x.shape
    H = params['whh_f'].shape[0]
    nOut = params['wlin'].shape[1]
    bf16 = jnp.bfloat16

    nOut_pad = _round_up(nOut, 128)
    B_pad = _round_up(max(B, _SUBLANE), _SUBLANE)

    if batch_tile is None:
        batch_tile = _round_up(pl.cdiv(B_pad, max(num_cores, 1)), _SUBLANE)
    batch_tile = max(_round_up(batch_tile, _SUBLANE), _SUBLANE)
    # Shrink the tile only if VMEM forces it: splitting the batch re-serializes
    # the latency-bound recurrence, so it is a last resort.
    # (For very long T the right move is instead to T-chunk the bulk input
    #  projection with pltpu.emit_pipeline rather than shrink batch_tile.)
    while (batch_tile > _SUBLANE and
           _tile_vmem_bytes(T, batch_tile, nIn, H, nOut_pad) > _VMEM_BUDGET):
        batch_tile = max(_round_up(batch_tile // 2, _SUBLANE), _SUBLANE)
    B_pad = _round_up(B_pad, batch_tile)
    nbt = B_pad // batch_tile

    # Pad batch to the tile width; cast activations to bf16 (MXU operand dtype).
    x_p = jnp.zeros((T, B_pad, nIn), bf16).at[:, :B, :].set(x.astype(bf16))

    # Combined input-projection weights/biases for both directions.
    wih_cat = jnp.concatenate([params['wih_f'], params['wih_b']], axis=1).astype(bf16)   # (nIn, 8H)
    b_cat = jnp.concatenate([params['b_f'], params['b_b']], axis=1).astype(jnp.float32)  # (1, 8H)
    whh_f = params['whh_f'].astype(bf16)
    whh_b = params['whh_b'].astype(bf16)

    # Split + lane-pad the output projection (kills the concat, lane-dense stores).
    wlin = params['wlin']
    wlin_f = jnp.zeros((H, nOut_pad), bf16).at[:, :nOut].set(wlin[:H].astype(bf16))
    wlin_b = jnp.zeros((H, nOut_pad), bf16).at[:, :nOut].set(wlin[H:].astype(bf16))
    blin = jnp.zeros((1, nOut_pad), jnp.float32).at[:, :nOut].set(params['blin'])

    vmem_limit = int(min(max(_tile_vmem_bytes(T, batch_tile, nIn, H, nOut_pad) * 1.25,
                             16 * 1024 * 1024), 64 * 1024 * 1024))

    # NOTE: weight blocks have constant index_maps; single-buffering them
    # (pipeline_mode=pl.Buffered(1)) would free one weight copy of VMEM — only
    # worth it for very large nIn*8H, omitted here for portability.
    grid_spec = pltpu.PrefetchScalarGridSpec(
        num_scalar_prefetch=0,
        grid=(nbt,),
        in_specs=[
            pl.BlockSpec((T, batch_tile, nIn), lambda i: (0, i, 0)),   # x tile
            pl.BlockSpec(wih_cat.shape, lambda i: (0, 0)),
            pl.BlockSpec(b_cat.shape, lambda i: (0, 0)),
            pl.BlockSpec(whh_f.shape, lambda i: (0, 0)),
            pl.BlockSpec(whh_b.shape, lambda i: (0, 0)),
            pl.BlockSpec(wlin_f.shape, lambda i: (0, 0)),
            pl.BlockSpec(wlin_b.shape, lambda i: (0, 0)),
            pl.BlockSpec(blin.shape, lambda i: (0, 0)),
        ],
        out_specs=pl.BlockSpec((T, batch_tile, nOut_pad), lambda i: (0, i, 0)),
        scratch_shapes=[
            pltpu.VMEM((T, batch_tile, 4 * H), bf16),   # fwd gate pre-activations
            pltpu.VMEM((T, batch_tile, 4 * H), bf16),   # bwd gate pre-activations
            pltpu.VMEM((T, batch_tile, H), bf16),       # h forward per step
            pltpu.VMEM((T, batch_tile, H), bf16),       # h backward per step
        ],
    )

    out = pl.pallas_call(
        _bilstm_kernel,
        out_shape=jax.ShapeDtypeStruct((T, B_pad, nOut_pad), bf16),  # halve HBM writeback
        grid_spec=grid_spec,
        compiler_params=pltpu.CompilerParams(
            dimension_semantics=("parallel",),          # batch tiles shard across TCs (v7x)
            vmem_limit_bytes=vmem_limit),
    )(x_p, wih_cat, b_cat, whh_f, whh_b, wlin_f, wlin_b, blin)

    return out[:, :B, :nOut].astype(jnp.float32)


def bilstm_reference(x, p):
    """Pure-JAX f32 reference mirroring PyTorch LSTM + Linear semantics."""
    T, B, _ = x.shape
    H = p['whh_f'].shape[0]

    def run(wih, whh, b, xs):
        def step(carry, x_t):
            h, c = carry
            g = x_t @ wih + h @ whh + b[0]
            i = jax.nn.sigmoid(g[:, :H])
            f = jax.nn.sigmoid(g[:, H:2 * H])
            gg = jnp.tanh(g[:, 2 * H:3 * H])
            o = jax.nn.sigmoid(g[:, 3 * H:])
            c = f * c + i * gg
            h = o * jnp.tanh(c)
            return (h, c), h
        h0 = jnp.zeros((B, H), jnp.float32)
        c0 = jnp.zeros((B, H), jnp.float32)
        _, hs = lax.scan(step, (h0, c0), xs)
        return hs

    hf = run(p['wih_f'], p['whh_f'], p['b_f'], x)
    hb = run(p['wih_b'], p['whh_b'], p['b_b'], x[::-1])[::-1]
    rec = jnp.concatenate([hf, hb], axis=-1)
    return jnp.einsum('tbh,ho->tbo', rec, p['wlin']) + p['blin'][0]


def make_params(key, nIn, H, nOut):
    ks = jax.random.split(key, 9)
    k = 1.0 / np.sqrt(H)
    u = lambda kk, shape: jax.random.uniform(kk, shape, jnp.float32, -k, k)
    return {
        # Forward direction (stored pre-transposed: x @ W convention)
        'wih_f': u(ks[0], (nIn, 4 * H)),
        'whh_f': u(ks[1], (H, 4 * H)),
        'b_f':   u(ks[2], (1, 4 * H)),    # b_ih + b_hh combined
        # Backward direction
        'wih_b': u(ks[3], (nIn, 4 * H)),
        'whh_b': u(ks[4], (H, 4 * H)),
        'b_b':   u(ks[5], (1, 4 * H)),
        # Linear(2H, nOut)
        'wlin':  u(ks[6], (2 * H, nOut)),
        'blin':  u(ks[7], (1, nOut)),
    }


if __name__ == "__main__":
    T, B, nIn, H, nOut = 8, 2, 16, 32, 16
    key = jax.random.PRNGKey(0)
    kx, kp = jax.random.split(key)
    x = jax.random.normal(kx, (T, B, nIn), jnp.float32)
    params = make_params(kp, nIn, H, nOut)

    out = jax.block_until_ready(bilstm_forward(x, params))
    ref = jax.block_until_ready(bilstm_reference(x, params))

    assert out.shape == (T, B, nOut)
    # bf16 matmul operands, bf16 gate-preactivation scratch and bf16 output store
    # -> relaxed (and T-dependent) tolerance vs the f32 reference.
    np.testing.assert_allclose(np.asarray(out), np.asarray(ref),
                               rtol=3e-2, atol=3e-2)
    print("KERNEL_OK")
</pallas_src>

<mosaic_0001>
module attributes {stable_mosaic.version = 11 : i64} {
  func.func @_bilstm_kernel(%arg0: i32, %arg1: memref<8x16x16xbf16, #tpu.memory_space<vmem>>, %arg2: memref<16x256xbf16, #tpu.memory_space<vmem>>, %arg3: memref<1x256xf32, #tpu.memory_space<vmem>>, %arg4: memref<32x128xbf16, #tpu.memory_space<vmem>>, %arg5: memref<32x128xbf16, #tpu.memory_space<vmem>>, %arg6: memref<32x128xbf16, #tpu.memory_space<vmem>>, %arg7: memref<32x128xbf16, #tpu.memory_space<vmem>>, %arg8: memref<1x128xf32, #tpu.memory_space<vmem>>, %arg9: memref<8x16x128xbf16, #tpu.memory_space<vmem>>, %arg10: memref<8x16x128xbf16, #tpu.memory_space<vmem>>, %arg11: memref<8x16x128xbf16, #tpu.memory_space<vmem>>, %arg12: memref<8x16x32xbf16, #tpu.memory_space<vmem>>, %arg13: memref<8x16x32xbf16, #tpu.memory_space<vmem>>) attributes {dimension_semantics = [#tpu.dimension_semantics<parallel>], iteration_bounds = array<i64: 1>, scalar_prefetch = 0 : i64, scratch_operands = 4 : i64, tpu.core_type = #tpu.core_type<tc>, window_params = [{transform_indices = @transform_0, window_bounds = array<i64: 8, 16, 16>}, {pipeline_mode = #tpu.pipeline_mode<synchronous>, transform_indices = @transform_1, window_bounds = array<i64: 16, 256>}, {pipeline_mode = #tpu.pipeline_mode<synchronous>, transform_indices = @transform_2, window_bounds = array<i64: 1, 256>}, {pipeline_mode = #tpu.pipeline_mode<synchronous>, transform_indices = @transform_3, window_bounds = array<i64: 32, 128>}, {pipeline_mode = #tpu.pipeline_mode<synchronous>, transform_indices = @transform_4, window_bounds = array<i64: 32, 128>}, {pipeline_mode = #tpu.pipeline_mode<synchronous>, transform_indices = @transform_5, window_bounds = array<i64: 32, 128>}, {pipeline_mode = #tpu.pipeline_mode<synchronous>, transform_indices = @transform_6, window_bounds = array<i64: 32, 128>}, {pipeline_mode = #tpu.pipeline_mode<synchronous>, transform_indices = @transform_7, window_bounds = array<i64: 1, 128>}, {transform_indices = @transform_8, window_bounds = array<i64: 8, 16, 128>}]} {
    %c0 = arith.constant 0 : index
    %c0_0 = arith.constant 0 : index
    %c0_1 = arith.constant 0 : index
    %0 = vector.load %arg1[%c0, %c0_0, %c0_1] : memref<8x16x16xbf16, #tpu.memory_space<vmem>>, vector<8x16x16xbf16>
    %1 = vector.shape_cast %0 : vector<8x16x16xbf16> to vector<128x16xbf16>
    %c0_2 = arith.constant 0 : index
    %c0_3 = arith.constant 0 : index
    %2 = vector.load %arg2[%c0_2, %c0_3] : memref<16x256xbf16, #tpu.memory_space<vmem>>, vector<16x256xbf16>
    %cst = arith.constant dense<0.000000e+00> : vector<128x256xf32>
    %3 = tpu.matmul %1, %2, %cst {dimension_numbers = #tpu.dot_dimension_numbers<[1], [0], [0], [1], [0, 0, 1, 1], [], []>} : vector<128x16xbf16>, vector<16x256xbf16>, vector<128x256xf32> -> vector<128x256xf32>
    %c0_4 = arith.constant 0 : index
    %c0_5 = arith.constant 0 : index
    %4 = vector.load %arg3[%c0_4, %c0_5] : memref<1x256xf32, #tpu.memory_space<vmem>>, vector<1x256xf32>
    %5 = vector.broadcast %4 : vector<1x256xf32> to vector<128x256xf32>
    %6 = arith.addf %3, %5 : vector<128x256xf32>
    %7 = arith.truncf %6 : vector<128x256xf32> to vector<128x256xbf16>
    %8 = vector.extract_strided_slice %7 {offsets = [0, 0], sizes = [128, 128], strides = [1, 1]} : vector<128x256xbf16> to vector<128x128xbf16>
    %9 = vector.shape_cast %8 : vector<128x128xbf16> to vector<8x16x128xbf16>
    %c0_6 = arith.constant 0 : index
    %c0_7 = arith.constant 0 : index
    %c0_8 = arith.constant 0 : index
    %10 = vector.load %arg10[%c0_6, %c0_7, %c0_8] : memref<8x16x128xbf16, #tpu.memory_space<vmem>>, vector<8x16x128xbf16>
    tpu.vector_store %arg10[%c0_6, %c0_7, %c0_8], %9 {strides = array<i32>} : memref<8x16x128xbf16, #tpu.memory_space<vmem>>, vector<8x16x128xbf16>,
    %11 = vector.extract_strided_slice %7 {offsets = [0, 128], sizes = [128, 128], strides = [1, 1]} : vector<128x256xbf16> to vector<128x128xbf16>
    %12 = vector.shape_cast %11 : vector<128x128xbf16> to vector<8x16x128xbf16>
    %c0_9 = arith.constant 0 : index
    %c0_10 = arith.constant 0 : index
    %c0_11 = arith.constant 0 : index
    %13 = vector.load %arg11[%c0_9, %c0_10, %c0_11] : memref<8x16x128xbf16, #tpu.memory_space<vmem>>, vector<8x16x128xbf16>
    tpu.vector_store %arg11[%c0_9, %c0_10, %c0_11], %12 {strides = array<i32>} : memref<8x16x128xbf16, #tpu.memory_space<vmem>>, vector<8x16x128xbf16>,
    %c0_12 = arith.constant 0 : index
    %c0_13 = arith.constant 0 : index
    %14 = vector.load %arg4[%c0_12, %c0_13] : memref<32x128xbf16, #tpu.memory_space<vmem>>, vector<32x128xbf16>
    %c0_14 = arith.constant 0 : index
    %c0_15 = arith.constant 0 : index
    %15 = vector.load %arg5[%c0_14, %c0_15] : memref<32x128xbf16, #tpu.memory_space<vmem>>, vector<32x128xbf16>
    %cst_16 = arith.constant 0.000000e+00 : f32
    %16 = vector.broadcast %cst_16 : f32 to vector<16x32xf32>
    %cst_17 = arith.constant 0.000000e+00 : f32
    %17 = vector.broadcast %cst_17 : f32 to vector<16x32xf32>
    %c0_i32 = arith.constant 0 : i32
    %c7_i32 = arith.constant 7 : i32
    %18 = arith.subi %c7_i32, %c0_i32 : i32
    %19 = arith.index_cast %c0_i32 : i32 to index
    %c0_18 = arith.constant 0 : index
    %c0_19 = arith.constant 0 : index
    %20 = vector.load %arg10[%19, %c0_18, %c0_19] : memref<8x16x128xbf16, #tpu.memory_space<vmem>>, vector<1x16x128xbf16>
    %21 = vector.shape_cast %20 : vector<1x16x128xbf16> to vector<16x128xbf16>
    %22 = arith.extf %21 : vector<16x128xbf16> to vector<16x128xf32>
    %23 = arith.truncf %16 : vector<16x32xf32> to vector<16x32xbf16>
    %cst_20 = arith.constant dense<0.000000e+00> : vector<16x128xf32>
    %24 = tpu.matmul %23, %14, %cst_20 {dimension_numbers = #tpu.dot_dimension_numbers<[1], [0], [0], [1], [0, 0, 1, 1], [], []>} : vector<16x32xbf16>, vector<32x128xbf16>, vector<16x128xf32> -> vector<16x128xf32>
    %25 = arith.addf %22, %24 : vector<16x128xf32>
    %26 = arith.index_cast %18 : i32 to index
    %c0_21 = arith.constant 0 : index
    %c0_22 = arith.constant 0 : index
    %27 = vector.load %arg11[%26, %c0_21, %c0_22] : memref<8x16x128xbf16, #tpu.memory_space<vmem>>, vector<1x16x128xbf16>
    %28 = vector.shape_cast %27 : vector<1x16x128xbf16> to vector<16x128xbf16>
    %29 = arith.extf %28 : vector<16x128xbf16> to vector<16x128xf32>
    %30 = arith.truncf %16 : vector<16x32xf32> to vector<16x32xbf16>
    %cst_23 = arith.constant dense<0.000000e+00> : vector<16x128xf32>
    %31 = tpu.matmul %30, %15, %cst_23 {dimension_numbers = #tpu.dot_dimension_numbers<[1], [0], [0], [1], [0, 0, 1, 1], [], []>} : vector<16x32xbf16>, vector<32x128xbf16>, vector<16x128xf32> -> vector<16x128xf32>
    %32 = arith.addf %29, %31 : vector<16x128xf32>
    %33 = vector.extract_strided_slice %25 {offsets = [0, 0], sizes = [16, 32], strides = [1, 1]} : vector<16x128xf32> to vector<16x32xf32>
    %34 = arith.negf %33 : vector<16x32xf32>
    %35 = math.exp %34 : vector<16x32xf32>
    %cst_24 = arith.constant 1.000000e+00 : f32
    %36 = vector.broadcast %cst_24 : f32 to vector<16x32xf32>
    %37 = arith.addf %36, %35 : vector<16x32xf32>
    %38 = arith.divf %36, %37 : vector<16x32xf32>
    %39 = vector.extract_strided_slice %25 {offsets = [0, 32], sizes = [16, 32], strides = [1, 1]} : vector<16x128xf32> to vector<16x32xf32>
    %40 = arith.negf %39 : vector<16x32xf32>
    %41 = math.exp %40 : vector<16x32xf32>
    %cst_25 = arith.constant 1.000000e+00 : f32
    %42 = vector.broadcast %cst_25 : f32 to vector<16x32xf32>
    %43 = arith.addf %42, %41 : vector<16x32xf32>
    %44 = arith.divf %42, %43 : vector<16x32xf32>
    %45 = vector.extract_strided_slice %25 {offsets = [0, 64], sizes = [16, 32], strides = [1, 1]} : vector<16x128xf32> to vector<16x32xf32>
    %46 = math.tanh %45 : vector<16x32xf32>
    %47 = vector.extract_strided_slice %25 {offsets = [0, 96], sizes = [16, 32], strides = [1, 1]} : vector<16x128xf32> to vector<16x32xf32>
    %48 = arith.negf %47 : vector<16x32xf32>
    %49 = math.exp %48 : vector<16x32xf32>
    %cst_26 = arith.constant 1.000000e+00 : f32
    %50 = vector.broadcast %cst_26 : f32 to vector<16x32xf32>
    %51 = arith.addf %50, %49 : vector<16x32xf32>
    %52 = arith.divf %50, %51 : vector<16x32xf32>
    %53 = arith.mulf %44, %17 : vector<16x32xf32>
    %54 = arith.mulf %38, %46 : vector<16x32xf32>
    %55 = arith.addf %53, %54 : vector<16x32xf32>
    %56 = math.tanh %55 : vector<16x32xf32>
    %57 = arith.mulf %52, %56 : vector<16x32xf32>
    %58 = vector.extract_strided_slice %32 {offsets = [0, 0], sizes = [16, 32], strides = [1, 1]} : vector<16x128xf32> to vector<16x32xf32>
    %59 = arith.negf %58 : vector<16x32xf32>
    %60 = math.exp %59 : vector<16x32xf32>
    %cst_27 = arith.constant 1.000000e+00 : f32
    %61 = vector.broadcast %cst_27 : f32 to vector<16x32xf32>
    %62 = arith.addf %61, %60 : vector<16x32xf32>
    %63 = arith.divf %61, %62 : vector<16x32xf32>
    %64 = vector.extract_strided_slice %32 {offsets = [0, 32], sizes = [16, 32], strides = [1, 1]} : vector<16x128xf32> to vector<16x32xf32>
    %65 = arith.negf %64 : vector<16x32xf32>
    %66 = math.exp %65 : vector<16x32xf32>
    %cst_28 = arith.constant 1.000000e+00 : f32
    %67 = vector.broadcast %cst_28 : f32 to vector<16x32xf32>
    %68 = arith.addf %67, %66 : vector<16x32xf32>
    %69 = arith.divf %67, %68 : vector<16x32xf32>
    %70 = vector.extract_strided_slice %32 {offsets = [0, 64], sizes = [16, 32], strides = [1, 1]} : vector<16x128xf32> to vector<16x32xf32>
    %71 = math.tanh %70 : vector<16x32xf32>
    %72 = vector.extract_strided_slice %32 {offsets = [0, 96], sizes = [16, 32], strides = [1, 1]} : vector<16x128xf32> to vector<16x32xf32>
    %73 = arith.negf %72 : vector<16x32xf32>
    %74 = math.exp %73 : vector<16x32xf32>
    %cst_29 = arith.constant 1.000000e+00 : f32
    %75 = vector.broadcast %cst_29 : f32 to vector<16x32xf32>
    %76 = arith.addf %75, %74 : vector<16x32xf32>
    %77 = arith.divf %75, %76 : vector<16x32xf32>
    %78 = arith.mulf %69, %17 : vector<16x32xf32>
    %79 = arith.mulf %63, %71 : vector<16x32xf32>
    %80 = arith.addf %78, %79 : vector<16x32xf32>
    %81 = math.tanh %80 : vector<16x32xf32>
    %82 = arith.mulf %77, %81 : vector<16x32xf32>
    %83 = arith.truncf %57 : vector<16x32xf32> to vector<16x32xbf16>
    %84 = arith.index_cast %c0_i32 : i32 to index
    %c0_30 = arith.constant 0 : index
    %c0_31 = arith.constant 0 : index
    %85 = vector.load %arg12[%84, %c0_30, %c0_31] : memref<8x16x32xbf16, #tpu.memory_space<vmem>>, vector<1x16x32xbf16>
    %86 = vector.shape_cast %85 : vector<1x16x32xbf16> to vector<16x32xbf16>
    %87 = vector.shape_cast %83 : vector<16x32xbf16> to vector<1x16x32xbf16>
    tpu.vector_store %arg12[%84, %c0_30, %c0_31], %87 {strides = array<i32>} : memref<8x16x32xbf16, #tpu.memory_space<vmem>>, vector<1x16x32xbf16>,
    %88 = arith.truncf %82 : vector<16x32xf32> to vector<16x32xbf16>
    %89 = arith.index_cast %18 : i32 to index
    %c0_32 = arith.constant 0 : index
    %c0_33 = arith.constant 0 : index
    %90 = vector.load %arg13[%89, %c0_32, %c0_33] : memref<8x16x32xbf16, #tpu.memory_space<vmem>>, vector<1x16x32xbf16>
    %91 = vector.shape_cast %90 : vector<1x16x32xbf16> to vector<16x32xbf16>
    %92 = vector.shape_cast %88 : vector<16x32xbf16> to vector<1x16x32xbf16>
    tpu.vector_store %arg13[%89, %c0_32, %c0_33], %92 {strides = array<i32>} : memref<8x16x32xbf16, #tpu.memory_space<vmem>>, vector<1x16x32xbf16>,
    %c1_i32 = arith.constant 1 : i32
    %c7_i32_34 = arith.constant 7 : i32
    %93 = arith.subi %c7_i32_34, %c1_i32 : i32
    %94 = arith.index_cast %c1_i32 : i32 to index
    %c0_35 = arith.constant 0 : index
    %c0_36 = arith.constant 0 : index
    %95 = vector.load %arg10[%94, %c0_35, %c0_36] : memref<8x16x128xbf16, #tpu.memory_space<vmem>>, vector<1x16x128xbf16>
    %96 = vector.shape_cast %95 : vector<1x16x128xbf16> to vector<16x128xbf16>
    %97 = arith.extf %96 : vector<16x128xbf16> to vector<16x128xf32>
    %98 = arith.truncf %57 : vector<16x32xf32> to vector<16x32xbf16>
    %cst_37 = arith.constant dense<0.000000e+00> : vector<16x128xf32>
    %99 = tpu.matmul %98, %14, %cst_37 {dimension_numbers = #tpu.dot_dimension_numbers<[1], [0], [0], [1], [0, 0, 1, 1], [], []>} : vector<16x32xbf16>, vector<32x128xbf16>, vector<16x128xf32> -> vector<16x128xf32>
    %100 = arith.addf %97, %99 : vector<16x128xf32>
    %101 = arith.index_cast %93 : i32 to index
    %c0_38 = arith.constant 0 : index
    %c0_39 = arith.constant 0 : index
    %102 = vector.load %arg11[%101, %c0_38, %c0_39] : memref<8x16x128xbf16, #tpu.memory_space<vmem>>, vector<1x16x128xbf16>
    %103 = vector.shape_cast %102 : vector<1x16x128xbf16> to vector<16x128xbf16>
    %104 = arith.extf %103 : vector<16x128xbf16> to vector<16x128xf32>
    %105 = arith.truncf %82 : vector<16x32xf32> to vector<16x32xbf16>
    %cst_40 = arith.constant dense<0.000000e+00> : vector<16x128xf32>
    %106 = tpu.matmul %105, %15, %cst_40 {dimension_numbers = #tpu.dot_dimension_numbers<[1], [0], [0], [1], [0, 0, 1, 1], [], []>} : vector<16x32xbf16>, vector<32x128xbf16>, vector<16x128xf32> -> vector<16x128xf32>
    %107 = arith.addf %104, %106 : vector<16x128xf32>
    %108 = vector.extract_strided_slice %100 {offsets = [0, 0], sizes = [16, 32], strides = [1, 1]} : vector<16x128xf32> to vector<16x32xf32>
    %109 = arith.negf %108 : vector<16x32xf32>
    %110 = math.exp %109 : vector<16x32xf32>
    %cst_41 = arith.constant 1.000000e+00 : f32
    %111 = vector.broadcast %cst_41 : f32 to vector<16x32xf32>
    %112 = arith.addf %111, %110 : vector<16x32xf32>
    %113 = arith.divf %111, %112 : vector<16x32xf32>
    %114 = vector.extract_strided_slice %100 {offsets = [0, 32], sizes = [16, 32], strides = [1, 1]} : vector<16x128xf32> to vector<16x32xf32>
    %115 = arith.negf %114 : vector<16x32xf32>
    %116 = math.exp %115 : vector<16x32xf32>
    %cst_42 = arith.constant 1.000000e+00 : f32
    %117 = vector.broadcast %cst_42 : f32 to vector<16x32xf32>
    %118 = arith.addf %117, %116 : vector<16x32xf32>
    %119 = arith.divf %117, %118 : vector<16x32xf32>
    %120 = vector.extract_strided_slice %100 {offsets = [0, 64], sizes = [16, 32], strides = [1, 1]} : vector<16x128xf32> to vector<16x32xf32>
    %121 = math.tanh %120 : vector<16x32xf32>
    %122 = vector.extract_strided_slice %100 {offsets = [0, 96], sizes = [16, 32], strides = [1, 1]} : vector<16x128xf32> to vector<16x32xf32>
    %123 = arith.negf %122 : vector<16x32xf32>
    %124 = math.exp %123 : vector<16x32xf32>
    %cst_43 = arith.constant 1.000000e+00 : f32
    %125 = vector.broadcast %cst_43 : f32 to vector<16x32xf32>
    %126 = arith.addf %125, %124 : vector<16x32xf32>
    %127 = arith.divf %125, %126 : vector<16x32xf32>
    %128 = arith.mulf %119, %55 : vector<16x32xf32>
    %129 = arith.mulf %113, %121 : vector<16x32xf32>
    %130 = arith.addf %128, %129 : vector<16x32xf32>
    %131 = math.tanh %130 : vector<16x32xf32>
    %132 = arith.mulf %127, %131 : vector<16x32xf32>
    %133 = vector.extract_strided_slice %107 {offsets = [0, 0], sizes = [16, 32], strides = [1, 1]} : vector<16x128xf32> to vector<16x32xf32>
    %134 = arith.negf %133 : vector<16x32xf32>
    %135 = math.exp %134 : vector<16x32xf32>
    %cst_44 = arith.constant 1.000000e+00 : f32
    %136 = vector.broadcast %cst_44 : f32 to vector<16x32xf32>
    %137 = arith.addf %136, %135 : vector<16x32xf32>
    %138 = arith.divf %136, %137 : vector<16x32xf32>
    %139 = vector.extract_strided_slice %107 {offsets = [0, 32], sizes = [16, 32], strides = [1, 1]} : vector<16x128xf32> to vector<16x32xf32>
    %140 = arith.negf %139 : vector<16x32xf32>
    %141 = math.exp %140 : vector<16x32xf32>
    %cst_45 = arith.constant 1.000000e+00 : f32
    %142 = vector.broadcast %cst_45 : f32 to vector<16x32xf32>
    %143 = arith.addf %142, %141 : vector<16x32xf32>
    %144 = arith.divf %142, %143 : vector<16x32xf32>
    %145 = vector.extract_strided_slice %107 {offsets = [0, 64], sizes = [16, 32], strides = [1, 1]} : vector<16x128xf32> to vector<16x32xf32>
    %146 = math.tanh %145 : vector<16x32xf32>
    %147 = vector.extract_strided_slice %107 {offsets = [0, 96], sizes = [16, 32], strides = [1, 1]} : vector<16x128xf32> to vector<16x32xf32>
    %148 = arith.negf %147 : vector<16x32xf32>
    %149 = math.exp %148 : vector<16x32xf32>
    %cst_46 = arith.constant 1.000000e+00 : f32
    %150 = vector.broadcast %cst_46 : f32 to vector<16x32xf32>
    %151 = arith.addf %150, %149 : vector<16x32xf32>
    %152 = arith.divf %150, %151 : vector<16x32xf32>
    %153 = arith.mulf %144, %80 : vector<16x32xf32>
    %154 = arith.mulf %138, %146 : vector<16x32xf32>
    %155 = arith.addf %153, %154 : vector<16x32xf32>
    %156 = math.tanh %155 : vector<16x32xf32>
    %157 = arith.mulf %152, %156 : vector<16x32xf32>
    %158 = arith.truncf %132 : vector<16x32xf32> to vector<16x32xbf16>
    %159 = arith.index_cast %c1_i32 : i32 to index
    %c0_47 = arith.constant 0 : index
    %c0_48 = arith.constant 0 : index
    %160 = vector.load %arg12[%159, %c0_47, %c0_48] : memref<8x16x32xbf16, #tpu.memory_space<vmem>>, vector<1x16x32xbf16>
    %161 = vector.shape_cast %160 : vector<1x16x32xbf16> to vector<16x32xbf16>
    %162 = vector.shape_cast %158 : vector<16x32xbf16> to vector<1x16x32xbf16>
    tpu.vector_store %arg12[%159, %c0_47, %c0_48], %162 {strides = array<i32>} : memref<8x16x32xbf16, #tpu.memory_space<vmem>>, vector<1x16x32xbf16>,
    %163 = arith.truncf %157 : vector<16x32xf32> to vector<16x32xbf16>
    %164 = arith.index_cast %93 : i32 to index
    %c0_49 = arith.constant 0 : index
    %c0_50 = arith.constant 0 : index
    %165 = vector.load %arg13[%164, %c0_49, %c0_50] : memref<8x16x32xbf16, #tpu.memory_space<vmem>>, vector<1x16x32xbf16>
    %166 = vector.shape_cast %165 : vector<1x16x32xbf16> to vector<16x32xbf16>
    %167 = vector.shape_cast %163 : vector<16x32xbf16> to vector<1x16x32xbf16>
    tpu.vector_store %arg13[%164, %c0_49, %c0_50], %167 {strides = array<i32>} : memref<8x16x32xbf16, #tpu.memory_space<vmem>>, vector<1x16x32xbf16>,
    %c2_i32 = arith.constant 2 : i32
    %c7_i32_51 = arith.constant 7 : i32
    %168 = arith.subi %c7_i32_51, %c2_i32 : i32
    %169 = arith.index_cast %c2_i32 : i32 to index
    %c0_52 = arith.constant 0 : index
    %c0_53 = arith.constant 0 : index
    %170 = vector.load %arg10[%169, %c0_52, %c0_53] : memref<8x16x128xbf16, #tpu.memory_space<vmem>>, vector<1x16x128xbf16>
    %171 = vector.shape_cast %170 : vector<1x16x128xbf16> to vector<16x128xbf16>
    %172 = arith.extf %171 : vector<16x128xbf16> to vector<16x128xf32>
    %173 = arith.truncf %132 : vector<16x32xf32> to vector<16x32xbf16>
    %cst_54 = arith.constant dense<0.000000e+00> : vector<16x128xf32>
    %174 = tpu.matmul %173, %14, %cst_54 {dimension_numbers = #tpu.dot_dimension_numbers<[1], [0], [0], [1], [0, 0, 1, 1], [], []>} : vector<16x32xbf16>, vector<32x128xbf16>, vector<16x128xf32> -> vector<16x128xf32>
    %175 = arith.addf %172, %174 : vector<16x128xf32>
    %176 = arith.index_cast %168 : i32 to index
    %c0_55 = arith.constant 0 : index
    %c0_56 = arith.constant 0 : index
    %177 = vector.load %arg11[%176, %c0_55, %c0_56] : memref<8x16x128xbf16, #tpu.memory_space<vmem>>, vector<1x16x128xbf16>
    %178 = vector.shape_cast %177 : vector<1x16x128xbf16> to vector<16x128xbf16>
    %179 = arith.extf %178 : vector<16x128xbf16> to vector<16x128xf32>
    %180 = arith.truncf %157 : vector<16x32xf32> to vector<16x32xbf16>
    %cst_57 = arith.constant dense<0.000000e+00> : vector<16x128xf32>
    %181 = tpu.matmul %180, %15, %cst_57 {dimension_numbers = #tpu.dot_dimension_numbers<[1], [0], [0], [1], [0, 0, 1, 1], [], []>} : vector<16x32xbf16>, vector<32x128xbf16>, vector<16x128xf32> -> vector<16x128xf32>
    %182 = arith.addf %179, %181 : vector<16x128xf32>
    %183 = vector.extract_strided_slice %175 {offsets = [0, 0], sizes = [16, 32], strides = [1, 1]} : vector<16x128xf32> to vector<16x32xf32>
    %184 = arith.negf %183 : vector<16x32xf32>
    %185 = math.exp %184 : vector<16x32xf32>
    %cst_58 = arith.constant 1.000000e+00 : f32
    %186 = vector.broadcast %cst_58 : f32 to vector<16x32xf32>
    %187 = arith.addf %186, %185 : vector<16x32xf32>
    %188 = arith.divf %186, %187 : vector<16x32xf32>
    %189 = vector.extract_strided_slice %175 {offsets = [0, 32], sizes = [16, 32], strides = [1, 1]} : vector<16x128xf32> to vector<16x32xf32>
    %190 = arith.negf %189 : vector<16x32xf32>
    %191 = math.exp %190 : vector<16x32xf32>
    %cst_59 = arith.constant 1.000000e+00 : f32
    %192 = vector.broadcast %cst_59 : f32 to vector<16x32xf32>
    %193 = arith.addf %192, %191 : vector<16x32xf32>
    %194 = arith.divf %192, %193 : vector<16x32xf32>
    %195 = vector.extract_strided_slice %175 {offsets = [0, 64], sizes = [16, 32], strides = [1, 1]} : vector<16x128xf32> to vector<16x32xf32>
    %196 = math.tanh %195 : vector<16x32xf32>
    %197 = vector.extract_strided_slice %175 {offsets = [0, 96], sizes = [16, 32], strides = [1, 1]} : vector<16x128xf32> to vector<16x32xf32>
    %198 = arith.negf %197 : vector<16x32xf32>
    %199 = math.exp %198 : vector<16x32xf32>
    %cst_60 = arith.constant 1.000000e+00 : f32
    %200 = vector.broadcast %cst_60 : f32 to vector<16x32xf32>
    %201 = arith.addf %200, %199 : vector<16x32xf32>
    %202 = arith.divf %200, %201 : vector<16x32xf32>
    %203 = arith.mulf %194, %130 : vector<16x32xf32>
    %204 = arith.mulf %188, %196 : vector<16x32xf32>
    %205 = arith.addf %203, %204 : vector<16x32xf32>
    %206 = math.tanh %205 : vector<16x32xf32>
    %207 = arith.mulf %202, %206 : vector<16x32xf32>
    %208 = vector.extract_strided_slice %182 {offsets = [0, 0], sizes = [16, 32], strides = [1, 1]} : vector<16x128xf32> to vector<16x32xf32>
    %209 = arith.negf %208 : vector<16x32xf32>
    %210 = math.exp %209 : vector<16x32xf32>
    %cst_61 = arith.constant 1.000000e+00 : f32
    %211 = vector.broadcast %cst_61 : f32 to vector<16x32xf32>
    %212 = arith.addf %211, %210 : vector<16x32xf32>
    %213 = arith.divf %211, %212 : vector<16x32xf32>
    %214 = vector.extract_strided_slice %182 {offsets = [0, 32], sizes = [16, 32], strides = [1, 1]} : vector<16x128xf32> to vector<16x32xf32>
    %215 = arith.negf %214 : vector<16x32xf32>
    %216 = math.exp %215 : vector<16x32xf32>
    %cst_62 = arith.constant 1.000000e+00 : f32
    %217 = vector.broadcast %cst_62 : f32 to vector<16x32xf32>
    %218 = arith.addf %217, %216 : vector<16x32xf32>
    %219 = arith.divf %217, %218 : vector<16x32xf32>
    %220 = vector.extract_strided_slice %182 {offsets = [0, 64], sizes = [16, 32], strides = [1, 1]} : vector<16x128xf32> to vector<16x32xf32>
    %221 = math.tanh %220 : vector<16x32xf32>
    %222 = vector.extract_strided_slice %182 {offsets = [0, 96], sizes = [16, 32], strides = [1, 1]} : vector<16x128xf32> to vector<16x32xf32>
    %223 = arith.negf %222 : vector<16x32xf32>
    %224 = math.exp %223 : vector<16x32xf32>
    %cst_63 = arith.constant 1.000000e+00 : f32
    %225 = vector.broadcast %cst_63 : f32 to vector<16x32xf32>
    %226 = arith.addf %225, %224 : vector<16x32xf32>
    %227 = arith.divf %225, %226 : vector<16x32xf32>
    %228 = arith.mulf %219, %155 : vector<16x32xf32>
    %229 = arith.mulf %213, %221 : vector<16x32xf32>
    %230 = arith.addf %228, %229 : vector<16x32xf32>
    %231 = math.tanh %230 : vector<16x32xf32>
    %232 = arith.mulf %227, %231 : vector<16x32xf32>
    %233 = arith.truncf %207 : vector<16x32xf32> to vector<16x32xbf16>
    %234 = arith.index_cast %c2_i32 : i32 to index
    %c0_64 = arith.constant 0 : index
    %c0_65 = arith.constant 0 : index
    %235 = vector.load %arg12[%234, %c0_64, %c0_65] : memref<8x16x32xbf16, #tpu.memory_space<vmem>>, vector<1x16x32xbf16>
    %236 = vector.shape_cast %235 : vector<1x16x32xbf16> to vector<16x32xbf16>
    %237 = vector.shape_cast %233 : vector<16x32xbf16> to vector<1x16x32xbf16>
    tpu.vector_store %arg12[%234, %c0_64, %c0_65], %237 {strides = array<i32>} : memref<8x16x32xbf16, #tpu.memory_space<vmem>>, vector<1x16x32xbf16>,
    %238 = arith.truncf %232 : vector<16x32xf32> to vector<16x32xbf16>
    %239 = arith.index_cast %168 : i32 to index
    %c0_66 = arith.constant 0 : index
    %c0_67 = arith.constant 0 : index
    %240 = vector.load %arg13[%239, %c0_66, %c0_67] : memref<8x16x32xbf16, #tpu.memory_space<vmem>>, vector<1x16x32xbf16>
    %241 = vector.shape_cast %240 : vector<1x16x32xbf16> to vector<16x32xbf16>
    %242 = vector.shape_cast %238 : vector<16x32xbf16> to vector<1x16x32xbf16>
    tpu.vector_store %arg13[%239, %c0_66, %c0_67], %242 {strides = array<i32>} : memref<8x16x32xbf16, #tpu.memory_space<vmem>>, vector<1x16x32xbf16>,
    %c3_i32 = arith.constant 3 : i32
    %c7_i32_68 = arith.constant 7 : i32
    %243 = arith.subi %c7_i32_68, %c3_i32 : i32
    %244 = arith.index_cast %c3_i32 : i32 to index
    %c0_69 = arith.constant 0 : index
    %c0_70 = arith.constant 0 : index
    %245 = vector.load %arg10[%244, %c0_69, %c0_70] : memref<8x16x128xbf16, #tpu.memory_space<vmem>>, vector<1x16x128xbf16>
    %246 = vector.shape_cast %245 : vector<1x16x128xbf16> to vector<16x128xbf16>
    %247 = arith.extf %246 : vector<16x128xbf16> to vector<16x128xf32>
    %248 = arith.truncf %207 : vector<16x32xf32> to vector<16x32xbf16>
    %cst_71 = arith.constant dense<0.000000e+00> : vector<16x128xf32>
    %249 = tpu.matmul %248, %14, %cst_71 {dimension_numbers = #tpu.dot_dimension_numbers<[1], [0], [0], [1], [0, 0, 1, 1], [], []>} : vector<16x32xbf16>, vector<32x128xbf16>, vector<16x128xf32> -> vector<16x128xf32>
    %250 = arith.addf %247, %249 : vector<16x128xf32>
    %251 = arith.index_cast %243 : i32 to index
    %c0_72 = arith.constant 0 : index
    %c0_73 = arith.constant 0 : index
    %252 = vector.load %arg11[%251, %c0_72, %c0_73] : memref<8x16x128xbf16, #tpu.memory_space<vmem>>, vector<1x16x128xbf16>
    %253 = vector.shape_cast %252 : vector<1x16x128xbf16> to vector<16x128xbf16>
    %254 = arith.extf %253 : vector<16x128xbf16> to vector<16x128xf32>
    %255 = arith.truncf %232 : vector<16x32xf32> to vector<16x32xbf16>
    %cst_74 = arith.constant dense<0.000000e+00> : vector<16x128xf32>
    %256 = tpu.matmul %255, %15, %cst_74 {dimension_numbers = #tpu.dot_dimension_numbers<[1], [0], [0], [1], [0, 0, 1, 1], [], []>} : vector<16x32xbf16>, vector<32x128xbf16>, vector<16x128xf32> -> vector<16x128xf32>
    %257 = arith.addf %254, %256 : vector<16x128xf32>
    %258 = vector.extract_strided_slice %250 {offsets = [0, 0], sizes = [16, 32], strides = [1, 1]} : vector<16x128xf32> to vector<16x32xf32>
    %259 = arith.negf %258 : vector<16x32xf32>
    %260 = math.exp %259 : vector<16x32xf32>
    %cst_75 = arith.constant 1.000000e+00 : f32
    %261 = vector.broadcast %cst_75 : f32 to vector<16x32xf32>
    %262 = arith.addf %261, %260 : vector<16x32xf32>
    %263 = arith.divf %261, %262 : vector<16x32xf32>
    %264 = vector.extract_strided_slice %250 {offsets = [0, 32], sizes = [16, 32], strides = [1, 1]} : vector<16x128xf32> to vector<16x32xf32>
    %265 = arith.negf %264 : vector<16x32xf32>
    %266 = math.exp %265 : vector<16x32xf32>
    %cst_76 = arith.constant 1.000000e+00 : f32
    %267 = vector.broadcast %cst_76 : f32 to vector<16x32xf32>
    %268 = arith.addf %267, %266 : vector<16x32xf32>
    %269 = arith.divf %267, %268 : vector<16x32xf32>
    %270 = vector.extract_strided_slice %250 {offsets = [0, 64], sizes = [16, 32], strides = [1, 1]} : vector<16x128xf32> to vector<16x32xf32>
    %271 = math.tanh %270 : vector<16x32xf32>
    %272 = vector.extract_strided_slice %250 {offsets = [0, 96], sizes = [16, 32], strides = [1, 1]} : vector<16x128xf32> to vector<16x32xf32>
    %273 = arith.negf %272 : vector<16x32xf32>
    %274 = math.exp %273 : vector<16x32xf32>
    %cst_77 = arith.constant 1.000000e+00 : f32
    %275 = vector.broadcast %cst_77 : f32 to vector<16x32xf32>
    %276 = arith.addf %275, %274 : vector<16x32xf32>
    %277 = arith.divf %275, %276 : vector<16x32xf32>
    %278 = arith.mulf %269, %205 : vector<16x32xf32>
    %279 = arith.mulf %263, %271 : vector<16x32xf32>
    %280 = arith.addf %278, %279 : vector<16x32xf32>
    %281 = math.tanh %280 : vector<16x32xf32>
    %282 = arith.mulf %277, %281 : vector<16x32xf32>
    %283 = vector.extract_strided_slice %257 {offsets = [0, 0], sizes = [16, 32], strides = [1, 1]} : vector<16x128xf32> to vector<16x32xf32>
    %284 = arith.negf %283 : vector<16x32xf32>
    %285 = math.exp %284 : vector<16x32xf32>
    %cst_78 = arith.constant 1.000000e+00 : f32
    %286 = vector.broadcast %cst_78 : f32 to vector<16x32xf32>
    %287 = arith.addf %286, %285 : vector<16x32xf32>
    %288 = arith.divf %286, %287 : vector<16x32xf32>
    %289 = vector.extract_strided_slice %257 {offsets = [0, 32], sizes = [16, 32], strides = [1, 1]} : vector<16x128xf32> to vector<16x32xf32>
    %290 = arith.negf %289 : vector<16x32xf32>
    %291 = math.exp %290 : vector<16x32xf32>
    %cst_79 = arith.constant 1.000000e+00 : f32
    %292 = vector.broadcast %cst_79 : f32 to vector<16x32xf32>
    %293 = arith.addf %292, %291 : vector<16x32xf32>
    %294 = arith.divf %292, %293 : vector<16x32xf32>
    %295 = vector.extract_strided_slice %257 {offsets = [0, 64], sizes = [16, 32], strides = [1, 1]} : vector<16x128xf32> to vector<16x32xf32>
    %296 = math.tanh %295 : vector<16x32xf32>
    %297 = vector.extract_strided_slice %257 {offsets = [0, 96], sizes = [16, 32], strides = [1, 1]} : vector<16x128xf32> to vector<16x32xf32>
    %298 = arith.negf %297 : vector<16x32xf32>
    %299 = math.exp %298 : vector<16x32xf32>
    %cst_80 = arith.constant 1.000000e+00 : f32
    %300 = vector.broadcast %cst_80 : f32 to vector<16x32xf32>
    %301 = arith.addf %300, %299 : vector<16x32xf32>
    %302 = arith.divf %300, %301 : vector<16x32xf32>
    %303 = arith.mulf %294, %230 : vector<16x32xf32>
    %304 = arith.mulf %288, %296 : vector<16x32xf32>
    %305 = arith.addf %303, %304 : vector<16x32xf32>
    %306 = math.tanh %305 : vector<16x32xf32>
    %307 = arith.mulf %302, %306 : vector<16x32xf32>
    %308 = arith.truncf %282 : vector<16x32xf32> to vector<16x32xbf16>
    %309 = arith.index_cast %c3_i32 : i32 to index
    %c0_81 = arith.constant 0 : index
    %c0_82 = arith.constant 0 : index
    %310 = vector.load %arg12[%309, %c0_81, %c0_82] : memref<8x16x32xbf16, #tpu.memory_space<vmem>>, vector<1x16x32xbf16>
    %311 = vector.shape_cast %310 : vector<1x16x32xbf16> to vector<16x32xbf16>
    %312 = vector.shape_cast %308 : vector<16x32xbf16> to vector<1x16x32xbf16>
    tpu.vector_store %arg12[%309, %c0_81, %c0_82], %312 {strides = array<i32>} : memref<8x16x32xbf16, #tpu.memory_space<vmem>>, vector<1x16x32xbf16>,
    %313 = arith.truncf %307 : vector<16x32xf32> to vector<16x32xbf16>
    %314 = arith.index_cast %243 : i32 to index
    %c0_83 = arith.constant 0 : index
    %c0_84 = arith.constant 0 : index
    %315 = vector.load %arg13[%314, %c0_83, %c0_84] : memref<8x16x32xbf16, #tpu.memory_space<vmem>>, vector<1x16x32xbf16>
    %316 = vector.shape_cast %315 : vector<1x16x32xbf16> to vector<16x32xbf16>
    %317 = vector.shape_cast %313 : vector<16x32xbf16> to vector<1x16x32xbf16>
    tpu.vector_store %arg13[%314, %c0_83, %c0_84], %317 {strides = array<i32>} : memref<8x16x32xbf16, #tpu.memory_space<vmem>>, vector<1x16x32xbf16>,
    %c4_i32 = arith.constant 4 : i32
    %c7_i32_85 = arith.constant 7 : i32
    %318 = arith.subi %c7_i32_85, %c4_i32 : i32
    %319 = arith.index_cast %c4_i32 : i32 to index
    %c0_86 = arith.constant 0 : index
    %c0_87 = arith.constant 0 : index
    %320 = vector.load %arg10[%319, %c0_86, %c0_87] : memref<8x16x128xbf16, #tpu.memory_space<vmem>>, vector<1x16x128xbf16>
    %321 = vector.shape_cast %320 : vector<1x16x128xbf16> to vector<16x128xbf16>
    %322 = arith.extf %321 : vector<16x128xbf16> to vector<16x128xf32>
    %323 = arith.truncf %282 : vector<16x32xf32> to vector<16x32xbf16>
    %cst_88 = arith.constant dense<0.000000e+00> : vector<16x128xf32>
    %324 = tpu.matmul %323, %14, %cst_88 {dimension_numbers = #tpu.dot_dimension_numbers<[1], [0], [0], [1], [0, 0, 1, 1], [], []>} : vector<16x32xbf16>, vector<32x128xbf16>, vector<16x128xf32> -> vector<16x128xf32>
    %325 = arith.addf %322, %324 : vector<16x128xf32>
    %326 = arith.index_cast %318 : i32 to index
    %c0_89 = arith.constant 0 : index
    %c0_90 = arith.constant 0 : index
    %327 = vector.load %arg11[%326, %c0_89, %c0_90] : memref<8x16x128xbf16, #tpu.memory_space<vmem>>, vector<1x16x128xbf16>
    %328 = vector.shape_cast %327 : vector<1x16x128xbf16> to vector<16x128xbf16>
    %329 = arith.extf %328 : vector<16x128xbf16> to vector<16x128xf32>
    %330 = arith.truncf %307 : vector<16x32xf32> to vector<16x32xbf16>
    %cst_91 = arith.constant dense<0.000000e+00> : vector<16x128xf32>
    %331 = tpu.matmul %330, %15, %cst_91 {dimension_numbers = #tpu.dot_dimension_numbers<[1], [0], [0], [1], [0, 0, 1, 1], [], []>} : vector<16x32xbf16>, vector<32x128xbf16>, vector<16x128xf32> -> vector<16x128xf32>
    %332 = arith.addf %329, %331 : vector<16x128xf32>
    %333 = vector.extract_strided_slice %325 {offsets = [0, 0], sizes = [16, 32], strides = [1, 1]} : vector<16x128xf32> to vector<16x32xf32>
    %334 = arith.negf %333 : vector<16x32xf32>
    %335 = math.exp %334 : vector<16x32xf32>
    %cst_92 = arith.constant 1.000000e+00 : f32
    %336 = vector.broadcast %cst_92 : f32 to vector<16x32xf32>
    %337 = arith.addf %336, %335 : vector<16x32xf32>
    %338 = arith.divf %336, %337 : vector<16x32xf32>
    %339 = vector.extract_strided_slice %325 {offsets = [0, 32], sizes = [16, 32], strides = [1, 1]} : vector<16x128xf32> to vector<16x32xf32>
    %340 = arith.negf %339 : vector<16x32xf32>
    %341 = math.exp %340 : vector<16x32xf32>
    %cst_93 = arith.constant 1.000000e+00 : f32
    %342 = vector.broadcast %cst_93 : f32 to vector<16x32xf32>
    %343 = arith.addf %342, %341 : vector<16x32xf32>
    %344 = arith.divf %342, %343 : vector<16x32xf32>
    %345 = vector.extract_strided_slice %325 {offsets = [0, 64], sizes = [16, 32], strides = [1, 1]} : vector<16x128xf32> to vector<16x32xf32>
    %346 = math.tanh %345 : vector<16x32xf32>
    %347 = vector.extract_strided_slice %325 {offsets = [0, 96], sizes = [16, 32], strides = [1, 1]} : vector<16x128xf32> to vector<16x32xf32>
    %348 = arith.negf %347 : vector<16x32xf32>
    %349 = math.exp %348 : vector<16x32xf32>
    %cst_94 = arith.constant 1.000000e+00 : f32
    %350 = vector.broadcast %cst_94 : f32 to vector<16x32xf32>
    %351 = arith.addf %350, %349 : vector<16x32xf32>
    %352 = arith.divf %350, %351 : vector<16x32xf32>
    %353 = arith.mulf %344, %280 : vector<16x32xf32>
    %354 = arith.mulf %338, %346 : vector<16x32xf32>
    %355 = arith.addf %353, %354 : vector<16x32xf32>
    %356 = math.tanh %355 : vector<16x32xf32>
    %357 = arith.mulf %352, %356 : vector<16x32xf32>
    %358 = vector.extract_strided_slice %332 {offsets = [0, 0], sizes = [16, 32], strides = [1, 1]} : vector<16x128xf32> to vector<16x32xf32>
    %359 = arith.negf %358 : vector<16x32xf32>
    %360 = math.exp %359 : vector<16x32xf32>
    %cst_95 = arith.constant 1.000000e+00 : f32
    %361 = vector.broadcast %cst_95 : f32 to vector<16x32xf32>
    %362 = arith.addf %361, %360 : vector<16x32xf32>
    %363 = arith.divf %361, %362 : vector<16x32xf32>
    %364 = vector.extract_strided_slice %332 {offsets = [0, 32], sizes = [16, 32], strides = [1, 1]} : vector<16x128xf32> to vector<16x32xf32>
    %365 = arith.negf %364 : vector<16x32xf32>
    %366 = math.exp %365 : vector<16x32xf32>
    %cst_96 = arith.constant 1.000000e+00 : f32
    %367 = vector.broadcast %cst_96 : f32 to vector<16x32xf32>
    %368 = arith.addf %367, %366 : vector<16x32xf32>
    %369 = arith.divf %367, %368 : vector<16x32xf32>
    %370 = vector.extract_strided_slice %332 {offsets = [0, 64], sizes = [16, 32], strides = [1, 1]} : vector<16x128xf32> to vector<16x32xf32>
    %371 = math.tanh %370 : vector<16x32xf32>
    %372 = vector.extract_strided_slice %332 {offsets = [0, 96], sizes = [16, 32], strides = [1, 1]} : vector<16x128xf32> to vector<16x32xf32>
    %373 = arith.negf %372 : vector<16x32xf32>
    %374 = math.exp %373 : vector<16x32xf32>
    %cst_97 = arith.constant 1.000000e+00 : f32
    %375 = vector.broadcast %cst_97 : f32 to vector<16x32xf32>
    %376 = arith.addf %375, %374 : vector<16x32xf32>
    %377 = arith.divf %375, %376 : vector<16x32xf32>
    %378 = arith.mulf %369, %305 : vector<16x32xf32>
    %379 = arith.mulf %363, %371 : vector<16x32xf32>
    %380 = arith.addf %378, %379 : vector<16x32xf32>
    %381 = math.tanh %380 : vector<16x32xf32>
    %382 = arith.mulf %377, %381 : vector<16x32xf32>
    %383 = arith.truncf %357 : vector<16x32xf32> to vector<16x32xbf16>
    %384 = arith.index_cast %c4_i32 : i32 to index
    %c0_98 = arith.constant 0 : index
    %c0_99 = arith.constant 0 : index
    %385 = vector.load %arg12[%384, %c0_98, %c0_99] : memref<8x16x32xbf16, #tpu.memory_space<vmem>>, vector<1x16x32xbf16>
    %386 = vector.shape_cast %385 : vector<1x16x32xbf16> to vector<16x32xbf16>
    %387 = vector.shape_cast %383 : vector<16x32xbf16> to vector<1x16x32xbf16>
    tpu.vector_store %arg12[%384, %c0_98, %c0_99], %387 {strides = array<i32>} : memref<8x16x32xbf16, #tpu.memory_space<vmem>>, vector<1x16x32xbf16>,
    %388 = arith.truncf %382 : vector<16x32xf32> to vector<16x32xbf16>
    %389 = arith.index_cast %318 : i32 to index
    %c0_100 = arith.constant 0 : index
    %c0_101 = arith.constant 0 : index
    %390 = vector.load %arg13[%389, %c0_100, %c0_101] : memref<8x16x32xbf16, #tpu.memory_space<vmem>>, vector<1x16x32xbf16>
    %391 = vector.shape_cast %390 : vector<1x16x32xbf16> to vector<16x32xbf16>
    %392 = vector.shape_cast %388 : vector<16x32xbf16> to vector<1x16x32xbf16>
    tpu.vector_store %arg13[%389, %c0_100, %c0_101], %392 {strides = array<i32>} : memref<8x16x32xbf16, #tpu.memory_space<vmem>>, vector<1x16x32xbf16>,
    %c5_i32 = arith.constant 5 : i32
    %c7_i32_102 = arith.constant 7 : i32
    %393 = arith.subi %c7_i32_102, %c5_i32 : i32
    %394 = arith.index_cast %c5_i32 : i32 to index
    %c0_103 = arith.constant 0 : index
    %c0_104 = arith.constant 0 : index
    %395 = vector.load %arg10[%394, %c0_103, %c0_104] : memref<8x16x128xbf16, #tpu.memory_space<vmem>>, vector<1x16x128xbf16>
    %396 = vector.shape_cast %395 : vector<1x16x128xbf16> to vector<16x128xbf16>
    %397 = arith.extf %396 : vector<16x128xbf16> to vector<16x128xf32>
    %398 = arith.truncf %357 : vector<16x32xf32> to vector<16x32xbf16>
    %cst_105 = arith.constant dense<0.000000e+00> : vector<16x128xf32>
    %399 = tpu.matmul %398, %14, %cst_105 {dimension_numbers = #tpu.dot_dimension_numbers<[1], [0], [0], [1], [0, 0, 1, 1], [], []>} : vector<16x32xbf16>, vector<32x128xbf16>, vector<16x128xf32> -> vector<16x128xf32>
    %400 = arith.addf %397, %399 : vector<16x128xf32>
    %401 = arith.index_cast %393 : i32 to index
    %c0_106 = arith.constant 0 : index
    %c0_107 = arith.constant 0 : index
    %402 = vector.load %arg11[%401, %c0_106, %c0_107] : memref<8x16x128xbf16, #tpu.memory_space<vmem>>, vector<1x16x128xbf16>
    %403 = vector.shape_cast %402 : vector<1x16x128xbf16> to vector<16x128xbf16>
    %404 = arith.extf %403 : vector<16x128xbf16> to vector<16x128xf32>
    %405 = arith.truncf %382 : vector<16x32xf32> to vector<16x32xbf16>
    %cst_108 = arith.constant dense<0.000000e+00> : vector<16x128xf32>
    %406 = tpu.matmul %405, %15, %cst_108 {dimension_numbers = #tpu.dot_dimension_numbers<[1], [0], [0], [1], [0, 0, 1, 1], [], []>} : vector<16x32xbf16>, vector<32x128xbf16>, vector<16x128xf32> -> vector<16x128xf32>
    %407 = arith.addf %404, %406 : vector<16x128xf32>
    %408 = vector.extract_strided_slice %400 {offsets = [0, 0], sizes = [16, 32], strides = [1, 1]} : vector<16x128xf32> to vector<16x32xf32>
    %409 = arith.negf %408 : vector<16x32xf32>
    %410 = math.exp %409 : vector<16x32xf32>
    %cst_109 = arith.constant 1.000000e+00 : f32
    %411 = vector.broadcast %cst_109 : f32 to vector<16x32xf32>
    %412 = arith.addf %411, %410 : vector<16x32xf32>
    %413 = arith.divf %411, %412 : vector<16x32xf32>
    %414 = vector.extract_strided_slice %400 {offsets = [0, 32], sizes = [16, 32], strides = [1, 1]} : vector<16x128xf32> to vector<16x32xf32>
    %415 = arith.negf %414 : vector<16x32xf32>
    %416 = math.exp %415 : vector<16x32xf32>
    %cst_110 = arith.constant 1.000000e+00 : f32
    %417 = vector.broadcast %cst_110 : f32 to vector<16x32xf32>
    %418 = arith.addf %417, %416 : vector<16x32xf32>
    %419 = arith.divf %417, %418 : vector<16x32xf32>
    %420 = vector.extract_strided_slice %400 {offsets = [0, 64], sizes = [16, 32], strides = [1, 1]} : vector<16x128xf32> to vector<16x32xf32>
    %421 = math.tanh %420 : vector<16x32xf32>
    %422 = vector.extract_strided_slice %400 {offsets = [0, 96], sizes = [16, 32], strides = [1, 1]} : vector<16x128xf32> to vector<16x32xf32>
    %423 = arith.negf %422 : vector<16x32xf32>
    %424 = math.exp %423 : vector<16x32xf32>
    %cst_111 = arith.constant 1.000000e+00 : f32
    %425 = vector.broadcast %cst_111 : f32 to vector<16x32xf32>
    %426 = arith.addf %425, %424 : vector<16x32xf32>
    %427 = arith.divf %425, %426 : vector<16x32xf32>
    %428 = arith.mulf %419, %355 : vector<16x32xf32>
    %429 = arith.mulf %413, %421 : vector<16x32xf32>
    %430 = arith.addf %428, %429 : vector<16x32xf32>
    %431 = math.tanh %430 : vector<16x32xf32>
    %432 = arith.mulf %427, %431 : vector<16x32xf32>
    %433 = vector.extract_strided_slice %407 {offsets = [0, 0], sizes = [16, 32], strides = [1, 1]} : vector<16x128xf32> to vector<16x32xf32>
    %434 = arith.negf %433 : vector<16x32xf32>
    %435 = math.exp %434 : vector<16x32xf32>
    %cst_112 = arith.constant 1.000000e+00 : f32
    %436 = vector.broadcast %cst_112 : f32 to vector<16x32xf32>
    %437 = arith.addf %436, %435 : vector<16x32xf32>
    %438 = arith.divf %436, %437 : vector<16x32xf32>
    %439 = vector.extract_strided_slice %407 {offsets = [0, 32], sizes = [16, 32], strides = [1, 1]} : vector<16x128xf32> to vector<16x32xf32>
    %440 = arith.negf %439 : vector<16x32xf32>
    %441 = math.exp %440 : vector<16x32xf32>
    %cst_113 = arith.constant 1.000000e+00 : f32
    %442 = vector.broadcast %cst_113 : f32 to vector<16x32xf32>
    %443 = arith.addf %442, %441 : vector<16x32xf32>
    %444 = arith.divf %442, %443 : vector<16x32xf32>
    %445 = vector.extract_strided_slice %407 {offsets = [0, 64], sizes = [16, 32], strides = [1, 1]} : vector<16x128xf32> to vector<16x32xf32>
    %446 = math.tanh %445 : vector<16x32xf32>
    %447 = vector.extract_strided_slice %407 {offsets = [0, 96], sizes = [16, 32], strides = [1, 1]} : vector<16x128xf32> to vector<16x32xf32>
    %448 = arith.negf %447 : vector<16x32xf32>
    %449 = math.exp %448 : vector<16x32xf32>
    %cst_114 = arith.constant 1.000000e+00 : f32
    %450 = vector.broadcast %cst_114 : f32 to vector<16x32xf32>
    %451 = arith.addf %450, %449 : vector<16x32xf32>
    %452 = arith.divf %450, %451 : vector<16x32xf32>
    %453 = arith.mulf %444, %380 : vector<16x32xf32>
    %454 = arith.mulf %438, %446 : vector<16x32xf32>
    %455 = arith.addf %453, %454 : vector<16x32xf32>
    %456 = math.tanh %455 : vector<16x32xf32>
    %457 = arith.mulf %452, %456 : vector<16x32xf32>
    %458 = arith.truncf %432 : vector<16x32xf32> to vector<16x32xbf16>
    %459 = arith.index_cast %c5_i32 : i32 to index
    %c0_115 = arith.constant 0 : index
    %c0_116 = arith.constant 0 : index
    %460 = vector.load %arg12[%459, %c0_115, %c0_116] : memref<8x16x32xbf16, #tpu.memory_space<vmem>>, vector<1x16x32xbf16>
    %461 = vector.shape_cast %460 : vector<1x16x32xbf16> to vector<16x32xbf16>
    %462 = vector.shape_cast %458 : vector<16x32xbf16> to vector<1x16x32xbf16>
    tpu.vector_store %arg12[%459, %c0_115, %c0_116], %462 {strides = array<i32>} : memref<8x16x32xbf16, #tpu.memory_space<vmem>>, vector<1x16x32xbf16>,
    %463 = arith.truncf %457 : vector<16x32xf32> to vector<16x32xbf16>
    %464 = arith.index_cast %393 : i32 to index
    %c0_117 = arith.constant 0 : index
    %c0_118 = arith.constant 0 : index
    %465 = vector.load %arg13[%464, %c0_117, %c0_118] : memref<8x16x32xbf16, #tpu.memory_space<vmem>>, vector<1x16x32xbf16>
    %466 = vector.shape_cast %465 : vector<1x16x32xbf16> to vector<16x32xbf16>
    %467 = vector.shape_cast %463 : vector<16x32xbf16> to vector<1x16x32xbf16>
    tpu.vector_store %arg13[%464, %c0_117, %c0_118], %467 {strides = array<i32>} : memref<8x16x32xbf16, #tpu.memory_space<vmem>>, vector<1x16x32xbf16>,
    %c6_i32 = arith.constant 6 : i32
    %c7_i32_119 = arith.constant 7 : i32
    %468 = arith.subi %c7_i32_119, %c6_i32 : i32
    %469 = arith.index_cast %c6_i32 : i32 to index
    %c0_120 = arith.constant 0 : index
    %c0_121 = arith.constant 0 : index
    %470 = vector.load %arg10[%469, %c0_120, %c0_121] : memref<8x16x128xbf16, #tpu.memory_space<vmem>>, vector<1x16x128xbf16>
    %471 = vector.shape_cast %470 : vector<1x16x128xbf16> to vector<16x128xbf16>
    %472 = arith.extf %471 : vector<16x128xbf16> to vector<16x128xf32>
    %473 = arith.truncf %432 : vector<16x32xf32> to vector<16x32xbf16>
    %cst_122 = arith.constant dense<0.000000e+00> : vector<16x128xf32>
    %474 = tpu.matmul %473, %14, %cst_122 {dimension_numbers = #tpu.dot_dimension_numbers<[1], [0], [0], [1], [0, 0, 1, 1], [], []>} : vector<16x32xbf16>, vector<32x128xbf16>, vector<16x128xf32> -> vector<16x128xf32>
    %475 = arith.addf %472, %474 : vector<16x128xf32>
    %476 = arith.index_cast %468 : i32 to index
    %c0_123 = arith.constant 0 : index
    %c0_124 = arith.constant 0 : index
    %477 = vector.load %arg11[%476, %c0_123, %c0_124] : memref<8x16x128xbf16, #tpu.memory_space<vmem>>, vector<1x16x128xbf16>
    %478 = vector.shape_cast %477 : vector<1x16x128xbf16> to vector<16x128xbf16>
    %479 = arith.extf %478 : vector<16x128xbf16> to vector<16x128xf32>
    %480 = arith.truncf %457 : vector<16x32xf32> to vector<16x32xbf16>
    %cst_125 = arith.constant dense<0.000000e+00> : vector<16x128xf32>
    %481 = tpu.matmul %480, %15, %cst_125 {dimension_numbers = #tpu.dot_dimension_numbers<[1], [0], [0], [1], [0, 0, 1, 1], [], []>} : vector<16x32xbf16>, vector<32x128xbf16>, vector<16x128xf32> -> vector<16x128xf32>
    %482 = arith.addf %479, %481 : vector<16x128xf32>
    %483 = vector.extract_strided_slice %475 {offsets = [0, 0], sizes = [16, 32], strides = [1, 1]} : vector<16x128xf32> to vector<16x32xf32>
    %484 = arith.negf %483 : vector<16x32xf32>
    %485 = math.exp %484 : vector<16x32xf32>
    %cst_126 = arith.constant 1.000000e+00 : f32
    %486 = vector.broadcast %cst_126 : f32 to vector<16x32xf32>
    %487 = arith.addf %486, %485 : vector<16x32xf32>
    %488 = arith.divf %486, %487 : vector<16x32xf32>
    %489 = vector.extract_strided_slice %475 {offsets = [0, 32], sizes = [16, 32], strides = [1, 1]} : vector<16x128xf32> to vector<16x32xf32>
    %490 = arith.negf %489 : vector<16x32xf32>
    %491 = math.exp %490 : vector<16x32xf32>
    %cst_127 = arith.constant 1.000000e+00 : f32
    %492 = vector.broadcast %cst_127 : f32 to vector<16x32xf32>
    %493 = arith.addf %492, %491 : vector<16x32xf32>
    %494 = arith.divf %492, %493 : vector<16x32xf32>
    %495 = vector.extract_strided_slice %475 {offsets = [0, 64], sizes = [16, 32], strides = [1, 1]} : vector<16x128xf32> to vector<16x32xf32>
    %496 = math.tanh %495 : vector<16x32xf32>
    %497 = vector.extract_strided_slice %475 {offsets = [0, 96], sizes = [16, 32], strides = [1, 1]} : vector<16x128xf32> to vector<16x32xf32>
    %498 = arith.negf %497 : vector<16x32xf32>
    %499 = math.exp %498 : vector<16x32xf32>
    %cst_128 = arith.constant 1.000000e+00 : f32
    %500 = vector.broadcast %cst_128 : f32 to vector<16x32xf32>
    %501 = arith.addf %500, %499 : vector<16x32xf32>
    %502 = arith.divf %500, %501 : vector<16x32xf32>
    %503 = arith.mulf %494, %430 : vector<16x32xf32>
    %504 = arith.mulf %488, %496 : vector<16x32xf32>
    %505 = arith.addf %503, %504 : vector<16x32xf32>
    %506 = math.tanh %505 : vector<16x32xf32>
    %507 = arith.mulf %502, %506 : vector<16x32xf32>
    %508 = vector.extract_strided_slice %482 {offsets = [0, 0], sizes = [16, 32], strides = [1, 1]} : vector<16x128xf32> to vector<16x32xf32>
    %509 = arith.negf %508 : vector<16x32xf32>
    %510 = math.exp %509 : vector<16x32xf32>
    %cst_129 = arith.constant 1.000000e+00 : f32
    %511 = vector.broadcast %cst_129 : f32 to vector<16x32xf32>
    %512 = arith.addf %511, %510 : vector<16x32xf32>
    %513 = arith.divf %511, %512 : vector<16x32xf32>
    %514 = vector.extract_strided_slice %482 {offsets = [0, 32], sizes = [16, 32], strides = [1, 1]} : vector<16x128xf32> to vector<16x32xf32>
    %515 = arith.negf %514 : vector<16x32xf32>
    %516 = math.exp %515 : vector<16x32xf32>
    %cst_130 = arith.constant 1.000000e+00 : f32
    %517 = vector.broadcast %cst_130 : f32 to vector<16x32xf32>
    %518 = arith.addf %517, %516 : vector<16x32xf32>
    %519 = arith.divf %517, %518 : vector<16x32xf32>
    %520 = vector.extract_strided_slice %482 {offsets = [0, 64], sizes = [16, 32], strides = [1, 1]} : vector<16x128xf32> to vector<16x32xf32>
    %521 = math.tanh %520 : vector<16x32xf32>
    %522 = vector.extract_strided_slice %482 {offsets = [0, 96], sizes = [16, 32], strides = [1, 1]} : vector<16x128xf32> to vector<16x32xf32>
    %523 = arith.negf %522 : vector<16x32xf32>
    %524 = math.exp %523 : vector<16x32xf32>
    %cst_131 = arith.constant 1.000000e+00 : f32
    %525 = vector.broadcast %cst_131 : f32 to vector<16x32xf32>
    %526 = arith.addf %525, %524 : vector<16x32xf32>
    %527 = arith.divf %525, %526 : vector<16x32xf32>
    %528 = arith.mulf %519, %455 : vector<16x32xf32>
    %529 = arith.mulf %513, %521 : vector<16x32xf32>
    %530 = arith.addf %528, %529 : vector<16x32xf32>
    %531 = math.tanh %530 : vector<16x32xf32>
    %532 = arith.mulf %527, %531 : vector<16x32xf32>
    %533 = arith.truncf %507 : vector<16x32xf32> to vector<16x32xbf16>
    %534 = arith.index_cast %c6_i32 : i32 to index
    %c0_132 = arith.constant 0 : index
    %c0_133 = arith.constant 0 : index
    %535 = vector.load %arg12[%534, %c0_132, %c0_133] : memref<8x16x32xbf16, #tpu.memory_space<vmem>>, vector<1x16x32xbf16>
    %536 = vector.shape_cast %535 : vector<1x16x32xbf16> to vector<16x32xbf16>
    %537 = vector.shape_cast %533 : vector<16x32xbf16> to vector<1x16x32xbf16>
    tpu.vector_store %arg12[%534, %c0_132, %c0_133], %537 {strides = array<i32>} : memref<8x16x32xbf16, #tpu.memory_space<vmem>>, vector<1x16x32xbf16>,
    %538 = arith.truncf %532 : vector<16x32xf32> to vector<16x32xbf16>
    %539 = arith.index_cast %468 : i32 to index
    %c0_134 = arith.constant 0 : index
    %c0_135 = arith.constant 0 : index
    %540 = vector.load %arg13[%539, %c0_134, %c0_135] : memref<8x16x32xbf16, #tpu.memory_space<vmem>>, vector<1x16x32xbf16>
    %541 = vector.shape_cast %540 : vector<1x16x32xbf16> to vector<16x32xbf16>
    %542 = vector.shape_cast %538 : vector<16x32xbf16> to vector<1x16x32xbf16>
    tpu.vector_store %arg13[%539, %c0_134, %c0_135], %542 {strides = array<i32>} : memref<8x16x32xbf16, #tpu.memory_space<vmem>>, vector<1x16x32xbf16>,
    %c7_i32_136 = arith.constant 7 : i32
    %c7_i32_137 = arith.constant 7 : i32
    %543 = arith.subi %c7_i32_137, %c7_i32_136 : i32
    %544 = arith.index_cast %c7_i32_136 : i32 to index
    %c0_138 = arith.constant 0 : index
    %c0_139 = arith.constant 0 : index
    %545 = vector.load %arg10[%544, %c0_138, %c0_139] : memref<8x16x128xbf16, #tpu.memory_space<vmem>>, vector<1x16x128xbf16>
    %546 = vector.shape_cast %545 : vector<1x16x128xbf16> to vector<16x128xbf16>
    %547 = arith.extf %546 : vector<16x128xbf16> to vector<16x128xf32>
    %548 = arith.truncf %507 : vector<16x32xf32> to vector<16x32xbf16>
    %cst_140 = arith.constant dense<0.000000e+00> : vector<16x128xf32>
    %549 = tpu.matmul %548, %14, %cst_140 {dimension_numbers = #tpu.dot_dimension_numbers<[1], [0], [0], [1], [0, 0, 1, 1], [], []>} : vector<16x32xbf16>, vector<32x128xbf16>, vector<16x128xf32> -> vector<16x128xf32>
    %550 = arith.addf %547, %549 : vector<16x128xf32>
    %551 = arith.index_cast %543 : i32 to index
    %c0_141 = arith.constant 0 : index
    %c0_142 = arith.constant 0 : index
    %552 = vector.load %arg11[%551, %c0_141, %c0_142] : memref<8x16x128xbf16, #tpu.memory_space<vmem>>, vector<1x16x128xbf16>
    %553 = vector.shape_cast %552 : vector<1x16x128xbf16> to vector<16x128xbf16>
    %554 = arith.extf %553 : vector<16x128xbf16> to vector<16x128xf32>
    %555 = arith.truncf %532 : vector<16x32xf32> to vector<16x32xbf16>
    %cst_143 = arith.constant dense<0.000000e+00> : vector<16x128xf32>
    %556 = tpu.matmul %555, %15, %cst_143 {dimension_numbers = #tpu.dot_dimension_numbers<[1], [0], [0], [1], [0, 0, 1, 1], [], []>} : vector<16x32xbf16>, vector<32x128xbf16>, vector<16x128xf32> -> vector<16x128xf32>
    %557 = arith.addf %554, %556 : vector<16x128xf32>
    %558 = vector.extract_strided_slice %550 {offsets = [0, 0], sizes = [16, 32], strides = [1, 1]} : vector<16x128xf32> to vector<16x32xf32>
    %559 = arith.negf %558 : vector<16x32xf32>
    %560 = math.exp %559 : vector<16x32xf32>
    %cst_144 = arith.constant 1.000000e+00 : f32
    %561 = vector.broadcast %cst_144 : f32 to vector<16x32xf32>
    %562 = arith.addf %561, %560 : vector<16x32xf32>
    %563 = arith.divf %561, %562 : vector<16x32xf32>
    %564 = vector.extract_strided_slice %550 {offsets = [0, 32], sizes = [16, 32], strides = [1, 1]} : vector<16x128xf32> to vector<16x32xf32>
    %565 = arith.negf %564 : vector<16x32xf32>
    %566 = math.exp %565 : vector<16x32xf32>
    %cst_145 = arith.constant 1.000000e+00 : f32
    %567 = vector.broadcast %cst_145 : f32 to vector<16x32xf32>
    %568 = arith.addf %567, %566 : vector<16x32xf32>
    %569 = arith.divf %567, %568 : vector<16x32xf32>
    %570 = vector.extract_strided_slice %550 {offsets = [0, 64], sizes = [16, 32], strides = [1, 1]} : vector<16x128xf32> to vector<16x32xf32>
    %571 = math.tanh %570 : vector<16x32xf32>
    %572 = vector.extract_strided_slice %550 {offsets = [0, 96], sizes = [16, 32], strides = [1, 1]} : vector<16x128xf32> to vector<16x32xf32>
    %573 = arith.negf %572 : vector<16x32xf32>
    %574 = math.exp %573 : vector<16x32xf32>
    %cst_146 = arith.constant 1.000000e+00 : f32
    %575 = vector.broadcast %cst_146 : f32 to vector<16x32xf32>
    %576 = arith.addf %575, %574 : vector<16x32xf32>
    %577 = arith.divf %575, %576 : vector<16x32xf32>
    %578 = arith.mulf %569, %505 : vector<16x32xf32>
    %579 = arith.mulf %563, %571 : vector<16x32xf32>
    %580 = arith.addf %578, %579 : vector<16x32xf32>
    %581 = math.tanh %580 : vector<16x32xf32>
    %582 = arith.mulf %577, %581 : vector<16x32xf32>
    %583 = vector.extract_strided_slice %557 {offsets = [0, 0], sizes = [16, 32], strides = [1, 1]} : vector<16x128xf32> to vector<16x32xf32>
    %584 = arith.negf %583 : vector<16x32xf32>
    %585 = math.exp %584 : vector<16x32xf32>
    %cst_147 = arith.constant 1.000000e+00 : f32
    %586 = vector.broadcast %cst_147 : f32 to vector<16x32xf32>
    %587 = arith.addf %586, %585 : vector<16x32xf32>
    %588 = arith.divf %586, %587 : vector<16x32xf32>
    %589 = vector.extract_strided_slice %557 {offsets = [0, 32], sizes = [16, 32], strides = [1, 1]} : vector<16x128xf32> to vector<16x32xf32>
    %590 = arith.negf %589 : vector<16x32xf32>
    %591 = math.exp %590 : vector<16x32xf32>
    %cst_148 = arith.constant 1.000000e+00 : f32
    %592 = vector.broadcast %cst_148 : f32 to vector<16x32xf32>
    %593 = arith.addf %592, %591 : vector<16x32xf32>
    %594 = arith.divf %592, %593 : vector<16x32xf32>
    %595 = vector.extract_strided_slice %557 {offsets = [0, 64], sizes = [16, 32], strides = [1, 1]} : vector<16x128xf32> to vector<16x32xf32>
    %596 = math.tanh %595 : vector<16x32xf32>
    %597 = vector.extract_strided_slice %557 {offsets = [0, 96], sizes = [16, 32], strides = [1, 1]} : vector<16x128xf32> to vector<16x32xf32>
    %598 = arith.negf %597 : vector<16x32xf32>
    %599 = math.exp %598 : vector<16x32xf32>
    %cst_149 = arith.constant 1.000000e+00 : f32
    %600 = vector.broadcast %cst_149 : f32 to vector<16x32xf32>
    %601 = arith.addf %600, %599 : vector<16x32xf32>
    %602 = arith.divf %600, %601 : vector<16x32xf32>
    %603 = arith.mulf %594, %530 : vector<16x32xf32>
    %604 = arith.mulf %588, %596 : vector<16x32xf32>
    %605 = arith.addf %603, %604 : vector<16x32xf32>
    %606 = math.tanh %605 : vector<16x32xf32>
    %607 = arith.mulf %602, %606 : vector<16x32xf32>
    %608 = arith.truncf %582 : vector<16x32xf32> to vector<16x32xbf16>
    %609 = arith.index_cast %c7_i32_136 : i32 to index
    %c0_150 = arith.constant 0 : index
    %c0_151 = arith.constant 0 : index
    %610 = vector.load %arg12[%609, %c0_150, %c0_151] : memref<8x16x32xbf16, #tpu.memory_space<vmem>>, vector<1x16x32xbf16>
    %611 = vector.shape_cast %610 : vector<1x16x32xbf16> to vector<16x32xbf16>
    %612 = vector.shape_cast %608 : vector<16x32xbf16> to vector<1x16x32xbf16>
    tpu.vector_store %arg12[%609, %c0_150, %c0_151], %612 {strides = array<i32>} : memref<8x16x32xbf16, #tpu.memory_space<vmem>>, vector<1x16x32xbf16>,
    %613 = arith.truncf %607 : vector<16x32xf32> to vector<16x32xbf16>
    %614 = arith.index_cast %543 : i32 to index
    %c0_152 = arith.constant 0 : index
    %c0_153 = arith.constant 0 : index
    %615 = vector.load %arg13[%614, %c0_152, %c0_153] : memref<8x16x32xbf16, #tpu.memory_space<vmem>>, vector<1x16x32xbf16>
    %616 = vector.shape_cast %615 : vector<1x16x32xbf16> to vector<16x32xbf16>
    %617 = vector.shape_cast %613 : vector<16x32xbf16> to vector<1x16x32xbf16>
    tpu.vector_store %arg13[%614, %c0_152, %c0_153], %617 {strides = array<i32>} : memref<8x16x32xbf16, #tpu.memory_space<vmem>>, vector<1x16x32xbf16>,
    %c8_i32 = arith.constant 8 : i32
    %c0_154 = arith.constant 0 : index
    %c0_155 = arith.constant 0 : index
    %c0_156 = arith.constant 0 : index
    %618 = vector.load %arg12[%c0_154, %c0_155, %c0_156] : memref<8x16x32xbf16, #tpu.memory_space<vmem>>, vector<8x16x32xbf16>
    %619 = vector.shape_cast %618 : vector<8x16x32xbf16> to vector<128x32xbf16>
    %c0_157 = arith.constant 0 : index
    %c0_158 = arith.constant 0 : index
    %c0_159 = arith.constant 0 : index
    %620 = vector.load %arg13[%c0_157, %c0_158, %c0_159] : memref<8x16x32xbf16, #tpu.memory_space<vmem>>, vector<8x16x32xbf16>
    %621 = vector.shape_cast %620 : vector<8x16x32xbf16> to vector<128x32xbf16>
    %c0_160 = arith.constant 0 : index
    %c0_161 = arith.constant 0 : index
    %622 = vector.load %arg6[%c0_160, %c0_161] : memref<32x128xbf16, #tpu.memory_space<vmem>>, vector<32x128xbf16>
    %cst_162 = arith.constant dense<0.000000e+00> : vector<128x128xf32>
    %623 = tpu.matmul %619, %622, %cst_162 {dimension_numbers = #tpu.dot_dimension_numbers<[1], [0], [0], [1], [0, 0, 1, 1], [], []>} : vector<128x32xbf16>, vector<32x128xbf16>, vector<128x128xf32> -> vector<128x128xf32>
    %c0_163 = arith.constant 0 : index
    %c0_164 = arith.constant 0 : index
    %624 = vector.load %arg7[%c0_163, %c0_164] : memref<32x128xbf16, #tpu.memory_space<vmem>>, vector<32x128xbf16>
    %cst_165 = arith.constant dense<0.000000e+00> : vector<128x128xf32>
    %625 = tpu.matmul %621, %624, %cst_165 {dimension_numbers = #tpu.dot_dimension_numbers<[1], [0], [0], [1], [0, 0, 1, 1], [], []>} : vector<128x32xbf16>, vector<32x128xbf16>, vector<128x128xf32> -> vector<128x128xf32>
    %626 = arith.addf %623, %625 : vector<128x128xf32>
    %c0_166 = arith.constant 0 : index
    %c0_167 = arith.constant 0 : index
    %627 = vector.load %arg8[%c0_166, %c0_167] : memref<1x128xf32, #tpu.memory_space<vmem>>, vector<1x128xf32>
    %628 = vector.broadcast %627 : vector<1x128xf32> to vector<128x128xf32>
    %629 = arith.addf %626, %628 : vector<128x128xf32>
    %630 = vector.shape_cast %629 : vector<128x128xf32> to vector<8x16x128xf32>
    %631 = arith.truncf %630 : vector<8x16x128xf32> to vector<8x16x128xbf16>
    %c0_168 = arith.constant 0 : index
    %c0_169 = arith.constant 0 : index
    %c0_170 = arith.constant 0 : index
    %632 = vector.load %arg9[%c0_168, %c0_169, %c0_170] : memref<8x16x128xbf16, #tpu.memory_space<vmem>>, vector<8x16x128xbf16>
    tpu.vector_store %arg9[%c0_168, %c0_169, %c0_170], %631 {strides = array<i32>} : memref<8x16x128xbf16, #tpu.memory_space<vmem>>, vector<8x16x128xbf16>,
    return
  }
  func.func @transform_0(%arg0: i32) -> (i32, i32, i32) {
    %c0_i32 = arith.constant 0 : i32
    %c0_i32_0 = arith.constant 0 : i32
    %c0_i32_1 = arith.constant 0 : i32
    return %c0_i32, %arg0, %c0_i32_0 : i32, i32, i32
  }
  func.func @transform_1(%arg0: i32) -> (i32, i32) {
    %c0_i32 = arith.constant 0 : i32
    %c0_i32_0 = arith.constant 0 : i32
    %c0_i32_1 = arith.constant 0 : i32
    return %c0_i32, %c0_i32_0 : i32, i32
  }
  func.func @transform_2(%arg0: i32) -> (i32, i32) {
    %c0_i32 = arith.constant 0 : i32
    %c0_i32_0 = arith.constant 0 : i32
    %c0_i32_1 = arith.constant 0 : i32
    return %c0_i32, %c0_i32_0 : i32, i32
  }
  func.func @transform_3(%arg0: i32) -> (i32, i32) {
    %c0_i32 = arith.constant 0 : i32
    %c0_i32_0 = arith.constant 0 : i32
    %c0_i32_1 = arith.constant 0 : i32
    return %c0_i32, %c0_i32_0 : i32, i32
  }
  func.func @transform_4(%arg0: i32) -> (i32, i32) {
    %c0_i32 = arith.constant 0 : i32
    %c0_i32_0 = arith.constant 0 : i32
    %c0_i32_1 = arith.constant 0 : i32
    return %c0_i32, %c0_i32_0 : i32, i32
  }
  func.func @transform_5(%arg0: i32) -> (i32, i32) {
    %c0_i32 = arith.constant 0 : i32
    %c0_i32_0 = arith.constant 0 : i32
    %c0_i32_1 = arith.constant 0 : i32
    return %c0_i32, %c0_i32_0 : i32, i32
  }
  func.func @transform_6(%arg0: i32) -> (i32, i32) {
    %c0_i32 = arith.constant 0 : i32
    %c0_i32_0 = arith.constant 0 : i32
    %c0_i32_1 = arith.constant 0 : i32
    return %c0_i32, %c0_i32_0 : i32, i32
  }
  func.func @transform_7(%arg0: i32) -> (i32, i32) {
    %c0_i32 = arith.constant 0 : i32
    %c0_i32_0 = arith.constant 0 : i32
    %c0_i32_1 = arith.constant 0 : i32
    return %c0_i32, %c0_i32_0 : i32, i32
  }
  func.func @transform_8(%arg0: i32) -> (i32, i32, i32) {
    %c0_i32 = arith.constant 0 : i32
    %c0_i32_0 = arith.constant 0 : i32
    %c0_i32_1 = arith.constant 0 : i32
    return %c0_i32, %arg0, %c0_i32_0 : i32, i32, i32
  }
}

</mosaic_0001>

<bundles_post_ra>
// kernel: tpu_custom_call.1
= control target key start
LH: loop header
LB: loop body
LE: loop exit
PB: predicated region body
PF: predicated region fallthrough
CT: control target
= control target key end

     0   :  { %13 = vsyncpa [#allocation7], 0  ;;  %s3960_s0 = inlined_call_operand.hbm [shape: bf16[8,16,16], index: 0, kind: input, shape index: {}]   ;;  %s3961_s1 = inlined_call_operand.hbm [shape: bf16[16,256], index: 1, kind: input, shape index: {}]   ;;  %s3962_s2 = inlined_call_operand.vmem [shape: f32[1,256], index: 2, kind: input, shape index: {}]   ;;  %s3963_s3 = inlined_call_operand.hbm [shape: bf16[32,128], index: 3, kind: input, shape index: {}]   ;;  %s3964_s4 = inlined_call_operand.hbm [shape: bf16[32,128], index: 4, kind: input, shape index: {}]   ;;  %s3965_s5 = inlined_call_operand.vmem [shape: bf16[32,128], index: 5, kind: input, shape index: {}]   ;;  %s3966_s6 = inlined_call_operand.hbm [shape: bf16[32,128], index: 6, kind: input, shape index: {}]   ;;  %s3967_s7 = inlined_call_operand.vmem [shape: f32[1,128], index: 7, kind: input, shape index: {}]   ;;  %s3968_s8 = inlined_call_operand.hbm [shape: bf16[8,16,128], index: 8, kind: output, shape index: {}]  }
   0x1   :  { %14 = vsyncpa [#allocation10], 0 }
   0x2   :  { %15 = vsyncpa [#allocation13], 0 }
   0x3   :  { %16 = vsyncpa [#allocation8], 0  ;;  %s3322_s27 = smov [#allocation9]   ;;  %s3182_s9 = scalar_lea.hbm %s3961_s1, 256 }
   0x4   :  { %s34_s28 = sshll.u32 %s3322_s27, 4  ;;  %p3183_p0 = scmp.ne.s32.totalorder %s3961_s1, %s3182_s9  ;;  %s35_s28 = int_to_ptr.vmem [resolvable:$true] %s34_s28 }
   0x5   :  { %p3186_p1 = scmp.lt.u32.totalorder %s3182_s9, %s3961_s1 }
   0x7   :  { %p3188_p2 = pnand %p3186_p1, %p3183_p0 }
   0x9   :  { %3191 = shalt.err (!%p3188_p2)
}
   0xa   :  { %s3192_s14 = scalar_lea.vmem %s35_s28, 256  ;;  %p3197_p4 = scmp.lt.s32.totalorder %s35_s28, %s35_s28 }
   0xb   :  { %p3193_p3 = scmp.ne.s32.totalorder %s35_s28, %s3192_s14  ;;  %p3198_p5 = scmp.lt.s32.totalorder %s3192_s14, %s3192_s14 }
   0xd   :  { %p3199_p6 = por %p3198_p5, %p3197_p4 }
   0xf   :  { %p3200_p7 = pnand %p3199_p6, %p3193_p3 }
  0x11   :  { %3203 = shalt.err (!%p3200_p7)
}
  0x12   :  { %s3323_s15 = smov 128   ;;  %s3324_s16 = smov 8  }
  0x13   :  { %40 = dma.hbm_to_vmem [thread:$0]  %s3961_s1, 256, %s35_s28, [#allocation10], %s3323_s15, %s3323_s15, %s3324_s16  }
  0x14   :  { %s3325_s19 = smov [#allocation12]   ;;  %s3326_s21 = smov [#allocation6]  }
  0x15   :  { %s60_s20 = sshll.u32 %s3325_s19, 4  ;;  %s22_s22 = sshll.u32 %s3326_s21, 4  ;;  %s61_s20 = int_to_ptr.vmem [resolvable:$true] %s60_s20  ;;  %s23_s22 = int_to_ptr.vmem [resolvable:$true] %s22_s22 }
  0x16   :  { %s3204_s25 = scalar_lea.hbm %s3964_s4, 256 }
  0x17   :  { %p3205_p8 = scmp.ne.s32.totalorder %s3964_s4, %s3204_s25  ;;  %p3208_p9 = scmp.lt.u32.totalorder %s3204_s25, %s3964_s4 }
  0x19   :  { %p3210_p10 = pnand %p3208_p9, %p3205_p8 }
  0x1b   :  { %3213 = shalt.err (!%p3210_p10)
}
  0x1c   :  { %s3214_s1 = scalar_lea.vmem %s61_s20, 256  ;;  %p3219_p12 = scmp.lt.s32.totalorder %s61_s20, %s61_s20 }
  0x1d   :  { %p3215_p11 = scmp.ne.s32.totalorder %s61_s20, %s3214_s1  ;;  %p3220_p13 = scmp.lt.s32.totalorder %s3214_s1, %s3214_s1 }
  0x1f   :  { %p3221_p0 = por %p3220_p13, %p3219_p12 }
  0x21   :  { %p3222_p1 = pnand %p3221_p0, %p3215_p11 }
  0x23   :  { %3225 = shalt.err (!%p3222_p1)
}
  0x24   :  { %s3327_s28 = smov 64   ;;  %s3328_s9 = smov 4  }
  0x25   :  { %66 = dma.hbm_to_vmem [thread:$0]  %s3964_s4, 256, %s61_s20, [#allocation13], %s3327_s28, %s3327_s28, %s3328_s9  }
  0x26   :  { %s3226_s14 = scalar_lea.hbm %s3960_s0, 1024 }
  0x27   :  { %p3227_p2 = scmp.ne.s32.totalorder %s3960_s0, %s3226_s14  ;;  %p3230_p3 = scmp.lt.u32.totalorder %s3226_s14, %s3960_s0 }
  0x29   :  { %p3232_p4 = pnand %p3230_p3, %p3227_p2 }
  0x2b   :  { %3235 = shalt.err (!%p3232_p4)
}
  0x2c   :  { %s3236_s19 = scalar_lea.vmem %s23_s22, 1024  ;;  %p3241_p6 = scmp.lt.s32.totalorder %s23_s22, %s23_s22 }
  0x2d   :  { %p3237_p5 = scmp.ne.s32.totalorder %s23_s22, %s3236_s19  ;;  %p3242_p7 = scmp.lt.s32.totalorder %s3236_s19, %s3236_s19 }
  0x2f   :  { %p3243_p8 = por %p3242_p7, %p3241_p6 }
  0x31   :  { %p3244_p9 = pnand %p3243_p8, %p3237_p5 }
  0x33   :  { %3247 = shalt.err (!%p3244_p9)
}
  0x34   :  { %28 = dma.hbm_to_vmem [thread:$0]  %s3960_s0, 1024, %s23_s22, [#allocation7], %s3327_s28, %s3327_s28, %s3328_s9  }
  0x35   :  { %s3329_s21 = smov [#allocation11]   ;;  %s3330_s24 = smov [#allocation14]  }
  0x36   :  { %s48_s23 = sshll.u32 %s3329_s21, 4  ;;  %s74_s25 = sshll.u32 %s3330_s24, 4  ;;  %s49_s23 = int_to_ptr.vmem [resolvable:$true] %s48_s23  ;;  %s75_s25 = int_to_ptr.vmem [resolvable:$true] %s74_s25 }
  0x37   :  { %s3248_s29 = scalar_lea.hbm %s3963_s3, 256 }
  0x38   :  { %p3249_p10 = scmp.ne.s32.totalorder %s3963_s3, %s3248_s29  ;;  %p3252_p11 = scmp.lt.u32.totalorder %s3248_s29, %s3963_s3 }
  0x3a   :  { %p3254_p12 = pnand %p3252_p11, %p3249_p10 }
  0x3c   :  { %3257 = shalt.err (!%p3254_p12)
}
  0x3d   :  { %s3258_s0 = scalar_lea.vmem %s49_s23, 256  ;;  %p3263_p0 = scmp.lt.s32.totalorder %s49_s23, %s49_s23 }
  0x3e   :  { %p3259_p13 = scmp.ne.s32.totalorder %s49_s23, %s3258_s0  ;;  %p3264_p1 = scmp.lt.s32.totalorder %s3258_s0, %s3258_s0 }
  0x40   :  { %p3265_p2 = por %p3264_p1, %p3263_p0 }
  0x42   :  { %p3266_p3 = pnand %p3265_p2, %p3259_p13 }
  0x44   :  { %3269 = shalt.err (!%p3266_p3)
}
  0x45   :  { %54 = dma.hbm_to_vmem [thread:$0]  %s3963_s3, 256, %s49_s23, [#allocation10], %s3327_s28, %s3327_s28, %s3328_s9  }
  0x46   :  { %s3270_s15 = scalar_lea.hbm %s3966_s6, 256 }
  0x47   :  { %p3271_p4 = scmp.ne.s32.totalorder %s3966_s6, %s3270_s15  ;;  %p3274_p5 = scmp.lt.u32.totalorder %s3270_s15, %s3966_s6 }
  0x49   :  { %p3276_p6 = pnand %p3274_p5, %p3271_p4 }
  0x4b   :  { %3279 = shalt.err (!%p3276_p6)
}
  0x4c   :  { %s3280_s4 = scalar_lea.vmem %s75_s25, 256  ;;  %p3285_p8 = scmp.lt.s32.totalorder %s75_s25, %s75_s25 }
  0x4d   :  { %p3281_p7 = scmp.ne.s32.totalorder %s75_s25, %s3280_s4  ;;  %p3286_p9 = scmp.lt.s32.totalorder %s3280_s4, %s3280_s4 }
  0x4f   :  { %p3287_p10 = por %p3286_p9, %p3285_p8 }
  0x51   :  { %p3288_p11 = pnand %p3287_p10, %p3281_p7 }
  0x53   :  { %3291 = shalt.err (!%p3288_p11)
}
  0x54   :  { %80 = dma.hbm_to_vmem [thread:$0]  %s3966_s6, 256, %s75_s25, [#allocation13], %s3327_s28, %s3327_s28, %s3328_s9  }
  0x55   :  { %3314 = dma.done.wait [#allocation7], 1024  }
  0x56   :  { %3315 = vsyncadd [#allocation7], 4294966272 }
  0x57   :  { %3316 = dma.done.wait [#allocation10], 512  }
  0x58   :  { %3317 = vsyncadd [#allocation10], 4294966784 }
  0x59   :  { %3318 = dma.done.wait [#allocation13], 512  }
  0x5a   :  { %3319 = vsyncadd [#allocation13], 4294966784  ;;  %v3331_v0 = vmov 0   ;;  %v2903_v1 = vld [vmem:[#allocation9 + $0x4] ss:$8 sps:$4 sm:$0xff]   ;;  %vm179_vm0 = vcmask 130048   ;;  %v119_v13 = vlaneseq }
  0x5b   :  { %276 = vmatprep.mubr.bf16.mxu1 %v3331_v0  ;;  %236 = vmatprep.mubr.bf16.mxu0 %v3331_v0  ;;  %v2905_v2 = vld [vmem:[#allocation9] ss:$8 sps:$4 sm:$0xff]   ;;  %v3455_v4 = vld [vmem:[#allocation11] sm:$0xff]   ;;  %v3332_v5 = vmov 0.0   ;;  %v3460_v6 = vld [vmem:[#allocation11 + $0x8] sm:$0xff]   ;;  %vm3333_vm1 = vmmov 0  }
  0x5c   :  { %2871 = vmatprep.subr.bf16.mxu1 %v2903_v1  ;;  %v2906_v3 = vld [vmem:[#allocation6 + $0x20] sm:$0xff]   ;;  %204 = vmatprep.subr.bf16.mxu0 %v2903_v1  ;;  %v2908_v8 = vld [vmem:[#allocation6 + $0x28] sm:$0xff]   ;;  %v2909_v9 = vld [vmem:[#allocation6 + $0x30] sm:$0xff]   ;;  %v120_v14 = vshrl.u32 %v119_v13, 7  ;;  %vm372_vm2 = vcmask 261120  }
  0x5d   :  { %2872 = vmatpush1.bf16.msra.mxu1 %v2905_v2  ;;  %205 = vmatpush1.bf16.msra.mxu0 %v2905_v2  ;;  %v2911_v7 = vld [vmem:[#allocation6] sm:$0xff]   ;;  %v2912_v10 = vld [vmem:[#allocation6 + $0x38] sm:$0xff]   ;;  %v3484_v12 = vld [vmem:[#allocation12 + $0x8] sm:$0xff]  }
  0x5e   :  { %2703 = vmatprep.subr.bf16.mxu1 %v3332_v5  ;;  %2767 = vmatprep.subr.bf16.mxu0 %v3332_v5  ;;  %v3480_v11 = vld [vmem:[#allocation12] sm:$0xff]   ;;  %v121_v15 = vsub.s32 0, %v120_v14  ;;  %v125_v17 = vsub.s32 1, %v120_v14 }
  0x5f   :  { %v117_v16 = vld [vmem:[%s3962_s2] sm:$0x3]  ;;  %s3334_s2 = smov 32  }
  0x60   :  { %2481 = vmatmul.mubr.msk.bf16.vlgmr.msra.gmra.mrb[0].mxu1 %vm179_vm0, %v2906_v3  ;;  %2477 = vmatmul.mubr.msk.bf16.vlgmr.msra.gmra.mrb[0].mxu0 %vm179_vm0, %v2911_v7  ;;  %v3501_v18 = vrot.slane %v117_v16, %v121_v15  ;;  %v3503_v20 = vrot.slane %v117_v16, %v125_v17 }
  0x61   :  { %2704 = vmatpush3.bf16.msra.mxu1 %v3455_v4  ;;  %286 = vmatprep.mubr.bf16.mxu1 %v3331_v0 }
  0x62   :  { %2705 = vmatprep.subr.bf16.mxu1 %v3332_v5  ;;  %246 = vmatprep.mubr.bf16.mxu0 %v3331_v0 }
  0x63   :  { %2768 = vmatpush3.bf16.msra.mxu0 %v3455_v4 }
  0x64   :  { %2769 = vmatprep.subr.bf16.mxu0 %v3332_v5 }
  0x65   :  { %2706 = vmatpush3.bf16.msra.mxu1 %v3460_v6 }
  0x66   :  { %2711 = vmatprep.subr.bf16.mxu1 %v3332_v5 }
  0x67   :  { %2770 = vmatpush3.bf16.msra.mxu0 %v3460_v6 }
  0x68   :  { %2482 = vmatmul.mubr.msk.bf16.gmra.mrb[4].mxu1 %vm179_vm0, %v2908_v8  ;;  %2783 = vmatprep.subr.bf16.mxu0 %v3332_v5 }
  0x69   :  { %296 = vmatprep.mubr.bf16.mxu1 %v3331_v0 }
  0x70   :  { %2483 = vmatmul.mubr.msk.bf16.gmra.mrb[8].mxu1 %vm179_vm0, %v2909_v9 }
  0x71   :  { %306 = vmatprep.mubr.bf16.mxu1 %v3331_v0 }
  0x78   :  { %2484 = vmatmul.mubr.msk.bf16.gmra.mrb[12].mxu1 %vm179_vm0, %v2912_v10 }
  0x79   :  { %2707 = vmatprep.mubr.msk.bf16.mxu1 %vm3333_vm1, %v3332_v5 }
  0x80   :  { %2708 = vmatmul.mubr.bf16.vlgmr.msra.gmra.mrb[16].mxu1 %v3331_v0 }
  0x81   :  { %2712 = vmatpush3.bf16.msra.mxu1 %v3480_v11  ;;  %2715 = vmatprep.mubr.msk.bf16.mxu1 %vm3333_vm1, %v3332_v5 }
  0x82   :  { %2713 = vmatprep.subr.bf16.mxu1 %v3332_v5 }
  0x85   :  { %2714 = vmatpush3.bf16.msra.mxu1 %v3484_v12 }
  0x86   :  { %2719 = vmatprep.subr.bf16.mxu1 %v3332_v5 }
  0x88   :  { %2716 = vmatmul.mubr.bf16.vlgmr.msra.gmra.mrb[20].mxu1 %v3331_v0 }
  0x89   :  { %2720 = vmatpush3.bf16.msra.mxu1 %v3455_v4  ;;  %2723 = vmatprep.mubr.msk.bf16.mxu1 %vm3333_vm1, %v3332_v5 }
  0x8a   :  { %2721 = vmatprep.subr.bf16.mxu1 %v3332_v5 }
  0x8d   :  { %2722 = vmatpush3.bf16.msra.mxu1 %v3460_v6 }
  0x8e   :  { %2727 = vmatprep.subr.bf16.mxu1 %v3332_v5 }
 0x133   :  { %v278_v19 = vpop.f32.mrb[0].mxu1  ;;  %v238_v26 = vpop.f32.mrb[0].mxu0 }
 0x134   :  { %v280_v21 = vpop.f32.mrb[1].mxu1  ;;  %v279_v23 = vadd.f32 %v278_v19, %v3501_v18  ;;  %v239_v29 = vadd.f32 %v238_v26, %v3501_v18  ;;  %v240_v30 = vpop.f32.mrb[1].mxu0 }
 0x135   :  { %v282_v22 = vpop.f32.mrb[2].mxu1  ;;  %v281_v27 = vadd.f32 %v280_v21, %v3503_v20  ;;  %v241_v32 = vadd.f32 %v240_v30, %v3503_v20  ;;  %v242_v33 = vpop.f32.mrb[2].mxu0 }
 0x136   :  { %v283_v24 = vadd.f32 %v282_v22, %v3501_v18  ;;  %v284_v25 = vpop.f32.mrb[3].mxu1  ;;  %v243_v35 = vadd.f32 %v242_v33, %v3501_v18  ;;  %v244_v36 = vpop.f32.mrb[3].mxu0 }
 0x137   :  { %v285_v28 = vadd.f32 %v284_v25, %v3503_v20  ;;  %v245_v37 = vadd.f32 %v244_v36, %v3503_v20 }
 0x138   :  { %v3510_v31 = vpack.c.bf16 %v283_v24, %v279_v23  ;;  %v317_v39 = vpack.c.bf16 %v243_v35, %v239_v29 }
 0x139   :  { %v3513_v34 = vpack.c.bf16 %v285_v28, %v281_v27  ;;  %v3517_v41 = vpack.c.bf16 %v245_v37, %v241_v32 }
 0x13a   :  { %v358_v10 = vunpack.c.l.bf16 %v317_v39  ;;  %v359_v16 = vunpack.c.h.bf16 %v317_v39 }
 0x13b   :  { %v288_v38 = vpop.f32.mrb[4].mxu1 }
 0x13c   :  { %v290_v40 = vpop.f32.mrb[5].mxu1  ;;  %v289_v43 = vadd.f32 %v288_v38, %v3501_v18 }
 0x13d   :  { %v292_v42 = vpop.f32.mrb[6].mxu1  ;;  %v291_v46 = vadd.f32 %v290_v40, %v3503_v20 }
 0x13e   :  { %v293_v44 = vadd.f32 %v292_v42, %v3501_v18  ;;  %v294_v45 = vpop.f32.mrb[7].mxu1 }
 0x13f   :  { %v295_v47 = vadd.f32 %v294_v45, %v3503_v20 }
 0x140   :  { %v3523_v48 = vpack.c.bf16 %v293_v44, %v289_v43 }
 0x141   :  { %v3525_v49 = vpack.c.bf16 %v295_v47, %v291_v46 }
 0x143   :  { %v298_v50 = vpop.f32.mrb[8].mxu1 }
 0x144   :  { %v300_v51 = vpop.f32.mrb[9].mxu1  ;;  %v299_v53 = vadd.f32 %v298_v50, %v3501_v18 }
 0x145   :  { %v302_v52 = vpop.f32.mrb[10].mxu1  ;;  %v301_v56 = vadd.f32 %v300_v51, %v3503_v20 }
 0x146   :  { %v303_v54 = vadd.f32 %v302_v52, %v3501_v18  ;;  %v304_v55 = vpop.f32.mrb[11].mxu1 }
 0x147   :  { %v305_v57 = vadd.f32 %v304_v55, %v3503_v20 }
 0x148   :  { %v3531_v58 = vpack.c.bf16 %v303_v54, %v299_v53 }
 0x149   :  { %v3533_v59 = vpack.c.bf16 %v305_v57, %v301_v56 }
 0x14b   :  { %v308_v60 = vpop.f32.mrb[12].mxu1 }
 0x14c   :  { %v310_v61 = vpop.f32.mrb[13].mxu1  ;;  %v309_v63 = vadd.f32 %v308_v60, %v3501_v18 }
 0x14d   :  { %v312_v62 = vpop.f32.mrb[14].mxu1  ;;  %v311_v3 = vadd.f32 %v310_v61, %v3503_v20 }
 0x14e   :  { %v313_v1 = vadd.f32 %v312_v62, %v3501_v18  ;;  %v314_v2 = vpop.f32.mrb[15].mxu1 }
 0x14f   :  { %v315_v7 = vadd.f32 %v314_v2, %v3503_v20 }
 0x150   :  { %v3539_v8 = vpack.c.bf16 %v313_v1, %v309_v63 }
 0x151   :  { %v332_v9 = vpack.c.bf16 %v315_v7, %v311_v3 }
 0x153   :  { %v410_v13 = vpop.f32.mrb[16].mxu1  ;;  %v421_v22 = vunpack.c.l.bf16 %v332_v9  ;;  %v422_v26 = vunpack.c.h.bf16 %v332_v9 }
 0x154   :  { %v417_v14 = vadd.f32 %v410_v13, %v358_v10  ;;  %v2709_v15 = vpop.f32.mrb[17].mxu1 }
 0x155   :  { %v413_v17 = vpop.f32.mrb[18].mxu1 }
 0x156   :  { %v418_v19 = vadd.f32 %v413_v17, %v359_v16  ;;  %v2710_v21 = vpop.f32.mrb[19].mxu1  ;;  %2922 = vtanh.f32 %v417_v14  ;;  %v2489_v36 = vmul.f32 -1.442695, %v417_v14 }
 0x158   :  { %2924 = vtanh.f32 %v418_v19  ;;  %v2490_v37 = vmul.f32 -1.442695, %v418_v19 }
 0x15b   :  { %v469_v23 = vpop.f32.mrb[20].mxu1 }
 0x15c   :  { %v476_v24 = vadd.f32 %v469_v23, %v421_v22  ;;  %v2717_v25 = vpop.f32.mrb[21].mxu1 }
 0x15d   :  { %v472_v27 = vpop.f32.mrb[22].mxu1 }
 0x15e   :  { %v477_v28 = vadd.f32 %v472_v27, %v422_v26  ;;  %v2718_v29 = vpop.f32.mrb[23].mxu1  ;;  %2926 = vtanh.f32 %v476_v24  ;;  %v2491_v38 = vmul.f32 -1.442695, %v476_v24  ;;  %v2915_v24 = vld [vmem:[#allocation6 + $0x8] sm:$0xff]  }
 0x15f   :  { %2478 = vmatmul.mubr.msk.bf16.gmra.mrb[4].mxu0 %vm179_vm0, %v2915_v24 }
 0x160   :  { %v2923_v30 = vpop.eup %2922  ;;  %2928 = vtanh.f32 %v477_v28  ;;  %v2492_v39 = vmul.f32 -1.442695, %v477_v28  ;;  %256 = vmatprep.mubr.bf16.mxu0 %v3331_v0 }
 0x161   :  { %496 = vrot.lane.b32.xlu0 %v2923_v30, %s3327_s28  ;;  %2930 = vpow2.f32 %v2489_v36 }
 0x162   :  { %v2925_v32 = vpop.eup %2924  ;;  %2932 = vpow2.f32 %v2490_v37 }
 0x163   :  { %2934 = vpow2.f32 %v2491_v38 }
 0x164   :  { %2936 = vpow2.f32 %v2492_v39 }
 0x165   :  { %498 = vrot.lane.b32.xlu0 %v2925_v32, %s3327_s28 }
 0x168   :  { %v2927_v33 = vpop.eup %2926 }
 0x169   :  { %544 = vrot.lane.b32.xlu1 %v2927_v33, %s3327_s28 }
 0x16a   :  { %v2929_v35 = vpop.eup %2928 }
 0x16b   :  { %v2931_v40 = vpop.eup %2930 }
 0x16c   :  { %v484_v42 = vadd.f32 1.0, %v2931_v40  ;;  %v2933_v43 = vpop.eup %2932 }
 0x16d   :  { %546 = vrot.lane.b32.xlu1 %v2929_v35, %s3327_s28  ;;  %v485_v44 = vadd.f32 1.0, %v2933_v43  ;;  %v2935_v45 = vpop.eup %2934 }
 0x16e   :  { %2938 = vrcp.f32 %v484_v42  ;;  %v532_v46 = vadd.f32 1.0, %v2935_v45  ;;  %v2937_v47 = vpop.eup %2936 }
 0x16f   :  { %2940 = vrcp.f32 %v485_v44  ;;  %v533_v50 = vadd.f32 1.0, %v2937_v47 }
 0x170   :  { %2942 = vrcp.f32 %v532_v46 }
 0x171   :  { %2944 = vrcp.f32 %v533_v50 }
 0x178   :  { %v2939_v51 = vpop.eup %2938 }
 0x179   :  { %v2941_v54 = vpop.eup %2940  ;;  %v492_v2 = vmul.f32 0.0, %v2939_v51 }
 0x17a   :  { %v2943_v57 = vpop.eup %2942  ;;  %v493_v9 = vmul.f32 0.0, %v2941_v54 }
 0x17b   :  { %v2945_v62 = vpop.eup %2944  ;;  %v540_v14 = vmul.f32 0.0, %v2943_v57 }
 0x17c   :  { %v541_v17 = vmul.f32 0.0, %v2945_v62 }
 0x1d3   :  { %v497_v52 = vpop.permute.xlu0 %496 }
 0x1d4   :  { %v502_v53 = vmul.f32 %v2939_v51, %v497_v52 }
 0x1d6   :  { %506 = vrot.lane.b32.xlu0 %v502_v53, %s3334_s2 }
 0x1d7   :  { %v499_v55 = vpop.permute.xlu0 %498 }
 0x1d8   :  { %v503_v56 = vmul.f32 %v2941_v54, %v499_v55 }
 0x1da   :  { %508 = vrot.lane.b32.xlu1 %v503_v56, %s3334_s2 }
 0x1db   :  { %v545_v60 = vpop.permute.xlu1 %544 }
 0x1dc   :  { %v550_v61 = vmul.f32 %v2943_v57, %v545_v60 }
 0x1de   :  { %554 = vrot.lane.b32.xlu0 %v550_v61, %s3334_s2 }
 0x1df   :  { %v547_v63 = vpop.permute.xlu1 %546 }
 0x1e0   :  { %v551_v1 = vmul.f32 %v2945_v62, %v547_v63 }
 0x1e2   :  { %556 = vrot.lane.b32.xlu1 %v551_v1, %s3334_s2  ;;  %v639_v1 = vunpack.c.l.bf16 %v3533_v59 }
 0x232   :  { %v248_v39 = vpop.f32.mrb[4].mxu0 }
 0x233   :  { %v249_v40 = vadd.f32 %v248_v39, %v3501_v18  ;;  %v250_v42 = vpop.f32.mrb[5].mxu0 }
 0x234   :  { %v251_v43 = vadd.f32 %v250_v42, %v3503_v20  ;;  %v252_v44 = vpop.f32.mrb[6].mxu0 }
 0x235   :  { %v253_v45 = vadd.f32 %v252_v44, %v3501_v18  ;;  %v254_v46 = vpop.f32.mrb[7].mxu0 }
 0x236   :  { %v255_v47 = vadd.f32 %v254_v46, %v3503_v20 }
 0x237   :  { %v319_v50 = vpack.c.bf16 %v253_v45, %v249_v40 }
 0x239   :  { %v590_v60 = vunpack.c.h.bf16 %v319_v50 }
 0x248   :  { %v507_v3 = vpop.permute.xlu0 %506 }
 0x249   :  { %v3549_v7 = vadd.f32 %v507_v3, %v492_v2 }
 0x24b   :  { %2946 = vtanh.f32 %v3549_v7 }
 0x24c   :  { %v509_v10 = vpop.permute.xlu1 %508 }
 0x24d   :  { %v3552_v13 = vadd.f32 %v509_v10, %v493_v9  ;;  %v640_v10 = vunpack.c.h.bf16 %v3533_v59 }
 0x24f   :  { %2948 = vtanh.f32 %v3552_v13 }
 0x250   :  { %v555_v15 = vpop.permute.xlu0 %554 }
 0x251   :  { %v3555_v16 = vadd.f32 %v555_v15, %v540_v14 }
 0x253   :  { %2950 = vtanh.f32 %v3555_v16 }
 0x254   :  { %v557_v19 = vpop.permute.xlu1 %556 }
 0x255   :  { %v2947_v21 = vpop.eup %2946  ;;  %v3558_v22 = vadd.f32 %v557_v19, %v541_v17 }
 0x256   :  { %518 = vrot.lane.b32.xlu0 %v2947_v21, %s3327_s28 }
 0x257   :  { %2952 = vtanh.f32 %v3558_v22 }
 0x259   :  { %v2949_v23 = vpop.eup %2948 }
 0x25a   :  { %520 = vrot.lane.b32.xlu1 %v2949_v23, %s3327_s28 }
 0x25d   :  { %v2951_v25 = vpop.eup %2950 }
 0x25e   :  { %566 = vrot.lane.b32.xlu0 %v2951_v25, %s3327_s28 }
 0x261   :  { %v2953_v26 = vpop.eup %2952 }
 0x262   :  { %568 = vrot.lane.b32.xlu1 %v2953_v26, %s3327_s28 }
 0x2c8   :  { %v519_v27 = vpop.permute.xlu0 %518 }
 0x2c9   :  { %v524_v29 = vmul.f32 %v2939_v51, %v519_v27  ;;  %v3573_v51 = vpack.c.bf16 %v255_v47, %v251_v43 }
 0x2cc   :  { %v521_v28 = vpop.permute.xlu1 %520 }
 0x2cd   :  { %v525_v30 = vmul.f32 %v2941_v54, %v521_v28  ;;  %v589_v54 = vunpack.c.l.bf16 %v319_v50 }
 0x2cf   :  { %v574_v32 = vpack.c.bf16 %v525_v30, %v524_v29 }
 0x2d0   :  { %v567_v33 = vpop.permute.xlu0 %566 }
 0x2d1   :  { %576 = vrot.lane.b32.xlu0 %v574_v32, %s3334_s2  ;;  %v572_v36 = vmul.f32 %v2943_v57, %v567_v33 }
 0x2d4   :  { %v569_v35 = vpop.permute.xlu1 %568 }
 0x2d5   :  { %v573_v37 = vmul.f32 %v2945_v62, %v569_v35 }
 0x2d7   :  { %v580_v38 = vpack.c.bf16 %v573_v37, %v572_v36 }
 0x2d9   :  { %582 = vrot.lane.b32.xlu1 %v580_v38, %s3334_s2 }
 0x343   :  { %v577_v52 = vpop.permute.xlu0 %576 }
 0x344   :  { %579 = vst.msk [vmem:[#allocation4] sm:$0xff] %vm372_vm2, %v577_v52  ;;  %2724 = vmatmul.mubr.msk.bf16.vlgmr.msra.gmra.mrb[24].mxu1 %vm372_vm2, %v577_v52 }
 0x345   :  { %2728 = vmatpush3.bf16.msra.mxu1 %v3480_v11  ;;  %2731 = vmatprep.mubr.msk.bf16.mxu1 %vm3333_vm1, %v3332_v5 }
 0x346   :  { %2729 = vmatprep.subr.bf16.mxu1 %v3332_v5 }
 0x349   :  { %2730 = vmatpush3.bf16.msra.mxu1 %v3484_v12 }
 0x34a   :  { %2735 = vmatprep.subr.bf16.mxu1 %v3332_v5 }
 0x34b   :  { %v583_v53 = vpop.permute.xlu1 %582 }
 0x34c   :  { %586 = vst.msk [vmem:[#allocation5 + $0x38] sm:$0xff] %vm372_vm2, %v583_v53  ;;  %2732 = vmatmul.mubr.msk.bf16.vlgmr.msra.gmra.mrb[28].mxu1 %vm372_vm2, %v583_v53 }
 0x34d   :  { %2736 = vmatpush3.bf16.msra.mxu1 %v3455_v4  ;;  %2739 = vmatprep.mubr.msk.bf16.mxu1 %vm3333_vm1, %v3332_v5 }
 0x34e   :  { %2737 = vmatprep.subr.bf16.mxu1 %v3332_v5 }
 0x351   :  { %2738 = vmatpush3.bf16.msra.mxu1 %v3460_v6 }
 0x352   :  { %2743 = vmatprep.subr.bf16.mxu1 %v3332_v5 }
 0x417   :  { %v628_v55 = vpop.f32.mrb[24].mxu1 }
 0x418   :  { %v635_v56 = vadd.f32 %v628_v55, %v589_v54  ;;  %v2725_v57 = vpop.f32.mrb[25].mxu1 }
 0x419   :  { %v631_v61 = vpop.f32.mrb[26].mxu1 }
 0x41a   :  { %2954 = vtanh.f32 %v635_v56  ;;  %v636_v62 = vadd.f32 %v631_v61, %v590_v60  ;;  %v2726_v63 = vpop.f32.mrb[27].mxu1  ;;  %v2495_v25 = vmul.f32 -1.442695, %v635_v56 }
 0x41c   :  { %2956 = vtanh.f32 %v636_v62  ;;  %v2496_v26 = vmul.f32 -1.442695, %v636_v62 }
 0x41f   :  { %v678_v2 = vpop.f32.mrb[28].mxu1 }
 0x420   :  { %v685_v3 = vadd.f32 %v678_v2, %v639_v1  ;;  %v2733_v9 = vpop.f32.mrb[29].mxu1 }
 0x421   :  { %v681_v14 = vpop.f32.mrb[30].mxu1 }
 0x422   :  { %2958 = vtanh.f32 %v685_v3  ;;  %v686_v15 = vadd.f32 %v681_v14, %v640_v10  ;;  %v2734_v17 = vpop.f32.mrb[31].mxu1  ;;  %v2497_v59 = vmul.f32 -1.442695, %v685_v3  ;;  %v2916_v10 = vld [vmem:[#allocation6 + $0x10] sm:$0xff]  }
 0x423   :  { %2479 = vmatmul.mubr.msk.bf16.gmra.mrb[8].mxu0 %vm179_vm0, %v2916_v10 }
 0x424   :  { %v2955_v19 = vpop.eup %2954  ;;  %2960 = vtanh.f32 %v686_v15  ;;  %v2498_v27 = vmul.f32 -1.442695, %v686_v15  ;;  %266 = vmatprep.mubr.bf16.mxu0 %v3331_v0 }
 0x425   :  { %705 = vrot.lane.b32.xlu0 %v2955_v19, %s3327_s28  ;;  %2962 = vpow2.f32 %v2495_v25 }
 0x426   :  { %v2957_v21 = vpop.eup %2956  ;;  %2964 = vpow2.f32 %v2496_v26 }
 0x427   :  { %707 = vrot.lane.b32.xlu1 %v2957_v21, %s3327_s28  ;;  %2966 = vpow2.f32 %v2497_v59 }
 0x428   :  { %2968 = vpow2.f32 %v2498_v27 }
 0x42c   :  { %v2959_v23 = vpop.eup %2958 }
 0x42d   :  { %753 = vrot.lane.b32.xlu0 %v2959_v23, %s3327_s28 }
 0x42e   :  { %v2961_v24 = vpop.eup %2960 }
 0x42f   :  { %755 = vrot.lane.b32.xlu1 %v2961_v24, %s3327_s28  ;;  %v2963_v28 = vpop.eup %2962 }
 0x430   :  { %v2965_v29 = vpop.eup %2964  ;;  %v693_v30 = vadd.f32 1.0, %v2963_v28 }
 0x431   :  { %v694_v32 = vadd.f32 1.0, %v2965_v29  ;;  %v2967_v33 = vpop.eup %2966 }
 0x432   :  { %2970 = vrcp.f32 %v693_v30  ;;  %v2969_v35 = vpop.eup %2968  ;;  %v741_v36 = vadd.f32 1.0, %v2967_v33 }
 0x433   :  { %2972 = vrcp.f32 %v694_v32  ;;  %v742_v37 = vadd.f32 1.0, %v2969_v35 }
 0x434   :  { %2974 = vrcp.f32 %v741_v36 }
 0x435   :  { %2976 = vrcp.f32 %v742_v37 }
 0x43c   :  { %v2971_v38 = vpop.eup %2970 }
 0x43d   :  { %v2973_v42 = vpop.eup %2972  ;;  %v701_v54 = vmul.f32 %v2971_v38, %v3549_v7 }
 0x43e   :  { %v2975_v45 = vpop.eup %2974  ;;  %v702_v57 = vmul.f32 %v2973_v42, %v3552_v13 }
 0x43f   :  { %v2977_v50 = vpop.eup %2976  ;;  %v749_v62 = vmul.f32 %v2975_v45, %v3555_v16 }
 0x440   :  { %v750_v2 = vmul.f32 %v2977_v50, %v3558_v22 }
 0x497   :  { %v706_v39 = vpop.permute.xlu0 %705 }
 0x498   :  { %v711_v40 = vmul.f32 %v2971_v38, %v706_v39 }
 0x499   :  { %v708_v43 = vpop.permute.xlu1 %707 }
 0x49a   :  { %715 = vrot.lane.b32.xlu0 %v711_v40, %s3334_s2  ;;  %v712_v44 = vmul.f32 %v2973_v42, %v708_v43 }
 0x49c   :  { %717 = vrot.lane.b32.xlu1 %v712_v44, %s3334_s2 }
 0x49f   :  { %v754_v46 = vpop.permute.xlu0 %753 }
 0x4a0   :  { %v759_v47 = vmul.f32 %v2975_v45, %v754_v46 }
 0x4a1   :  { %v756_v52 = vpop.permute.xlu1 %755 }
 0x4a2   :  { %763 = vrot.lane.b32.xlu0 %v759_v47, %s3334_s2  ;;  %v760_v53 = vmul.f32 %v2977_v50, %v756_v52 }
 0x4a4   :  { %765 = vrot.lane.b32.xlu1 %v760_v53, %s3334_s2 }
 0x4f6   :  { %v258_v0 = vpop.f32.mrb[8].mxu0 }
 0x4f7   :  { %v259_v27 = vadd.f32 %v258_v0, %v3501_v18  ;;  %v260_v28 = vpop.f32.mrb[9].mxu0 }
 0x4f8   :  { %v261_v29 = vadd.f32 %v260_v28, %v3503_v20  ;;  %v262_v30 = vpop.f32.mrb[10].mxu0 }
 0x4f9   :  { %v263_v32 = vadd.f32 %v262_v30, %v3501_v18  ;;  %v264_v33 = vpop.f32.mrb[11].mxu0 }
 0x4fa   :  { %v265_v35 = vadd.f32 %v264_v33, %v3503_v20 }
 0x4fb   :  { %v321_v36 = vpack.c.bf16 %v263_v32, %v259_v27 }
 0x4fc   :  { %v3629_v37 = vpack.c.bf16 %v265_v35, %v261_v29 }
 0x4fd   :  { %v799_v40 = vunpack.c.l.bf16 %v321_v36 }
 0x50c   :  { %v716_v55 = vpop.permute.xlu0 %715 }
 0x50d   :  { %v3602_v56 = vadd.f32 %v716_v55, %v701_v54  ;;  %v850_v55 = vunpack.c.h.bf16 %v3525_v49 }
 0x50e   :  { %v718_v60 = vpop.permute.xlu1 %717 }
 0x50f   :  { %2978 = vtanh.f32 %v3602_v56  ;;  %v3606_v61 = vadd.f32 %v718_v60, %v702_v57 }
 0x511   :  { %2980 = vtanh.f32 %v3606_v61 }
 0x514   :  { %v764_v63 = vpop.permute.xlu0 %763 }
 0x515   :  { %v3610_v1 = vadd.f32 %v764_v63, %v749_v62 }
 0x516   :  { %v766_v7 = vpop.permute.xlu1 %765 }
 0x517   :  { %2982 = vtanh.f32 %v3610_v1  ;;  %v3614_v3 = vadd.f32 %v766_v7, %v750_v2 }
 0x519   :  { %v2979_v13 = vpop.eup %2978  ;;  %2984 = vtanh.f32 %v3614_v3 }
 0x51a   :  { %727 = vrot.lane.b32.xlu0 %v2979_v13, %s3327_s28 }
 0x51b   :  { %v2981_v9 = vpop.eup %2980 }
 0x51c   :  { %729 = vrot.lane.b32.xlu1 %v2981_v9, %s3327_s28 }
 0x521   :  { %v2983_v16 = vpop.eup %2982 }
 0x522   :  { %775 = vrot.lane.b32.xlu0 %v2983_v16, %s3327_s28 }
 0x523   :  { %v2985_v22 = vpop.eup %2984 }
 0x524   :  { %777 = vrot.lane.b32.xlu1 %v2985_v22, %s3327_s28 }
 0x58c   :  { %v728_v14 = vpop.permute.xlu0 %727 }
 0x58d   :  { %v733_v17 = vmul.f32 %v2971_v38, %v728_v14 }
 0x58e   :  { %v730_v15 = vpop.permute.xlu1 %729 }
 0x58f   :  { %v734_v19 = vmul.f32 %v2973_v42, %v730_v15 }
 0x591   :  { %v783_v21 = vpack.c.bf16 %v734_v19, %v733_v17 }
 0x593   :  { %785 = vrot.lane.b32.xlu0 %v783_v21, %s3334_s2 }
 0x594   :  { %v776_v23 = vpop.permute.xlu0 %775 }
 0x595   :  { %v781_v25 = vmul.f32 %v2975_v45, %v776_v23  ;;  %v800_v45 = vunpack.c.h.bf16 %v321_v36 }
 0x596   :  { %v778_v24 = vpop.permute.xlu1 %777 }
 0x597   :  { %v782_v26 = vmul.f32 %v2977_v50, %v778_v24 }
 0x599   :  { %v790_v59 = vpack.c.bf16 %v782_v26, %v781_v25 }
 0x59b   :  { %792 = vrot.lane.b32.xlu1 %v790_v59, %s3334_s2 }
 0x605   :  { %v786_v38 = vpop.permute.xlu0 %785 }
 0x606   :  { %789 = vst.msk [vmem:[#allocation4 + $0x8] sm:$0xff] %vm372_vm2, %v786_v38  ;;  %2740 = vmatmul.mubr.msk.bf16.vlgmr.msra.gmra.mrb[32].mxu1 %vm372_vm2, %v786_v38 }
 0x607   :  { %2744 = vmatpush3.bf16.msra.mxu1 %v3480_v11  ;;  %2747 = vmatprep.mubr.msk.bf16.mxu1 %vm3333_vm1, %v3332_v5 }
 0x608   :  { %2745 = vmatprep.subr.bf16.mxu1 %v3332_v5 }
 0x60b   :  { %2746 = vmatpush3.bf16.msra.mxu1 %v3484_v12 }
 0x60c   :  { %2751 = vmatprep.subr.bf16.mxu1 %v3332_v5 }
 0x60d   :  { %v793_v39 = vpop.permute.xlu1 %792 }
 0x60e   :  { %796 = vst.msk [vmem:[#allocation5 + $0x30] sm:$0xff] %vm372_vm2, %v793_v39  ;;  %2748 = vmatmul.mubr.msk.bf16.vlgmr.msra.gmra.mrb[36].mxu1 %vm372_vm2, %v793_v39 }
 0x60f   :  { %2752 = vmatpush3.bf16.msra.mxu1 %v3455_v4  ;;  %2755 = vmatprep.mubr.msk.bf16.mxu1 %vm3333_vm1, %v3332_v5  ;;  %v849_v4 = vunpack.c.l.bf16 %v3525_v49 }
 0x610   :  { %2753 = vmatprep.subr.bf16.mxu1 %v3332_v5 }
 0x613   :  { %2754 = vmatpush3.bf16.msra.mxu1 %v3460_v6 }
 0x614   :  { %2759 = vmatprep.subr.bf16.mxu1 %v3332_v5 }
 0x6d9   :  { %v838_v42 = vpop.f32.mrb[32].mxu1 }
 0x6da   :  { %v845_v43 = vadd.f32 %v838_v42, %v799_v40  ;;  %v2741_v44 = vpop.f32.mrb[33].mxu1 }
 0x6db   :  { %v841_v46 = vpop.f32.mrb[34].mxu1 }
 0x6dc   :  { %2986 = vtanh.f32 %v845_v43  ;;  %v846_v47 = vadd.f32 %v841_v46, %v800_v45  ;;  %v2742_v50 = vpop.f32.mrb[35].mxu1  ;;  %v2501_v13 = vmul.f32 -1.442695, %v845_v43 }
 0x6de   :  { %2988 = vtanh.f32 %v846_v47  ;;  %v2502_v9 = vmul.f32 -1.442695, %v846_v47 }
 0x6e1   :  { %v888_v52 = vpop.f32.mrb[36].mxu1 }
 0x6e2   :  { %v895_v53 = vadd.f32 %v888_v52, %v849_v4  ;;  %v2749_v54 = vpop.f32.mrb[37].mxu1  ;;  %v2917_v52 = vld [vmem:[#allocation6 + $0x18] sm:$0xff]  }
 0x6e3   :  { %v891_v6 = vpop.f32.mrb[38].mxu1  ;;  %2480 = vmatmul.mubr.msk.bf16.gmra.mrb[12].mxu0 %vm179_vm0, %v2917_v52 }
 0x6e4   :  { %2990 = vtanh.f32 %v895_v53  ;;  %v896_v57 = vadd.f32 %v891_v6, %v850_v55  ;;  %v2750_v60 = vpop.f32.mrb[39].mxu1  ;;  %v2503_v49 = vmul.f32 -1.442695, %v895_v53  ;;  %2771 = vmatprep.mubr.msk.bf16.mxu0 %vm3333_vm1, %v3332_v5 }
 0x6e6   :  { %v2987_v62 = vpop.eup %2986  ;;  %2992 = vtanh.f32 %v896_v57  ;;  %v2504_v10 = vmul.f32 -1.442695, %v896_v57 }
 0x6e7   :  { %915 = vrot.lane.b32.xlu0 %v2987_v62, %s3327_s28  ;;  %2994 = vpow2.f32 %v2501_v13 }
 0x6e8   :  { %v2989_v63 = vpop.eup %2988  ;;  %2996 = vpow2.f32 %v2502_v9 }
 0x6e9   :  { %917 = vrot.lane.b32.xlu1 %v2989_v63, %s3327_s28  ;;  %2998 = vpow2.f32 %v2503_v49 }
 0x6ea   :  { %3000 = vpow2.f32 %v2504_v10 }
 0x6ee   :  { %v2991_v2 = vpop.eup %2990 }
 0x6ef   :  { %963 = vrot.lane.b32.xlu0 %v2991_v2, %s3327_s28 }
 0x6f0   :  { %v2993_v7 = vpop.eup %2992 }
 0x6f1   :  { %965 = vrot.lane.b32.xlu1 %v2993_v7, %s3327_s28  ;;  %v2995_v16 = vpop.eup %2994 }
 0x6f2   :  { %v2997_v22 = vpop.eup %2996  ;;  %v903_v14 = vadd.f32 1.0, %v2995_v16 }
 0x6f3   :  { %v904_v15 = vadd.f32 1.0, %v2997_v22  ;;  %v2999_v17 = vpop.eup %2998 }
 0x6f4   :  { %3002 = vrcp.f32 %v903_v14  ;;  %v3001_v19 = vpop.eup %3000  ;;  %v951_v21 = vadd.f32 1.0, %v2999_v17 }
 0x6f5   :  { %3004 = vrcp.f32 %v904_v15  ;;  %v952_v23 = vadd.f32 1.0, %v3001_v19 }
 0x6f6   :  { %3006 = vrcp.f32 %v951_v21 }
 0x6f7   :  { %3008 = vrcp.f32 %v952_v23 }
 0x6fe   :  { %v3003_v24 = vpop.eup %3002 }
 0x6ff   :  { %v3005_v59 = vpop.eup %3004  ;;  %v911_v36 = vmul.f32 %v3003_v24, %v3602_v56 }
 0x700   :  { %v3007_v28 = vpop.eup %3006  ;;  %v912_v40 = vmul.f32 %v3005_v59, %v3606_v61 }
 0x701   :  { %v3009_v32 = vpop.eup %3008  ;;  %v959_v44 = vmul.f32 %v3007_v28, %v3610_v1 }
 0x702   :  { %v960_v47 = vmul.f32 %v3009_v32, %v3614_v3 }
 0x759   :  { %v916_v25 = vpop.permute.xlu0 %915 }
 0x75a   :  { %v921_v26 = vmul.f32 %v3003_v24, %v916_v25 }
 0x75b   :  { %v918_v0 = vpop.permute.xlu1 %917 }
 0x75c   :  { %925 = vrot.lane.b32.xlu0 %v921_v26, %s3334_s2  ;;  %v922_v27 = vmul.f32 %v3005_v59, %v918_v0 }
 0x75e   :  { %927 = vrot.lane.b32.xlu1 %v922_v27, %s3334_s2 }
 0x761   :  { %v964_v29 = vpop.permute.xlu0 %963 }
 0x762   :  { %v969_v30 = vmul.f32 %v3007_v28, %v964_v29 }
 0x763   :  { %v966_v33 = vpop.permute.xlu1 %965 }
 0x764   :  { %973 = vrot.lane.b32.xlu0 %v969_v30, %s3334_s2  ;;  %v970_v35 = vmul.f32 %v3009_v32, %v966_v33 }
 0x766   :  { %975 = vrot.lane.b32.xlu1 %v970_v35, %s3334_s2 }
 0x7b6   :  { %v268_v13 = vpop.f32.mrb[12].mxu0 }
 0x7b7   :  { %v269_v9 = vadd.f32 %v268_v13, %v3501_v18  ;;  %v270_v49 = vpop.f32.mrb[13].mxu0 }
 0x7b8   :  { %v272_v10 = vpop.f32.mrb[14].mxu0 }
 0x7b9   :  { %v273_v16 = vadd.f32 %v272_v10, %v3501_v18  ;;  %v271_v18 = vadd.f32 %v270_v49, %v3503_v20  ;;  %v274_v17 = vpop.f32.mrb[15].mxu0 }
 0x7ba   :  { %v275_v19 = vadd.f32 %v274_v17, %v3503_v20 }
 0x7bb   :  { %v323_v22 = vpack.c.bf16 %v273_v16, %v269_v9 }
 0x7bc   :  { %v3702_v21 = vpack.c.bf16 %v275_v19, %v271_v18 }
 0x7bd   :  { %v1009_v23 = vunpack.c.l.bf16 %v323_v22 }
 0x7ce   :  { %v926_v38 = vpop.permute.xlu0 %925 }
 0x7cf   :  { %v3658_v39 = vadd.f32 %v926_v38, %v911_v36 }
 0x7d0   :  { %v928_v42 = vpop.permute.xlu1 %927 }
 0x7d1   :  { %3010 = vtanh.f32 %v3658_v39  ;;  %v3662_v43 = vadd.f32 %v928_v42, %v912_v40 }
 0x7d3   :  { %3012 = vtanh.f32 %v3662_v43 }
 0x7d6   :  { %v974_v45 = vpop.permute.xlu0 %973 }
 0x7d7   :  { %v3666_v46 = vadd.f32 %v974_v45, %v959_v44 }
 0x7d8   :  { %v976_v56 = vpop.permute.xlu1 %975 }
 0x7d9   :  { %3014 = vtanh.f32 %v3666_v46  ;;  %v3670_v50 = vadd.f32 %v976_v56, %v960_v47 }
 0x7db   :  { %v3011_v61 = vpop.eup %3010  ;;  %3016 = vtanh.f32 %v3670_v50 }
 0x7dc   :  { %937 = vrot.lane.b32.xlu0 %v3011_v61, %s3327_s28 }
 0x7dd   :  { %v3013_v4 = vpop.eup %3012 }
 0x7de   :  { %939 = vrot.lane.b32.xlu1 %v3013_v4, %s3327_s28 }
 0x7e3   :  { %v3015_v1 = vpop.eup %3014 }
 0x7e4   :  { %985 = vrot.lane.b32.xlu0 %v3015_v1, %s3327_s28 }
 0x7e5   :  { %v3017_v3 = vpop.eup %3016 }
 0x7e6   :  { %987 = vrot.lane.b32.xlu1 %v3017_v3, %s3327_s28 }
 0x84e   :  { %v938_v53 = vpop.permute.xlu0 %937 }
 0x84f   :  { %v943_v55 = vmul.f32 %v3003_v24, %v938_v53  ;;  %v1010_v24 = vunpack.c.h.bf16 %v323_v22 }
 0x850   :  { %v940_v54 = vpop.permute.xlu1 %939 }
 0x851   :  { %v944_v6 = vmul.f32 %v3005_v59, %v940_v54 }
 0x853   :  { %v993_v57 = vpack.c.bf16 %v944_v6, %v943_v55 }
 0x855   :  { %995 = vrot.lane.b32.xlu0 %v993_v57, %s3334_s2 }
 0x856   :  { %v986_v60 = vpop.permute.xlu0 %985 }
 0x857   :  { %v991_v63 = vmul.f32 %v3007_v28, %v986_v60  ;;  %v1059_v28 = vunpack.c.l.bf16 %v3513_v34 }
 0x858   :  { %v988_v62 = vpop.permute.xlu1 %987 }
 0x859   :  { %v992_v2 = vmul.f32 %v3009_v32, %v988_v62  ;;  %v1060_v32 = vunpack.c.h.bf16 %v3513_v34 }
 0x85b   :  { %v1000_v7 = vpack.c.bf16 %v992_v2, %v991_v63 }
 0x85d   :  { %1002 = vrot.lane.b32.xlu1 %v1000_v7, %s3334_s2 }
 0x8c7   :  { %v996_v14 = vpop.permute.xlu0 %995 }
 0x8c8   :  { %999 = vst.msk [vmem:[#allocation4 + $0x10] sm:$0xff] %vm372_vm2, %v996_v14  ;;  %2756 = vmatmul.mubr.msk.bf16.vlgmr.msra.gmra.mrb[40].mxu1 %vm372_vm2, %v996_v14 }
 0x8c9   :  { %2760 = vmatpush3.bf16.msra.mxu1 %v3480_v11  ;;  %2763 = vmatprep.mubr.msk.bf16.mxu1 %vm3333_vm1, %v3332_v5 }
 0x8ca   :  { %2761 = vmatprep.subr.bf16.mxu1 %v3332_v5 }
 0x8cd   :  { %2762 = vmatpush3.bf16.msra.mxu1 %v3484_v12 }
 0x8ce   :  { %2775 = vmatprep.subr.bf16.mxu1 %v3332_v5 }
 0x8cf   :  { %v1003_v15 = vpop.permute.xlu1 %1002 }
 0x8d0   :  { %1006 = vst.msk [vmem:[#allocation5 + $0x28] sm:$0xff] %vm372_vm2, %v1003_v15  ;;  %2764 = vmatmul.mubr.msk.bf16.vlgmr.msra.gmra.mrb[44].mxu1 %vm372_vm2, %v1003_v15 }
 0x8d1   :  { %2776 = vmatpush3.bf16.msra.mxu1 %v3480_v11  ;;  %2779 = vmatprep.mubr.msk.bf16.mxu1 %vm3333_vm1, %v3332_v5 }
 0x8d2   :  { %2777 = vmatprep.subr.bf16.mxu1 %v3332_v5 }
 0x8d5   :  { %2778 = vmatpush3.bf16.msra.mxu1 %v3484_v12 }
 0x8d6   :  { %2791 = vmatprep.subr.bf16.mxu1 %v3332_v5 }
 0x99b   :  { %v1048_v25 = vpop.f32.mrb[40].mxu1 }
 0x99c   :  { %v1055_v11 = vadd.f32 %v1048_v25, %v1009_v23  ;;  %v2757_v26 = vpop.f32.mrb[41].mxu1 }
 0x99d   :  { %v1051_v59 = vpop.f32.mrb[42].mxu1 }
 0x99e   :  { %v1056_v0 = vadd.f32 %v1051_v59, %v1010_v24  ;;  %v2758_v27 = vpop.f32.mrb[43].mxu1  ;;  %v2507_v45 = vmul.f32 -1.442695, %v1055_v11 }
 0x9a0   :  { %v2508_v47 = vmul.f32 -1.442695, %v1056_v0 }
 0x9a3   :  { %v1098_v12 = vpop.f32.mrb[44].mxu1 }
 0x9a4   :  { %v1105_v29 = vadd.f32 %v1098_v12, %v1059_v28  ;;  %v2765_v30 = vpop.f32.mrb[45].mxu1 }
 0x9a5   :  { %v1101_v33 = vpop.f32.mrb[46].mxu1 }
 0x9a6   :  { %3018 = vtanh.f32 %v1105_v29  ;;  %v1106_v20 = vadd.f32 %v1101_v33, %v1060_v32  ;;  %v2766_v35 = vpop.f32.mrb[47].mxu1  ;;  %v2509_v34 = vmul.f32 -1.442695, %v1105_v29 }
 0x9a8   :  { %3020 = vtanh.f32 %v1106_v20  ;;  %v2510_v44 = vmul.f32 -1.442695, %v1106_v20 }
 0x9a9   :  { %3022 = vtanh.f32 %v1055_v11 }
 0x9aa   :  { %3024 = vtanh.f32 %v1056_v0 }
 0x9ab   :  { %3026 = vpow2.f32 %v2509_v34  ;;  %v3756_v34 = vld [vmem:[#allocation11 + $0x8] sm:$0xff]  }
 0x9ac   :  { %3028 = vpow2.f32 %v2510_v44  ;;  %v1269_v44 = vunpack.c.l.bf16 %v3702_v21 }
 0x9ad   :  { %3030 = vpow2.f32 %v2507_v45 }
 0x9ae   :  { %3032 = vpow2.f32 %v2508_v47 }
 0x9b0   :  { %v3019_v36 = vpop.eup %3018 }
 0x9b1   :  { %1173 = vrot.lane.b32.xlu0 %v3019_v36, %s3327_s28  ;;  %v3738_v36 = vld [vmem:[#allocation12] sm:$0xff]  }
 0x9b2   :  { %v3021_v38 = vpop.eup %3020 }
 0x9b3   :  { %v3023_v40 = vpop.eup %3022  ;;  %1175 = vrot.lane.b32.xlu1 %v3021_v38, %s3327_s28 }
 0x9b4   :  { %v3025_v42 = vpop.eup %3024 }
 0x9b5   :  { %1125 = vrot.lane.b32.xlu0 %v3023_v40, %s3327_s28  ;;  %v3027_v56 = vpop.eup %3026  ;;  %v3746_v40 = vld [vmem:[#allocation11] sm:$0xff]  }
 0x9b6   :  { %v3029_v61 = vpop.eup %3028  ;;  %v1161_v4 = vadd.f32 1.0, %v3027_v56 }
 0x9b7   :  { %1127 = vrot.lane.b32.xlu1 %v3025_v42, %s3327_s28  ;;  %v3031_v52 = vpop.eup %3030  ;;  %v1162_v1 = vadd.f32 1.0, %v3029_v61  ;;  %v3749_v42 = vld [vmem:[#allocation12 + $0x8] sm:$0xff]   ;;  %v1270_v61 = vunpack.c.h.bf16 %v3702_v21 }
 0x9b8   :  { %v3033_v3 = vpop.eup %3032  ;;  %v1113_v53 = vadd.f32 1.0, %v3031_v52  ;;  %3034 = vrcp.f32 %v1161_v4 }
 0x9b9   :  { %v1114_v54 = vadd.f32 1.0, %v3033_v3  ;;  %3036 = vrcp.f32 %v1162_v1  ;;  %v1219_v3 = vunpack.c.l.bf16 %v3510_v31 }
 0x9ba   :  { %3038 = vrcp.f32 %v1113_v53 }
 0x9bb   :  { %3040 = vrcp.f32 %v1114_v54 }
 0x9c2   :  { %v3035_v55 = vpop.eup %3034 }
 0x9c3   :  { %v3037_v60 = vpop.eup %3036  ;;  %v1169_v16 = vmul.f32 %v3035_v55, %v3666_v46 }
 0x9c4   :  { %v3039_v63 = vpop.eup %3038  ;;  %v1170_v15 = vmul.f32 %v3037_v60, %v3670_v50 }
 0x9c5   :  { %v3041_v9 = vpop.eup %3040  ;;  %v1121_v17 = vmul.f32 %v3039_v63, %v3658_v39 }
 0x9c6   :  { %v1122_v25 = vmul.f32 %v3041_v9, %v3662_v43 }
 0xa23   :  { %v1174_v6 = vpop.permute.xlu0 %1173 }
 0xa24   :  { %v1179_v57 = vmul.f32 %v3035_v55, %v1174_v6  ;;  %v1220_v6 = vunpack.c.h.bf16 %v3510_v31 }
 0xa25   :  { %v1176_v62 = vpop.permute.xlu1 %1175 }
 0xa26   :  { %1183 = vrot.lane.b32.xlu0 %v1179_v57, %s3334_s2  ;;  %v1180_v2 = vmul.f32 %v3037_v60, %v1176_v62 }
 0xa27   :  { %v1126_v7 = vpop.permute.xlu0 %1125 }
 0xa28   :  { %v1131_v13 = vmul.f32 %v3039_v63, %v1126_v7  ;;  %1185 = vrot.lane.b32.xlu1 %v1180_v2, %s3334_s2 }
 0xa29   :  { %v1128_v49 = vpop.permute.xlu1 %1127 }
 0xa2a   :  { %1135 = vrot.lane.b32.xlu0 %v1131_v13, %s3334_s2  ;;  %v1132_v10 = vmul.f32 %v3041_v9, %v1128_v49 }
 0xa2c   :  { %1137 = vrot.lane.b32.xlu1 %v1132_v10, %s3334_s2 }
 0xa98   :  { %v1184_v22 = vpop.permute.xlu0 %1183 }
 0xa99   :  { %v3715_v14 = vadd.f32 %v1184_v22, %v1169_v16 }
 0xa9a   :  { %v1186_v18 = vpop.permute.xlu1 %1185 }
 0xa9b   :  { %3042 = vtanh.f32 %v3715_v14  ;;  %v3720_v19 = vadd.f32 %v1186_v18, %v1170_v15 }
 0xa9c   :  { %v1136_v23 = vpop.permute.xlu0 %1135 }
 0xa9d   :  { %v3722_v24 = vadd.f32 %v1136_v23, %v1121_v17  ;;  %3044 = vtanh.f32 %v3720_v19 }
 0xa9e   :  { %v1138_v46 = vpop.permute.xlu1 %1137 }
 0xa9f   :  { %3046 = vtanh.f32 %v3722_v24  ;;  %v3727_v11 = vadd.f32 %v1138_v46, %v1122_v25 }
 0xaa1   :  { %3048 = vtanh.f32 %v3727_v11 }
 0xaa5   :  { %v3043_v50 = vpop.eup %3042 }
 0xaa6   :  { %1195 = vrot.lane.b32.xlu0 %v3043_v50, %s3327_s28 }
 0xaa7   :  { %v3045_v39 = vpop.eup %3044 }
 0xaa8   :  { %1197 = vrot.lane.b32.xlu1 %v3045_v39, %s3327_s28 }
 0xaa9   :  { %v3047_v26 = vpop.eup %3046 }
 0xaaa   :  { %1147 = vrot.lane.b32.xlu0 %v3047_v26, %s3327_s28 }
 0xaab   :  { %v3049_v59 = vpop.eup %3048 }
 0xaac   :  { %1149 = vrot.lane.b32.xlu1 %v3049_v59, %s3327_s28 }
 0xb18   :  { %v1196_v43 = vpop.permute.xlu0 %1195 }
 0xb19   :  { %v1201_v27 = vmul.f32 %v3035_v55, %v1196_v43 }
 0xb1a   :  { %v1198_v0 = vpop.permute.xlu1 %1197 }
 0xb1b   :  { %v1202_v28 = vmul.f32 %v3037_v60, %v1198_v0 }
 0xb1c   :  { %v1148_v12 = vpop.permute.xlu0 %1147 }
 0xb1d   :  { %v1210_v29 = vpack.c.bf16 %v1202_v28, %v1201_v27  ;;  %v1153_v32 = vmul.f32 %v3039_v63, %v1148_v12 }
 0xb1e   :  { %v1150_v30 = vpop.permute.xlu1 %1149 }
 0xb1f   :  { %v1154_v33 = vmul.f32 %v3041_v9, %v1150_v30  ;;  %1212 = vrot.lane.b32.xlu0 %v1210_v29, %s3334_s2 }
 0xb21   :  { %v1203_v20 = vpack.c.bf16 %v1154_v33, %v1153_v32 }
 0xb23   :  { %1205 = vrot.lane.b32.xlu1 %v1203_v20, %s3334_s2 }
 0xb91   :  { %v1213_v35 = vpop.permute.xlu0 %1212 }
 0xb92   :  { %1216 = vst.msk [vmem:[#allocation5 + $0x20] sm:$0xff] %vm372_vm2, %v1213_v35  ;;  %2780 = vmatmul.mubr.msk.bf16.vlgmr.msra.gmra.mrb[48].mxu1 %vm372_vm2, %v1213_v35 }
 0xb93   :  { %2792 = vmatpush3.bf16.msra.mxu1 %v3738_v36  ;;  %2795 = vmatprep.mubr.msk.bf16.mxu1 %vm3333_vm1, %v3332_v5 }
 0xb94   :  { %2793 = vmatprep.subr.bf16.mxu1 %v3332_v5 }
 0xb95   :  { %v1206_v38 = vpop.permute.xlu1 %1205 }
 0xb96   :  { %1209 = vst.msk [vmem:[#allocation4 + $0x18] sm:$0xff] %vm372_vm2, %v1206_v38  ;;  %2772 = vmatmul.mubr.msk.bf16.vlgmr.msra.gmra.mrb[16].mxu0 %vm372_vm2, %v1206_v38 }
 0xb97   :  { %2784 = vmatpush3.bf16.msra.mxu0 %v3746_v40  ;;  %2794 = vmatpush3.bf16.msra.mxu1 %v3749_v42 }
 0xb98   :  { %2785 = vmatprep.subr.bf16.mxu0 %v3332_v5  ;;  %2787 = vmatprep.mubr.msk.bf16.mxu0 %vm3333_vm1, %v3332_v5 }
 0xb99   :  { %2807 = vmatprep.subr.bf16.mxu1 %v3332_v5 }
 0xb9b   :  { %2786 = vmatpush3.bf16.msra.mxu0 %v3756_v34 }
 0xb9c   :  { %2799 = vmatprep.subr.bf16.mxu0 %v3332_v5 }
 0xc65   :  { %v1308_v45 = vpop.f32.mrb[48].mxu1 }
 0xc66   :  { %v1315_v47 = vadd.f32 %v1308_v45, %v1269_v44  ;;  %v2781_v56 = vpop.f32.mrb[49].mxu1 }
 0xc67   :  { %v1311_v4 = vpop.f32.mrb[50].mxu1 }
 0xc68   :  { %3050 = vtanh.f32 %v1315_v47  ;;  %v1316_v52 = vadd.f32 %v1311_v4, %v1270_v61  ;;  %v2782_v1 = vpop.f32.mrb[51].mxu1  ;;  %v2515_v13 = vmul.f32 -1.442695, %v1315_v47 }
 0xc69   :  { %v1258_v53 = vpop.f32.mrb[16].mxu0 }
 0xc6a   :  { %v1265_v54 = vadd.f32 %v1258_v53, %v1219_v3  ;;  %v2773_v55 = vpop.f32.mrb[17].mxu0  ;;  %3052 = vtanh.f32 %v1316_v52  ;;  %v2516_v31 = vmul.f32 -1.442695, %v1316_v52 }
 0xc6b   :  { %v1261_v57 = vpop.f32.mrb[18].mxu0 }
 0xc6c   :  { %v1266_v60 = vadd.f32 %v1261_v57, %v1220_v6  ;;  %v2774_v62 = vpop.f32.mrb[19].mxu0  ;;  %3054 = vtanh.f32 %v1265_v54  ;;  %v2513_v9 = vmul.f32 -1.442695, %v1265_v54 }
 0xc6e   :  { %3056 = vtanh.f32 %v1266_v60  ;;  %v2514_v49 = vmul.f32 -1.442695, %v1266_v60 }
 0xc6f   :  { %3058 = vpow2.f32 %v2515_v13 }
 0xc70   :  { %3060 = vpow2.f32 %v2516_v31 }
 0xc71   :  { %3062 = vpow2.f32 %v2513_v9 }
 0xc72   :  { %v3051_v63 = vpop.eup %3050  ;;  %3064 = vpow2.f32 %v2514_v49  ;;  %v1480_v49 = vunpack.c.h.bf16 %v3629_v37 }
 0xc73   :  { %1383 = vrot.lane.b32.xlu0 %v3051_v63, %s3327_s28 }
 0xc74   :  { %v3053_v21 = vpop.eup %3052 }
 0xc75   :  { %1385 = vrot.lane.b32.xlu1 %v3053_v21, %s3327_s28 }
 0xc76   :  { %v3055_v2 = vpop.eup %3054 }
 0xc77   :  { %1335 = vrot.lane.b32.xlu0 %v3055_v2, %s3327_s28 }
 0xc78   :  { %v3057_v7 = vpop.eup %3056 }
 0xc79   :  { %1337 = vrot.lane.b32.xlu1 %v3057_v7, %s3327_s28  ;;  %v3059_v10 = vpop.eup %3058  ;;  %v1479_v7 = vunpack.c.l.bf16 %v3629_v37 }
 0xc7a   :  { %v3061_v16 = vpop.eup %3060  ;;  %v1371_v22 = vadd.f32 1.0, %v3059_v10 }
 0xc7b   :  { %v3063_v15 = vpop.eup %3062  ;;  %v1372_v18 = vadd.f32 1.0, %v3061_v16 }
 0xc7c   :  { %v3065_v17 = vpop.eup %3064  ;;  %3066 = vrcp.f32 %v1371_v22  ;;  %v1323_v23 = vadd.f32 1.0, %v3063_v15  ;;  %v1429_v15 = vunpack.c.l.bf16 %v3523_v48 }
 0xc7d   :  { %3068 = vrcp.f32 %v1372_v18  ;;  %v1324_v25 = vadd.f32 1.0, %v3065_v17 }
 0xc7e   :  { %3070 = vrcp.f32 %v1323_v23 }
 0xc7f   :  { %3072 = vrcp.f32 %v1324_v25  ;;  %v1430_v25 = vunpack.c.h.bf16 %v3523_v48 }
 0xc86   :  { %v3067_v46 = vpop.eup %3066 }
 0xc87   :  { %v3069_v26 = vpop.eup %3068  ;;  %v1379_v32 = vmul.f32 %v3067_v46, %v3715_v14 }
 0xc88   :  { %v3071_v0 = vpop.eup %3070  ;;  %v1380_v35 = vmul.f32 %v3069_v26, %v3720_v19 }
 0xc89   :  { %v3073_v12 = vpop.eup %3072  ;;  %v1331_v45 = vmul.f32 %v3071_v0, %v3722_v24 }
 0xc8a   :  { %v1332_v61 = vmul.f32 %v3073_v12, %v3727_v11 }
 0xce5   :  { %v1384_v50 = vpop.permute.xlu0 %1383 }
 0xce6   :  { %v1389_v39 = vmul.f32 %v3067_v46, %v1384_v50 }
 0xce7   :  { %v1386_v59 = vpop.permute.xlu1 %1385 }
 0xce8   :  { %1393 = vrot.lane.b32.xlu0 %v1389_v39, %s3334_s2  ;;  %v1390_v43 = vmul.f32 %v3069_v26, %v1386_v59 }
 0xce9   :  { %v1336_v27 = vpop.permute.xlu0 %1335 }
 0xcea   :  { %v1341_v28 = vmul.f32 %v3071_v0, %v1336_v27  ;;  %1395 = vrot.lane.b32.xlu1 %v1390_v43, %s3334_s2 }
 0xceb   :  { %v1338_v29 = vpop.permute.xlu1 %1337 }
 0xcec   :  { %v1342_v30 = vmul.f32 %v3073_v12, %v1338_v29  ;;  %1345 = vrot.lane.b32.xlu0 %v1341_v28, %s3334_s2 }
 0xcee   :  { %1347 = vrot.lane.b32.xlu1 %v1342_v30, %s3334_s2 }
 0xd5a   :  { %v1394_v33 = vpop.permute.xlu0 %1393 }
 0xd5b   :  { %v3773_v20 = vadd.f32 %v1394_v33, %v1379_v32 }
 0xd5c   :  { %v1396_v38 = vpop.permute.xlu1 %1395 }
 0xd5d   :  { %3074 = vtanh.f32 %v3773_v20  ;;  %v3777_v44 = vadd.f32 %v1396_v38, %v1380_v35 }
 0xd5e   :  { %v1346_v47 = vpop.permute.xlu0 %1345 }
 0xd5f   :  { %3076 = vtanh.f32 %v3777_v44  ;;  %v3781_v56 = vadd.f32 %v1346_v47, %v1331_v45 }
 0xd60   :  { %v1348_v14 = vpop.permute.xlu1 %1347 }
 0xd61   :  { %3078 = vtanh.f32 %v3781_v56  ;;  %v3785_v4 = vadd.f32 %v1348_v14, %v1332_v61 }
 0xd63   :  { %3080 = vtanh.f32 %v3785_v4 }
 0xd67   :  { %v3075_v19 = vpop.eup %3074 }
 0xd68   :  { %1405 = vrot.lane.b32.xlu0 %v3075_v19, %s3327_s28 }
 0xd69   :  { %v3077_v52 = vpop.eup %3076 }
 0xd6a   :  { %1407 = vrot.lane.b32.xlu1 %v3077_v52, %s3327_s28 }
 0xd6b   :  { %v3079_v24 = vpop.eup %3078 }
 0xd6c   :  { %1357 = vrot.lane.b32.xlu0 %v3079_v24, %s3327_s28 }
 0xd6d   :  { %v3081_v1 = vpop.eup %3080 }
 0xd6e   :  { %1359 = vrot.lane.b32.xlu1 %v3081_v1, %s3327_s28 }
 0xdda   :  { %v1406_v11 = vpop.permute.xlu0 %1405 }
 0xddb   :  { %v1411_v53 = vmul.f32 %v3067_v46, %v1406_v11 }
 0xddc   :  { %v1408_v3 = vpop.permute.xlu1 %1407 }
 0xddd   :  { %v1412_v54 = vmul.f32 %v3069_v26, %v1408_v3 }
 0xdde   :  { %v1358_v55 = vpop.permute.xlu0 %1357 }
 0xddf   :  { %v1420_v6 = vpack.c.bf16 %v1412_v54, %v1411_v53  ;;  %v1363_v60 = vmul.f32 %v3071_v0, %v1358_v55 }
 0xde0   :  { %v1360_v57 = vpop.permute.xlu1 %1359 }
 0xde1   :  { %v1364_v62 = vmul.f32 %v3073_v12, %v1360_v57  ;;  %1422 = vrot.lane.b32.xlu0 %v1420_v6, %s3334_s2 }
 0xde3   :  { %v1413_v63 = vpack.c.bf16 %v1364_v62, %v1363_v60 }
 0xde5   :  { %1415 = vrot.lane.b32.xlu1 %v1413_v63, %s3334_s2 }
 0xe53   :  { %v1423_v21 = vpop.permute.xlu0 %1422 }
 0xe54   :  { %1426 = vst.msk [vmem:[#allocation5 + $0x18] sm:$0xff] %vm372_vm2, %v1423_v21  ;;  %2796 = vmatmul.mubr.msk.bf16.vlgmr.msra.gmra.mrb[52].mxu1 %vm372_vm2, %v1423_v21 }
 0xe55   :  { %2808 = vmatpush3.bf16.msra.mxu1 %v3738_v36  ;;  %2811 = vmatprep.mubr.msk.bf16.mxu1 %vm3333_vm1, %v3332_v5 }
 0xe56   :  { %2809 = vmatprep.subr.bf16.mxu1 %v3332_v5 }
 0xe57   :  { %v1416_v2 = vpop.permute.xlu1 %1415 }
 0xe58   :  { %1419 = vst.msk [vmem:[#allocation4 + $0x20] sm:$0xff] %vm372_vm2, %v1416_v2  ;;  %2788 = vmatmul.mubr.msk.bf16.vlgmr.msra.gmra.mrb[20].mxu0 %vm372_vm2, %v1416_v2 }
 0xe59   :  { %2800 = vmatpush3.bf16.msra.mxu0 %v3746_v40  ;;  %2810 = vmatpush3.bf16.msra.mxu1 %v3749_v42 }
 0xe5a   :  { %2801 = vmatprep.subr.bf16.mxu0 %v3332_v5  ;;  %2803 = vmatprep.mubr.msk.bf16.mxu0 %vm3333_vm1, %v3332_v5 }
 0xe5b   :  { %2823 = vmatprep.subr.bf16.mxu1 %v3332_v5 }
 0xe5d   :  { %2802 = vmatpush3.bf16.msra.mxu0 %v3756_v34 }
 0xe5e   :  { %2815 = vmatprep.subr.bf16.mxu0 %v3332_v5 }
 0xf27   :  { %v1518_v13 = vpop.f32.mrb[52].mxu1 }
 0xf28   :  { %v1525_v31 = vadd.f32 %v1518_v13, %v1479_v7  ;;  %v2797_v9 = vpop.f32.mrb[53].mxu1 }
 0xf29   :  { %v1521_v10 = vpop.f32.mrb[54].mxu1 }
 0xf2a   :  { %3082 = vtanh.f32 %v1525_v31  ;;  %v1526_v16 = vadd.f32 %v1521_v10, %v1480_v49  ;;  %v2798_v22 = vpop.f32.mrb[55].mxu1  ;;  %v2521_v0 = vmul.f32 -1.442695, %v1525_v31 }
 0xf2b   :  { %v1468_v18 = vpop.f32.mrb[20].mxu0 }
 0xf2c   :  { %v1475_v17 = vadd.f32 %v1468_v18, %v1429_v15  ;;  %v2789_v23 = vpop.f32.mrb[21].mxu0  ;;  %3084 = vtanh.f32 %v1526_v16  ;;  %v2522_v48 = vmul.f32 -1.442695, %v1526_v16 }
 0xf2d   :  { %v1471_v46 = vpop.f32.mrb[22].mxu0 }
 0xf2e   :  { %v1476_v50 = vadd.f32 %v1471_v46, %v1430_v25  ;;  %v2790_v39 = vpop.f32.mrb[23].mxu0  ;;  %3086 = vtanh.f32 %v1475_v17  ;;  %v2519_v27 = vmul.f32 -1.442695, %v1475_v17 }
 0xf30   :  { %3088 = vtanh.f32 %v1476_v50  ;;  %v2520_v28 = vmul.f32 -1.442695, %v1476_v50 }
 0xf31   :  { %3090 = vpow2.f32 %v2521_v0  ;;  %v1690_v0 = vunpack.c.h.bf16 %v3573_v51 }
 0xf32   :  { %3092 = vpow2.f32 %v2522_v48 }
 0xf33   :  { %3094 = vpow2.f32 %v2519_v27 }
 0xf34   :  { %v3083_v26 = vpop.eup %3082  ;;  %3096 = vpow2.f32 %v2520_v28 }
 0xf35   :  { %1593 = vrot.lane.b32.xlu0 %v3083_v26, %s3327_s28 }
 0xf36   :  { %v3085_v37 = vpop.eup %3084 }
 0xf37   :  { %1595 = vrot.lane.b32.xlu1 %v3085_v37, %s3327_s28 }
 0xf38   :  { %v3087_v59 = vpop.eup %3086 }
 0xf39   :  { %1545 = vrot.lane.b32.xlu0 %v3087_v59, %s3327_s28 }
 0xf3a   :  { %v3089_v43 = vpop.eup %3088 }
 0xf3b   :  { %1547 = vrot.lane.b32.xlu1 %v3089_v43, %s3327_s28  ;;  %v3091_v12 = vpop.eup %3090 }
 0xf3c   :  { %v3093_v29 = vpop.eup %3092  ;;  %v1581_v30 = vadd.f32 1.0, %v3091_v12 }
 0xf3d   :  { %v3095_v32 = vpop.eup %3094  ;;  %v1582_v33 = vadd.f32 1.0, %v3093_v29 }
 0xf3e   :  { %v3097_v35 = vpop.eup %3096  ;;  %3098 = vrcp.f32 %v1581_v30  ;;  %v1533_v38 = vadd.f32 1.0, %v3095_v32 }
 0xf3f   :  { %3100 = vrcp.f32 %v1582_v33  ;;  %v1534_v45 = vadd.f32 1.0, %v3097_v35 }
 0xf40   :  { %3102 = vrcp.f32 %v1533_v38 }
 0xf41   :  { %3104 = vrcp.f32 %v1534_v45 }
 0xf48   :  { %v3099_v47 = vpop.eup %3098 }
 0xf49   :  { %v3101_v19 = vpop.eup %3100  ;;  %v1589_v6 = vmul.f32 %v3099_v47, %v3773_v20 }
 0xf4a   :  { %v3103_v1 = vpop.eup %3102  ;;  %v1590_v62 = vmul.f32 %v3101_v19, %v3777_v44 }
 0xf4b   :  { %v3105_v53 = vpop.eup %3104  ;;  %v1541_v2 = vmul.f32 %v3103_v1, %v3781_v56 }
 0xf4c   :  { %v1542_v31 = vmul.f32 %v3105_v53, %v3785_v4 }
 0xfa7   :  { %v1594_v61 = vpop.permute.xlu0 %1593 }
 0xfa8   :  { %v1599_v14 = vmul.f32 %v3099_v47, %v1594_v61 }
 0xfa9   :  { %v1596_v52 = vpop.permute.xlu1 %1595 }
 0xfaa   :  { %1603 = vrot.lane.b32.xlu0 %v1599_v14, %s3334_s2  ;;  %v1600_v24 = vmul.f32 %v3101_v19, %v1596_v52 }
 0xfab   :  { %v1546_v11 = vpop.permute.xlu0 %1545 }
 0xfac   :  { %v1551_v3 = vmul.f32 %v3103_v1, %v1546_v11  ;;  %1605 = vrot.lane.b32.xlu1 %v1600_v24, %s3334_s2 }
 0xfad   :  { %v1548_v54 = vpop.permute.xlu1 %1547 }
 0xfae   :  { %v1552_v55 = vmul.f32 %v3105_v53, %v1548_v54  ;;  %1555 = vrot.lane.b32.xlu0 %v1551_v3, %s3334_s2 }
 0xfb0   :  { %1557 = vrot.lane.b32.xlu1 %v1552_v55, %s3334_s2 }
0x101c   :  { %v1604_v57 = vpop.permute.xlu0 %1603 }
0x101d   :  { %v3823_v60 = vadd.f32 %v1604_v57, %v1589_v6 }
0x101e   :  { %v1606_v63 = vpop.permute.xlu1 %1605 }
0x101f   :  { %3106 = vtanh.f32 %v3823_v60  ;;  %v3827_v21 = vadd.f32 %v1606_v63, %v1590_v62 }
0x1020   :  { %v1556_v7 = vpop.permute.xlu0 %1555 }
0x1021   :  { %3108 = vtanh.f32 %v3827_v21  ;;  %v3831_v13 = vadd.f32 %v1556_v7, %v1541_v2 }
0x1022   :  { %v1558_v20 = vpop.permute.xlu1 %1557 }
0x1023   :  { %3110 = vtanh.f32 %v3831_v13  ;;  %v3835_v9 = vadd.f32 %v1558_v20, %v1542_v31 }
0x1025   :  { %3112 = vtanh.f32 %v3835_v9 }
0x1029   :  { %v3107_v44 = vpop.eup %3106 }
0x102a   :  { %1615 = vrot.lane.b32.xlu0 %v3107_v44, %s3327_s28 }
0x102b   :  { %v3109_v49 = vpop.eup %3108 }
0x102c   :  { %1617 = vrot.lane.b32.xlu1 %v3109_v49, %s3327_s28 }
0x102d   :  { %v3111_v56 = vpop.eup %3110 }
0x102e   :  { %1567 = vrot.lane.b32.xlu0 %v3111_v56, %s3327_s28 }
0x102f   :  { %v3113_v10 = vpop.eup %3112 }
0x1030   :  { %1569 = vrot.lane.b32.xlu1 %v3113_v10, %s3327_s28 }
0x109c   :  { %v1616_v4 = vpop.permute.xlu0 %1615 }
0x109d   :  { %v1621_v22 = vmul.f32 %v3099_v47, %v1616_v4 }
0x109e   :  { %v1618_v16 = vpop.permute.xlu1 %1617 }
0x109f   :  { %v1622_v15 = vmul.f32 %v3101_v19, %v1618_v16 }
0x10a0   :  { %v1568_v18 = vpop.permute.xlu0 %1567 }
0x10a1   :  { %v1630_v17 = vpack.c.bf16 %v1622_v15, %v1621_v22  ;;  %v1573_v25 = vmul.f32 %v3103_v1, %v1568_v18 }
0x10a2   :  { %v1570_v23 = vpop.permute.xlu1 %1569 }
0x10a3   :  { %v1574_v46 = vmul.f32 %v3105_v53, %v1570_v23  ;;  %1632 = vrot.lane.b32.xlu0 %v1630_v17, %s3334_s2 }
0x10a5   :  { %v1623_v50 = vpack.c.bf16 %v1574_v46, %v1573_v25 }
0x10a7   :  { %1625 = vrot.lane.b32.xlu1 %v1623_v50, %s3334_s2 }
0x1115   :  { %v1633_v39 = vpop.permute.xlu0 %1632 }
0x1116   :  { %1636 = vst.msk [vmem:[#allocation5 + $0x10] sm:$0xff] %vm372_vm2, %v1633_v39  ;;  %2812 = vmatmul.mubr.msk.bf16.vlgmr.msra.gmra.mrb[56].mxu1 %vm372_vm2, %v1633_v39 }
0x1117   :  { %2824 = vmatpush3.bf16.msra.mxu1 %v3738_v36  ;;  %2827 = vmatprep.mubr.msk.bf16.mxu1 %vm3333_vm1, %v3332_v5  ;;  %v1689_v36 = vunpack.c.l.bf16 %v3573_v51 }
0x1118   :  { %2825 = vmatprep.subr.bf16.mxu1 %v3332_v5 }
0x1119   :  { %v1626_v26 = vpop.permute.xlu1 %1625 }
0x111a   :  { %1629 = vst.msk [vmem:[#allocation4 + $0x28] sm:$0xff] %vm372_vm2, %v1626_v26  ;;  %2804 = vmatmul.mubr.msk.bf16.vlgmr.msra.gmra.mrb[24].mxu0 %vm372_vm2, %v1626_v26 }
0x111b   :  { %2816 = vmatpush3.bf16.msra.mxu0 %v3746_v40  ;;  %2826 = vmatpush3.bf16.msra.mxu1 %v3749_v42  ;;  %v1639_v42 = vunpack.c.l.bf16 %v3531_v58 }
0x111c   :  { %2817 = vmatprep.subr.bf16.mxu0 %v3332_v5  ;;  %2819 = vmatprep.mubr.msk.bf16.mxu0 %vm3333_vm1, %v3332_v5  ;;  %v1640_v5 = vunpack.c.h.bf16 %v3531_v58 }
0x111f   :  { %2818 = vmatpush3.bf16.msra.mxu0 %v3756_v34 }
0x11e9   :  { %v1728_v37 = vpop.f32.mrb[56].mxu1 }
0x11ea   :  { %v1735_v59 = vadd.f32 %v1728_v37, %v1689_v36  ;;  %v2813_v43 = vpop.f32.mrb[57].mxu1 }
0x11eb   :  { %v1731_v48 = vpop.f32.mrb[58].mxu1 }
0x11ec   :  { %3114 = vtanh.f32 %v1735_v59  ;;  %v1736_v27 = vadd.f32 %v1731_v48, %v1690_v0  ;;  %v2814_v40 = vpop.f32.mrb[59].mxu1  ;;  %v2527_v45 = vmul.f32 -1.442695, %v1735_v59 }
0x11ed   :  { %v1678_v28 = vpop.f32.mrb[24].mxu0 }
0x11ee   :  { %v1685_v12 = vadd.f32 %v1678_v28, %v1639_v42  ;;  %v2805_v29 = vpop.f32.mrb[25].mxu0  ;;  %3116 = vtanh.f32 %v1736_v27  ;;  %v2528_v58 = vmul.f32 -1.442695, %v1736_v27 }
0x11ef   :  { %v1681_v34 = vpop.f32.mrb[26].mxu0 }
0x11f0   :  { %v1686_v30 = vadd.f32 %v1681_v34, %v1640_v5  ;;  %v2806_v32 = vpop.f32.mrb[27].mxu0  ;;  %3118 = vtanh.f32 %v1685_v12  ;;  %v2525_v47 = vmul.f32 -1.442695, %v1685_v12  ;;  %v1898_v12 = vunpack.c.l.bf16 %v3517_v41 }
0x11f2   :  { %3120 = vtanh.f32 %v1686_v30  ;;  %v2526_v61 = vmul.f32 -1.442695, %v1686_v30  ;;  %v1899_v30 = vunpack.c.h.bf16 %v3517_v41 }
0x11f3   :  { %3122 = vpow2.f32 %v2527_v45 }
0x11f4   :  { %3124 = vpow2.f32 %v2528_v58 }
0x11f5   :  { %3126 = vpow2.f32 %v2525_v47  ;;  %v1850_v47 = vunpack.c.h.bf16 %v3539_v8 }
0x11f6   :  { %v3115_v33 = vpop.eup %3114  ;;  %3128 = vpow2.f32 %v2526_v61 }
0x11f7   :  { %1803 = vrot.lane.b32.xlu0 %v3115_v33, %s3327_s28 }
0x11f8   :  { %v3117_v51 = vpop.eup %3116 }
0x11f9   :  { %1805 = vrot.lane.b32.xlu1 %v3117_v51, %s3327_s28 }
0x11fa   :  { %v3119_v35 = vpop.eup %3118 }
0x11fb   :  { %1755 = vrot.lane.b32.xlu0 %v3119_v35, %s3327_s28  ;;  %v1849_v35 = vunpack.c.l.bf16 %v3539_v8 }
0x11fc   :  { %v3121_v38 = vpop.eup %3120 }
0x11fd   :  { %1757 = vrot.lane.b32.xlu1 %v3121_v38, %s3327_s28  ;;  %v3123_v14 = vpop.eup %3122 }
0x11fe   :  { %v3125_v19 = vpop.eup %3124  ;;  %v1791_v52 = vadd.f32 1.0, %v3123_v14 }
0x11ff   :  { %v3127_v24 = vpop.eup %3126  ;;  %v1792_v1 = vadd.f32 1.0, %v3125_v19 }
0x1200   :  { %v3129_v11 = vpop.eup %3128  ;;  %3130 = vrcp.f32 %v1791_v52  ;;  %v1743_v3 = vadd.f32 1.0, %v3127_v24 }
0x1201   :  { %3132 = vrcp.f32 %v1792_v1  ;;  %v1744_v53 = vadd.f32 1.0, %v3129_v11 }
0x1202   :  { %3134 = vrcp.f32 %v1743_v3 }
0x1203   :  { %3136 = vrcp.f32 %v1744_v53 }
0x120a   :  { %v3131_v54 = vpop.eup %3130 }
0x120b   :  { %v3133_v57 = vpop.eup %3132  ;;  %v1799_v56 = vmul.f32 %v3131_v54, %v3823_v60 }
0x120c   :  { %v3135_v2 = vpop.eup %3134  ;;  %v1800_v16 = vmul.f32 %v3133_v57, %v3827_v21 }
0x120d   :  { %v3137_v20 = vpop.eup %3136  ;;  %v1751_v18 = vmul.f32 %v3135_v2, %v3831_v13 }
0x120e   :  { %v1752_v25 = vmul.f32 %v3137_v20, %v3835_v9 }
0x1269   :  { %v1804_v55 = vpop.permute.xlu0 %1803 }
0x126a   :  { %v1809_v6 = vmul.f32 %v3131_v54, %v1804_v55 }
0x126b   :  { %v1806_v62 = vpop.permute.xlu1 %1805 }
0x126c   :  { %1813 = vrot.lane.b32.xlu0 %v1809_v6, %s3334_s2  ;;  %v1810_v63 = vmul.f32 %v3133_v57, %v1806_v62 }
0x126d   :  { %v1756_v7 = vpop.permute.xlu0 %1755 }
0x126e   :  { %v1761_v31 = vmul.f32 %v3135_v2, %v1756_v7  ;;  %1815 = vrot.lane.b32.xlu1 %v1810_v63, %s3334_s2 }
0x126f   :  { %v1758_v44 = vpop.permute.xlu1 %1757 }
0x1270   :  { %v1762_v49 = vmul.f32 %v3137_v20, %v1758_v44  ;;  %1765 = vrot.lane.b32.xlu0 %v1761_v31, %s3334_s2 }
0x1272   :  { %1767 = vrot.lane.b32.xlu1 %v1762_v49, %s3334_s2 }
0x12de   :  { %v1814_v10 = vpop.permute.xlu0 %1813 }
0x12df   :  { %v3871_v4 = vadd.f32 %v1814_v10, %v1799_v56 }
0x12e0   :  { %v1816_v22 = vpop.permute.xlu1 %1815 }
0x12e1   :  { %3138 = vtanh.f32 %v3871_v4  ;;  %v3875_v15 = vadd.f32 %v1816_v22, %v1800_v16 }
0x12e2   :  { %v1766_v17 = vpop.permute.xlu0 %1765 }
0x12e3   :  { %3140 = vtanh.f32 %v3875_v15  ;;  %v3879_v23 = vadd.f32 %v1766_v17, %v1751_v18 }
0x12e4   :  { %v1768_v60 = vpop.permute.xlu1 %1767 }
0x12e5   :  { %3142 = vtanh.f32 %v3879_v23  ;;  %v3883_v46 = vadd.f32 %v1768_v60, %v1752_v25 }
0x12e7   :  { %3144 = vtanh.f32 %v3883_v46 }
0x12eb   :  { %v3139_v21 = vpop.eup %3138 }
0x12ec   :  { %1825 = vrot.lane.b32.xlu0 %v3139_v21, %s3327_s28 }
0x12ed   :  { %v3141_v50 = vpop.eup %3140 }
0x12ee   :  { %1827 = vrot.lane.b32.xlu1 %v3141_v50, %s3327_s28 }
0x12ef   :  { %v3143_v13 = vpop.eup %3142 }
0x12f0   :  { %1777 = vrot.lane.b32.xlu0 %v3143_v13, %s3327_s28 }
0x12f1   :  { %v3145_v39 = vpop.eup %3144 }
0x12f2   :  { %1779 = vrot.lane.b32.xlu1 %v3145_v39, %s3327_s28 }
0x135e   :  { %v1826_v9 = vpop.permute.xlu0 %1825 }
0x135f   :  { %v1831_v36 = vmul.f32 %v3131_v54, %v1826_v9 }
0x1360   :  { %v1828_v26 = vpop.permute.xlu1 %1827 }
0x1361   :  { %v1832_v37 = vmul.f32 %v3133_v57, %v1828_v26 }
0x1362   :  { %v1778_v59 = vpop.permute.xlu0 %1777 }
0x1363   :  { %v1840_v43 = vpack.c.bf16 %v1832_v37, %v1831_v36  ;;  %v1783_v48 = vmul.f32 %v3135_v2, %v1778_v59 }
0x1364   :  { %v1780_v0 = vpop.permute.xlu1 %1779 }
0x1365   :  { %v1784_v27 = vmul.f32 %v3137_v20, %v1780_v0  ;;  %1842 = vrot.lane.b32.xlu0 %v1840_v43, %s3334_s2 }
0x1367   :  { %v1833_v40 = vpack.c.bf16 %v1784_v27, %v1783_v48 }
0x1369   :  { %1835 = vrot.lane.b32.xlu1 %v1833_v40, %s3334_s2 }
0x13d7   :  { %v1843_v42 = vpop.permute.xlu0 %1842 }
0x13d8   :  { %1846 = vst.msk [vmem:[#allocation5 + $0x8] sm:$0xff] %vm372_vm2, %v1843_v42  ;;  %2828 = vmatmul.mubr.msk.bf16.vlgmr.msra.gmra.mrb[60].mxu1 %vm372_vm2, %v1843_v42 }
0x13db   :  { %v1836_v28 = vpop.permute.xlu1 %1835 }
0x13dc   :  { %1839 = vst.msk [vmem:[#allocation4 + $0x30] sm:$0xff] %vm372_vm2, %v1836_v28  ;;  %2820 = vmatmul.mubr.msk.bf16.vlgmr.msra.gmra.mrb[28].mxu0 %vm372_vm2, %v1836_v28 }
0x14ab   :  { %v1937_v29 = vpop.f32.mrb[60].mxu1 }
0x14ac   :  { %v1944_v5 = vadd.f32 %v1937_v29, %v1898_v12  ;;  %v2829_v34 = vpop.f32.mrb[61].mxu1 }
0x14ad   :  { %v1940_v32 = vpop.f32.mrb[62].mxu1 }
0x14ae   :  { %3146 = vtanh.f32 %v1944_v5  ;;  %v1945_v33 = vadd.f32 %v1940_v32, %v1899_v30  ;;  %v2830_v51 = vpop.f32.mrb[63].mxu1  ;;  %v2533_v11 = vmul.f32 -1.442695, %v1944_v5  ;;  %v2920_v5 = vld [vmem:[%s3965_s5] sm:$0xff]  }
0x14af   :  { %v1888_v38 = vpop.f32.mrb[28].mxu0 }
0x14b0   :  { %v1895_v45 = vadd.f32 %v1888_v38, %v1849_v35  ;;  %v2821_v58 = vpop.f32.mrb[29].mxu0  ;;  %3148 = vtanh.f32 %v1945_v33  ;;  %v2534_v8 = vmul.f32 -1.442695, %v1945_v33 }
0x14b1   :  { %v1891_v61 = vpop.f32.mrb[30].mxu0 }
0x14b2   :  { %v1896_v14 = vadd.f32 %v1891_v61, %v1850_v47  ;;  %v2822_v19 = vpop.f32.mrb[31].mxu0  ;;  %3150 = vtanh.f32 %v1895_v45  ;;  %v2531_v3 = vmul.f32 -1.442695, %v1895_v45  ;;  %v2921_v47 = vld [vmem:[%s3965_s5 + $0x8] sm:$0xff]  }
0x14b3   :  { %v2064_v61 = vld [vmem:[#allocation5 + $0x8] sm:$0xff]  ;;  %v2066_v19 = vld [vmem:[#allocation5 + $0x18] sm:$0xff] }
0x14b4   :  { %3152 = vtanh.f32 %v1896_v14  ;;  %v2532_v53 = vmul.f32 -1.442695, %v1896_v14  ;;  %v2065_v14 = vld [vmem:[#allocation5 + $0x10] sm:$0xff] }
0x14b5   :  { %3154 = vpow2.f32 %v2533_v11  ;;  %v2055_v11 = vld [vmem:[#allocation4] sm:$0xff] }
0x14b6   :  { %3156 = vpow2.f32 %v2534_v8  ;;  %v2056_v8 = vld [vmem:[#allocation4 + $0x8] sm:$0xff] }
0x14b7   :  { %3158 = vpow2.f32 %v2531_v3  ;;  %v2057_v3 = vld [vmem:[#allocation4 + $0x10] sm:$0xff] }
0x14b8   :  { %v3147_v52 = vpop.eup %3146  ;;  %3160 = vpow2.f32 %v2532_v53  ;;  %v2058_v53 = vld [vmem:[#allocation4 + $0x18] sm:$0xff] }
0x14b9   :  { %2012 = vrot.lane.b32.xlu0 %v3147_v52, %s3327_s28  ;;  %v2067_v52 = vld [vmem:[#allocation5 + $0x20] sm:$0xff] }
0x14ba   :  { %v3149_v41 = vpop.eup %3148 }
0x14bb   :  { %2014 = vrot.lane.b32.xlu1 %v3149_v41, %s3327_s28  ;;  %v2068_v41 = vld [vmem:[#allocation5 + $0x28] sm:$0xff] }
0x14bc   :  { %v3151_v24 = vpop.eup %3150 }
0x14bd   :  { %1964 = vrot.lane.b32.xlu0 %v3151_v24, %s3327_s28  ;;  %v2069_v24 = vld [vmem:[#allocation5 + $0x30] sm:$0xff] }
0x14be   :  { %v3153_v1 = vpop.eup %3152 }
0x14bf   :  { %1966 = vrot.lane.b32.xlu1 %v3153_v1, %s3327_s28  ;;  %v3155_v54 = vpop.eup %3154  ;;  %v2070_v1 = vld [vmem:[#allocation5 + $0x38] sm:$0xff] }
0x14c0   :  { %v3157_v55 = vpop.eup %3156  ;;  %v2000_v6 = vadd.f32 1.0, %v3155_v54  ;;  %v2059_v54 = vld [vmem:[#allocation4 + $0x20] sm:$0xff] }
0x14c1   :  { %v3159_v57 = vpop.eup %3158  ;;  %v2001_v62 = vadd.f32 1.0, %v3157_v55  ;;  %v2060_v55 = vld [vmem:[#allocation4 + $0x28] sm:$0xff] }
0x14c2   :  { %v3161_v63 = vpop.eup %3160  ;;  %3162 = vrcp.f32 %v2000_v6  ;;  %v1952_v2 = vadd.f32 1.0, %v3159_v57  ;;  %v2061_v6 = vld [vmem:[#allocation4 + $0x30] sm:$0xff] }
0x14c3   :  { %3164 = vrcp.f32 %v2001_v62  ;;  %v1953_v7 = vadd.f32 1.0, %v3161_v63  ;;  %v2555_v63 = vld [vmem:[%s3967_s7] ss:$0 sm:$0xff]  ;;  %s3335_s7 = smov [#allocation15]  }
0x14c4   :  { %3166 = vrcp.f32 %v1952_v2  ;;  %s2453_s29 = sshll.u32 %s3335_s7, 4  ;;  %s2454_s29 = int_to_ptr.vmem [resolvable:$true] %s2453_s29 }
0x14c5   :  { %3168 = vrcp.f32 %v1953_v7  ;;  %s3292_s30 = scalar_lea.vmem %s2454_s29, 1024  ;;  %p3297_p13 = scmp.lt.s32.totalorder %s2454_s29, %s2454_s29 }
0x14c6   :  { %p3293_p12 = scmp.ne.s32.totalorder %s2454_s29, %s3292_s30  ;;  %p3298_p0 = scmp.lt.s32.totalorder %s3292_s30, %s3292_s30 }
0x14c8   :  { %p3299_p1 = por %p3298_p0, %p3297_p13 }
0x14ca   :  { %p3300_p2 = pnand %p3299_p1, %p3293_p12 }
0x14cc   :  { %v3163_v31 = vpop.eup %3162 }
0x14cd   :  { %v3165_v49 = vpop.eup %3164  ;;  %v2008_v21 = vmul.f32 %v3163_v31, %v3871_v4 }
0x14ce   :  { %v3167_v16 = vpop.eup %3166  ;;  %v2009_v39 = vmul.f32 %v3165_v49, %v3875_v15 }
0x14cf   :  { %v3169_v17 = vpop.eup %3168  ;;  %v1960_v36 = vmul.f32 %v3167_v16, %v3879_v23  ;;  %v2918_v23 = vld [vmem:[#allocation14] sm:$0xff]  }
0x14d0   :  { %v1961_v43 = vmul.f32 %v3169_v17, %v3883_v46  ;;  %2831 = vmatprep.subr.bf16.mxu0 %v2918_v23  ;;  %v2919_v46 = vld [vmem:[#allocation14 + $0x8] sm:$0xff]  }
0x14d1   :  { %2832 = vmatpush3.bf16.msra.mxu0 %v2918_v23 }
0x14d2   :  { %2833 = vmatprep.subr.bf16.mxu0 %v2919_v46 }
0x14d5   :  { %2834 = vmatpush3.bf16.msra.mxu0 %v2919_v46 }
0x14d6   :  { %2851 = vmatprep.subr.bf16.mxu0 %v2920_v5 }
0x152b   :  { %v2013_v20 = vpop.permute.xlu0 %2012 }
0x152c   :  { %v2018_v44 = vmul.f32 %v3163_v31, %v2013_v20 }
0x152d   :  { %v2015_v56 = vpop.permute.xlu1 %2014 }
0x152e   :  { %2022 = vrot.lane.b32.xlu0 %v2018_v44, %s3334_s2  ;;  %v2019_v10 = vmul.f32 %v3165_v49, %v2015_v56 }
0x152f   :  { %v1965_v22 = vpop.permute.xlu0 %1964 }
0x1530   :  { %v1970_v18 = vmul.f32 %v3167_v16, %v1965_v22  ;;  %2024 = vrot.lane.b32.xlu1 %v2019_v10, %s3334_s2 }
0x1531   :  { %v1967_v25 = vpop.permute.xlu1 %1966 }
0x1532   :  { %v1971_v60 = vmul.f32 %v3169_v17, %v1967_v25  ;;  %1974 = vrot.lane.b32.xlu0 %v1970_v18, %s3334_s2 }
0x1534   :  { %1976 = vrot.lane.b32.xlu1 %v1971_v60, %s3334_s2 }
0x15a0   :  { %v2023_v50 = vpop.permute.xlu0 %2022 }
0x15a1   :  { %v2028_v13 = vadd.f32 %v2023_v50, %v2008_v21 }
0x15a2   :  { %v2025_v9 = vpop.permute.xlu1 %2024 }
0x15a3   :  { %3170 = vtanh.f32 %v2028_v13  ;;  %v2029_v26 = vadd.f32 %v2025_v9, %v2009_v39 }
0x15a4   :  { %v1975_v37 = vpop.permute.xlu0 %1974 }
0x15a5   :  { %3172 = vtanh.f32 %v2029_v26  ;;  %v1980_v59 = vadd.f32 %v1975_v37, %v1960_v36 }
0x15a6   :  { %v1977_v0 = vpop.permute.xlu1 %1976 }
0x15a7   :  { %3174 = vtanh.f32 %v1980_v59  ;;  %v1981_v48 = vadd.f32 %v1977_v0, %v1961_v43 }
0x15a9   :  { %3176 = vtanh.f32 %v1981_v48 }
0x15ad   :  { %v3171_v27 = vpop.eup %3170 }
0x15ae   :  { %2034 = vrot.lane.b32.xlu0 %v3171_v27, %s3327_s28 }
0x15af   :  { %v3173_v4 = vpop.eup %3172 }
0x15b0   :  { %2036 = vrot.lane.b32.xlu1 %v3173_v4, %s3327_s28 }
0x15b1   :  { %v3175_v15 = vpop.eup %3174 }
0x15b2   :  { %1986 = vrot.lane.b32.xlu0 %v3175_v15, %s3327_s28 }
0x15b3   :  { %v3177_v40 = vpop.eup %3176 }
0x15b4   :  { %1988 = vrot.lane.b32.xlu1 %v3177_v40, %s3327_s28 }
0x1620   :  { %v2035_v42 = vpop.permute.xlu0 %2034 }
0x1621   :  { %v2040_v12 = vmul.f32 %v3163_v31, %v2035_v42 }
0x1622   :  { %v2037_v28 = vpop.permute.xlu1 %2036 }
0x1623   :  { %v2041_v29 = vmul.f32 %v3165_v49, %v2037_v28 }
0x1624   :  { %v1987_v34 = vpop.permute.xlu0 %1986 }
0x1625   :  { %v2049_v30 = vpack.c.bf16 %v2041_v29, %v2040_v12  ;;  %v1992_v33 = vmul.f32 %v3167_v16, %v1987_v34 }
0x1626   :  { %v1989_v32 = vpop.permute.xlu1 %1988 }
0x1627   :  { %v1993_v51 = vmul.f32 %v3169_v17, %v1989_v32  ;;  %2051 = vrot.lane.b32.xlu0 %v2049_v30, %s3334_s2 }
0x1629   :  { %v2042_v35 = vpack.c.bf16 %v1993_v51, %v1992_v33 }
0x162b   :  { %2044 = vrot.lane.b32.xlu1 %v2042_v35, %s3334_s2 }
0x1699   :  { %v2052_v38 = vpop.permute.xlu0 %2051 }
0x169a   :  { %2054 = vst.msk [vmem:[#allocation5] sm:$0xff] %vm372_vm2, %v2052_v38 }
0x169d   :  { %v2045_v45 = vpop.permute.xlu1 %2044 }
0x169e   :  { %2048 = vst.msk [vmem:[#allocation4 + $0x38] sm:$0xff] %vm372_vm2, %v2045_v45 }
0x16a1   :  { %v2063_v58 = vld [vmem:[#allocation5] sm:$0xff] }
0x16a2   :  { %2835 = vmatprep.mubr.msk.bf16.mxu0 %vm372_vm2, %v2063_v58 }
0x16a3   :  { %2836 = vmatmul.mubr.msk.bf16.vlgmr.msra.gmra.mrb[32].mxu0 %vm372_vm2, %v2064_v61 }
0x16a4   :  { %2839 = vmatprep.mubr.msk.bf16.mxu0 %vm372_vm2, %v2065_v14  ;;  %2852 = vmatpush3.bf16.msra.mxu0 %v2920_v5 }
0x16a5   :  { %2853 = vmatprep.subr.bf16.mxu0 %v2921_v47  ;;  %v2062_v57 = vld [vmem:[#allocation4 + $0x38] sm:$0xff] }
0x16a8   :  { %2854 = vmatpush3.bf16.msra.mxu0 %v2921_v47 }
0x16ab   :  { %2840 = vmatmul.mubr.msk.bf16.gmra.mrb[36].mxu0 %vm372_vm2, %v2066_v19 }
0x16ac   :  { %2843 = vmatprep.mubr.msk.bf16.mxu0 %vm372_vm2, %v2067_v52 }
0x16b3   :  { %2844 = vmatmul.mubr.msk.bf16.gmra.mrb[40].mxu0 %vm372_vm2, %v2068_v41 }
0x16b4   :  { %2847 = vmatprep.mubr.msk.bf16.mxu0 %vm372_vm2, %v2069_v24 }
0x16bb   :  { %2848 = vmatmul.mubr.msk.bf16.gmra.mrb[44].mxu0 %vm372_vm2, %v2070_v1 }
0x16bc   :  { %2855 = vmatprep.mubr.msk.bf16.mxu0 %vm372_vm2, %v2055_v11 }
0x16c3   :  { %2856 = vmatmul.mubr.msk.bf16.vlgmr.msra.gmra.mrb[32].mxu0 %vm372_vm2, %v2056_v8 }
0x16c4   :  { %2859 = vmatprep.mubr.msk.bf16.mxu0 %vm372_vm2, %v2057_v3 }
0x16cb   :  { %2860 = vmatmul.mubr.msk.bf16.gmra.mrb[36].mxu0 %vm372_vm2, %v2058_v53 }
0x16cc   :  { %2863 = vmatprep.mubr.msk.bf16.mxu0 %vm372_vm2, %v2059_v54 }
0x16d3   :  { %2864 = vmatmul.mubr.msk.bf16.gmra.mrb[40].mxu0 %vm372_vm2, %v2060_v55 }
0x16d4   :  { %2867 = vmatprep.mubr.msk.bf16.mxu0 %vm372_vm2, %v2061_v6 }
0x16db   :  { %2868 = vmatmul.mubr.msk.bf16.gmra.mrb[44].mxu0 %vm372_vm2, %v2062_v57 }
0x1796   :  { %v2857_v62 = vpop.f32.mrb[32].mxu0 }
0x1797   :  { %v2282_v2 = vpop.f32.mrb[33].mxu0  ;;  %v2354_v31 = vadd.f32 %v2857_v62, %v2555_v63 }
0x1798   :  { %v2858_v7 = vpop.f32.mrb[34].mxu0  ;;  %v2352_v49 = vadd.f32 %v2555_v63, %v2282_v2 }
0x1799   :  { %v2355_v20 = vadd.f32 %v2858_v7, %v2555_v63  ;;  %v2285_v44 = vpop.f32.mrb[35].mxu0 }
0x179a   :  { %v2353_v56 = vadd.f32 %v2555_v63, %v2285_v44 }
0x179b   :  { %v2596_v10 = vpack.c.bf16 %v2355_v20, %v2354_v31 }
0x179c   :  { %v2591_v16 = vpack.c.bf16 %v2353_v56, %v2352_v49 }
0x179d   :  { %2628 = vst [vmem:[#allocation15 + $0x8] sm:$0xff] %v2596_v10  }
0x179e   :  { %2592 = vst [vmem:[#allocation15] sm:$0xff] %v2591_v16   ;;  %v2861_v22 = vpop.f32.mrb[36].mxu0 }
0x179f   :  { %v2298_v18 = vpop.f32.mrb[37].mxu0  ;;  %v2358_v25 = vadd.f32 %v2861_v22, %v2555_v63 }
0x17a0   :  { %v2862_v17 = vpop.f32.mrb[38].mxu0  ;;  %v2356_v50 = vadd.f32 %v2555_v63, %v2298_v18 }
0x17a1   :  { %v2359_v60 = vadd.f32 %v2862_v17, %v2555_v63  ;;  %v2301_v21 = vpop.f32.mrb[39].mxu0 }
0x17a2   :  { %v2357_v13 = vadd.f32 %v2555_v63, %v2301_v21 }
0x17a3   :  { %v2606_v39 = vpack.c.bf16 %v2359_v60, %v2358_v25 }
0x17a4   :  { %v2601_v9 = vpack.c.bf16 %v2357_v13, %v2356_v50 }
0x17a5   :  { %2630 = vst [vmem:[#allocation15 + $0x18] sm:$0xff] %v2606_v39  }
0x17a6   :  { %2629 = vst [vmem:[#allocation15 + $0x10] sm:$0xff] %v2601_v9   ;;  %v2865_v26 = vpop.f32.mrb[40].mxu0 }
0x17a7   :  { %v2314_v36 = vpop.f32.mrb[41].mxu0  ;;  %v2362_v59 = vadd.f32 %v2865_v26, %v2555_v63 }
0x17a8   :  { %v2866_v37 = vpop.f32.mrb[42].mxu0  ;;  %v2360_v48 = vadd.f32 %v2555_v63, %v2314_v36 }
0x17a9   :  { %v2363_v43 = vadd.f32 %v2866_v37, %v2555_v63  ;;  %v2317_v0 = vpop.f32.mrb[43].mxu0 }
0x17aa   :  { %v2361_v27 = vadd.f32 %v2555_v63, %v2317_v0 }
0x17ab   :  { %v2616_v4 = vpack.c.bf16 %v2363_v43, %v2362_v59 }
0x17ac   :  { %v2611_v15 = vpack.c.bf16 %v2361_v27, %v2360_v48 }
0x17ad   :  { %2632 = vst [vmem:[#allocation15 + $0x28] sm:$0xff] %v2616_v4  }
0x17ae   :  { %2631 = vst [vmem:[#allocation15 + $0x20] sm:$0xff] %v2611_v15   ;;  %v2869_v40 = vpop.f32.mrb[44].mxu0 }
0x17af   :  { %v2330_v23 = vpop.f32.mrb[45].mxu0  ;;  %v2366_v42 = vadd.f32 %v2869_v40, %v2555_v63 }
0x17b0   :  { %v2870_v46 = vpop.f32.mrb[46].mxu0  ;;  %v2364_v29 = vadd.f32 %v2555_v63, %v2330_v23 }
0x17b1   :  { %v2367_v28 = vadd.f32 %v2870_v46, %v2555_v63  ;;  %v2333_v12 = vpop.f32.mrb[47].mxu0 }
0x17b2   :  { %v2365_v5 = vadd.f32 %v2555_v63, %v2333_v12 }
0x17b3   :  { %v2626_v34 = vpack.c.bf16 %v2367_v28, %v2366_v42 }
0x17b4   :  { %v2621_v30 = vpack.c.bf16 %v2365_v5, %v2364_v29 }
0x17b5   :  { %2634 = vst [vmem:[#allocation15 + $0x38] sm:$0xff] %v2626_v34  }
0x17b6   :  { %2633 = vst [vmem:[#allocation15 + $0x30] sm:$0xff] %v2621_v30  }
0x17b7   :  { %3303 = shalt.err (!%p3300_p2)
}
0x17b8   :  { %s3304_s11 = scalar_lea.hbm %s3968_s8, 1024 }
0x17b9   :  { %p3305_p3 = scmp.ne.s32.totalorder %s3968_s8, %s3304_s11  ;;  %p3308_p4 = scmp.lt.u32.totalorder %s3304_s11, %s3968_s8 }
0x17bb   :  { %p3310_p5 = pnand %p3308_p4, %p3305_p3 }
0x17bd   :  { %3313 = shalt.err (!%p3310_p5)
}
0x17be   :  { %2459 = dma.vmem_to_hbm [thread:$0]  %s2454_s29, 1024, %s3968_s8, [#allocation8], %s3327_s28, %s3327_s28, %s3328_s9  }
0x17bf   :  { %3320 = dma.done.wait [#allocation8], 1024  }
0x17c0   :  { %3321 = vsyncadd [#allocation8], 4294966272 }
0x17c1   :  { %2463 = vsyncpa [#allocation7], 1 }
0x17c2   :  { %2464 = vsyncpa [#allocation10], 1 }
0x17c3   :  { %2465 = vsyncpa [#allocation13], 1 }
0x17c4   :  { %2466 = vsyncpa [#allocation8], 1 }

</bundles_post_ra>
